<compile_context>
chip_gen: v5e
topology: v5e:2x2
jax: 0.10.0
libtpu: 0.0.40
codegen_flags: <defaults>
</compile_context>

<pallas_src>
import math

import jax
import jax.numpy as jnp
from jax.experimental import pallas as pl
from jax.experimental.pallas import tpu as pltpu

PI = math.pi
LOG2 = math.log(2.0)


def _ssp(x):
    # ShiftedSoftplus: softplus(x) - log(2), numerically stable form.
    return jnp.maximum(x, 0.0) + jnp.log1p(jnp.exp(-jnp.abs(x))) - LOG2


def make_schnet_kernel(N, L):
    """Single-invocation kernel: all L interaction blocks inside one body."""

    def kernel(h0_ref, ea_ref, cmask_ref,
               wm1_ref, bm1_ref, wm2_ref, bm2_ref,
               wl1_ref, wl2_ref, bl2_ref, wlin_ref, blin_ref,
               h_ref):
        ea = ea_ref[...]          # (E, G)  gaussian-smeared distances (loop-invariant)
        cmask = cmask_ref[...]    # (E, 1)  cosine cutoff * (radius & same-graph & !self)
        F = wl1_ref.shape[-1]

        # ---- Phase 1: h-independent CFConv filter networks for all blocks ----
        wfilts = []
        for l in range(L):
            t = _ssp(jnp.dot(ea, wm1_ref[l],
                             preferred_element_type=jnp.float32) + bm1_ref[l])
            wf = (jnp.dot(t, wm2_ref[l],
                          preferred_element_type=jnp.float32) + bm2_ref[l]) * cmask
            wfilts.append(wf.reshape(N, N, F))          # (tgt, src, F)

        # ---- Phase 2: serial h-chain (residual interaction blocks) ----------
        h = h0_ref[...]                                  # (N, H)
        for l in range(L):
            # CFConv: lin1 (no bias), message x_j * W, aggr='add'.
            x1 = jnp.dot(h, wl1_ref[l], preferred_element_type=jnp.float32)   # (N, F)
            msg = jnp.sum(wfilts[l] * x1[None, :, :], axis=1)                 # (N, F)
            # CFConv lin2 -> act -> lin, residual add.
            x2 = _ssp(jnp.dot(msg, wl2_ref[l],
                              preferred_element_type=jnp.float32) + bl2_ref[l])
            h = h + jnp.dot(x2, wlin_ref[l],
                            preferred_element_type=jnp.float32) + blin_ref[l]

        h_ref[...] = h

    return kernel


def schnet_forward(z, pos, batch, params, *, gaussians, cutoff, interactions):
    N = int(z.shape[0])
    E = N * N
    H = params["embedding"].shape[1]
    G = int(gaussians)

    # ---- plain-JAX glue: loop-invariant, h-independent edge pipeline --------
    h0 = params["embedding"][z].astype(jnp.float32)                  # (N, H)

    pos = pos.astype(jnp.float32)
    diff = pos[:, None, :] - pos[None, :, :]                         # (N, N, 3)
    dist = jnp.sqrt(jnp.sum(diff * diff, axis=-1))                   # (N, N)

    same_graph = batch[:, None] == batch[None, :]
    not_self = ~jnp.eye(N, dtype=bool)
    mask = (same_graph & not_self & (dist < cutoff)).astype(jnp.float32)

    offset = jnp.linspace(0.0, cutoff, G, dtype=jnp.float32)
    coeff = -0.5 / (cutoff / (G - 1)) ** 2
    ea = jnp.exp(coeff * (dist[:, :, None] - offset[None, None, :]) ** 2)  # (N, N, G)
    cfac = 0.5 * (jnp.cos(dist * (PI / cutoff)) + 1.0)               # (N, N)

    ea = ea.reshape(E, G)
    cmask = (cfac * mask).reshape(E, 1)

    kernel = make_schnet_kernel(N, int(interactions))

    inputs = (h0, ea, cmask,
              params["wm1"], params["bm1"], params["wm2"], params["bm2"],
              params["wl1"], params["wl2"], params["bl2"],
              params["wlin"], params["blin"])

    vmem = pl.BlockSpec(memory_space=pltpu.MemorySpace.VMEM)
    out = pl.pallas_call(
        kernel,
        out_shape=jax.ShapeDtypeStruct((N, H), jnp.float32),
        in_specs=[vmem] * len(inputs),
        out_specs=vmem,
    )(*inputs)
    return out


# ------------------------- parameter init (deterministic) -----------------------
def _xavier(key, fan_in, fan_out):
    bound = math.sqrt(6.0 / (fan_in + fan_out))
    return jax.random.uniform(key, (fan_in, fan_out), jnp.float32, -bound, bound)


def init_params(key, num_node_types, H, F, G, L):
    keys = jax.random.split(key, 1 + L)
    emb = jax.random.normal(keys[0], (num_node_types, H), jnp.float32)
    wm1, wm2, wl1, wl2, wlin = [], [], [], [], []
    for i in range(L):
        k = jax.random.split(keys[1 + i], 5)
        wm1.append(_xavier(k[0], G, F))
        wm2.append(_xavier(k[1], F, F))
        wl1.append(_xavier(k[2], H, F))
        wl2.append(_xavier(k[3], F, H))
        wlin.append(_xavier(k[4], H, H))
    return dict(
        embedding=emb,
        wm1=jnp.stack(wm1), bm1=jnp.zeros((L, 1, F), jnp.float32),
        wm2=jnp.stack(wm2), bm2=jnp.zeros((L, 1, F), jnp.float32),
        wl1=jnp.stack(wl1),
        wl2=jnp.stack(wl2), bl2=jnp.zeros((L, 1, H), jnp.float32),
        wlin=jnp.stack(wlin), blin=jnp.zeros((L, 1, H), jnp.float32),
    )


# ------------------------- pure-JAX reference (dense) ----------------------------
def reference_forward(z, pos, batch, params, *, gaussians, cutoff, interactions):
    N = pos.shape[0]
    h = params["embedding"][z].astype(jnp.float32)
    diff = pos[:, None, :] - pos[None, :, :]
    dist = jnp.sqrt(jnp.sum(diff ** 2, -1))
    offset = jnp.linspace(0.0, cutoff, gaussians)
    coeff = -0.5 / (cutoff / (gaussians - 1)) ** 2
    mask = ((batch[:, None] == batch[None, :])
            & (~jnp.eye(N, dtype=bool))
            & (dist < cutoff)).astype(jnp.float32)
    ea = jnp.exp(coeff * (dist[:, :, None] - offset[None, None, :]) ** 2)
    C = 0.5 * (jnp.cos(dist * PI / cutoff) + 1.0)
    for l in range(interactions):
        t = _ssp(jnp.einsum('xyg,gf->xyf', ea, params["wm1"][l]) + params["bm1"][l][0])
        W = (jnp.einsum('xyf,fk->xyk', t, params["wm2"][l]) + params["bm2"][l][0])
        W = W * C[:, :, None] * mask[:, :, None]
        x1 = h @ params["wl1"][l]
        msg = jnp.sum(W * x1[None, :, :], axis=1)
        x2 = _ssp(msg @ params["wl2"][l] + params["bl2"][l][0])
        h = h + x2 @ params["wlin"][l] + params["blin"][l][0]
    return h


if __name__ == "__main__":
    num_node_types = 8
    H = 32          # hidden_channels
    F = 32          # num_filters
    G = 16          # num_gaussians
    L = 3           # num_interactions
    cutoff = 10.0
    N = 16          # nodes across 2 graphs

    key = jax.random.PRNGKey(0)
    k1, k2, k3 = jax.random.split(key, 3)
    z = jax.random.randint(k1, (N,), 0, num_node_types)
    pos = jax.random.uniform(k2, (N, 3), jnp.float32, 0.0, 12.0)
    batch = jnp.concatenate([jnp.zeros(N // 2, jnp.int32), jnp.ones(N // 2, jnp.int32)])
    params = init_params(k3, num_node_types, H, F, G, L)

    fwd = jax.jit(lambda z_, pos_, batch_, p_: schnet_forward(
        z_, pos_, batch_, p_, gaussians=G, cutoff=cutoff, interactions=L))
    out = jax.block_until_ready(fwd(z, pos, batch, params))

    ref = reference_forward(z, pos, batch, params,
                            gaussians=G, cutoff=cutoff, interactions=L)
    assert out.shape == (N, H)
    err = float(jnp.max(jnp.abs(out - ref)))
    assert jnp.allclose(out, ref, rtol=1e-3, atol=1e-3), err
    print("KERNEL_OK")
</pallas_src>

<mosaic_0001>
module attributes {stable_mosaic.version = 11 : i64} {
  func.func @kernel(%arg0: memref<16x32xf32, #tpu.memory_space<vmem>>, %arg1: memref<256x16xf32, #tpu.memory_space<vmem>>, %arg2: memref<256x1xf32, #tpu.memory_space<vmem>>, %arg3: memref<3x16x32xf32, #tpu.memory_space<vmem>>, %arg4: memref<3x1x32xf32, #tpu.memory_space<vmem>>, %arg5: memref<3x32x32xf32, #tpu.memory_space<vmem>>, %arg6: memref<3x1x32xf32, #tpu.memory_space<vmem>>, %arg7: memref<3x32x32xf32, #tpu.memory_space<vmem>>, %arg8: memref<3x32x32xf32, #tpu.memory_space<vmem>>, %arg9: memref<3x1x32xf32, #tpu.memory_space<vmem>>, %arg10: memref<3x32x32xf32, #tpu.memory_space<vmem>>, %arg11: memref<3x1x32xf32, #tpu.memory_space<vmem>>, %arg12: memref<16x32xf32, #tpu.memory_space<vmem>>) attributes {dimension_semantics = [], scalar_prefetch = 0 : i64, scratch_operands = 0 : i64, tpu.core_type = #tpu.core_type<tc>} {
    %c0 = arith.constant 0 : index
    %c0_0 = arith.constant 0 : index
    %0 = vector.load %arg1[%c0, %c0_0] : memref<256x16xf32, #tpu.memory_space<vmem>>, vector<256x16xf32>
    %c0_1 = arith.constant 0 : index
    %c0_2 = arith.constant 0 : index
    %1 = vector.load %arg2[%c0_1, %c0_2] : memref<256x1xf32, #tpu.memory_space<vmem>>, vector<256x1xf32>
    %c0_3 = arith.constant 0 : index
    %c0_4 = arith.constant 0 : index
    %c0_5 = arith.constant 0 : index
    %2 = vector.load %arg3[%c0_3, %c0_4, %c0_5] : memref<3x16x32xf32, #tpu.memory_space<vmem>>, vector<1x16x32xf32>
    %3 = vector.shape_cast %2 : vector<1x16x32xf32> to vector<16x32xf32>
    %cst = arith.constant dense<0.000000e+00> : vector<256x32xf32>
    %4 = tpu.matmul %0, %3, %cst {dimension_numbers = #tpu.dot_dimension_numbers<[1], [0], [0], [1], [0, 0, 1, 1], [], []>} : vector<256x16xf32>, vector<16x32xf32>, vector<256x32xf32> -> vector<256x32xf32>
    %c0_6 = arith.constant 0 : index
    %c0_7 = arith.constant 0 : index
    %c0_8 = arith.constant 0 : index
    %5 = vector.load %arg4[%c0_6, %c0_7, %c0_8] : memref<3x1x32xf32, #tpu.memory_space<vmem>>, vector<1x1x32xf32>
    %6 = vector.shape_cast %5 : vector<1x1x32xf32> to vector<1x32xf32>
    %7 = vector.broadcast %6 : vector<1x32xf32> to vector<256x32xf32>
    %8 = arith.addf %4, %7 : vector<256x32xf32>
    %cst_9 = arith.constant 0.000000e+00 : f32
    %9 = vector.broadcast %cst_9 : f32 to vector<256x32xf32>
    %10 = arith.maximumf %8, %9 : vector<256x32xf32>
    %11 = math.absf %8 : vector<256x32xf32>
    %cst_10 = arith.constant 0.000000e+00 : f32
    %12 = vector.broadcast %cst_10 : f32 to vector<256x32xf32>
    %13 = arith.subf %12, %11 : vector<256x32xf32>
    %14 = math.exp %13 : vector<256x32xf32>
    %15 = math.log1p %14 : vector<256x32xf32>
    %16 = arith.addf %10, %15 : vector<256x32xf32>
    %cst_11 = arith.constant 0.693147182 : f32
    %17 = vector.broadcast %cst_11 : f32 to vector<256x32xf32>
    %18 = arith.subf %16, %17 : vector<256x32xf32>
    %c0_12 = arith.constant 0 : index
    %c0_13 = arith.constant 0 : index
    %c0_14 = arith.constant 0 : index
    %19 = vector.load %arg5[%c0_12, %c0_13, %c0_14] : memref<3x32x32xf32, #tpu.memory_space<vmem>>, vector<1x32x32xf32>
    %20 = vector.shape_cast %19 : vector<1x32x32xf32> to vector<32x32xf32>
    %cst_15 = arith.constant dense<0.000000e+00> : vector<256x32xf32>
    %21 = tpu.matmul %18, %20, %cst_15 {dimension_numbers = #tpu.dot_dimension_numbers<[1], [0], [0], [1], [0, 0, 1, 1], [], []>} : vector<256x32xf32>, vector<32x32xf32>, vector<256x32xf32> -> vector<256x32xf32>
    %c0_16 = arith.constant 0 : index
    %c0_17 = arith.constant 0 : index
    %c0_18 = arith.constant 0 : index
    %22 = vector.load %arg6[%c0_16, %c0_17, %c0_18] : memref<3x1x32xf32, #tpu.memory_space<vmem>>, vector<1x1x32xf32>
    %23 = vector.shape_cast %22 : vector<1x1x32xf32> to vector<1x32xf32>
    %24 = vector.broadcast %23 : vector<1x32xf32> to vector<256x32xf32>
    %25 = arith.addf %21, %24 : vector<256x32xf32>
    %26 = vector.broadcast %1 : vector<256x1xf32> to vector<256x32xf32>
    %27 = arith.mulf %25, %26 : vector<256x32xf32>
    %28 = vector.shape_cast %27 : vector<256x32xf32> to vector<16x16x32xf32>
    %c1 = arith.constant 1 : index
    %c0_19 = arith.constant 0 : index
    %c0_20 = arith.constant 0 : index
    %29 = vector.load %arg3[%c1, %c0_19, %c0_20] : memref<3x16x32xf32, #tpu.memory_space<vmem>>, vector<1x16x32xf32>
    %30 = vector.shape_cast %29 : vector<1x16x32xf32> to vector<16x32xf32>
    %cst_21 = arith.constant dense<0.000000e+00> : vector<256x32xf32>
    %31 = tpu.matmul %0, %30, %cst_21 {dimension_numbers = #tpu.dot_dimension_numbers<[1], [0], [0], [1], [0, 0, 1, 1], [], []>} : vector<256x16xf32>, vector<16x32xf32>, vector<256x32xf32> -> vector<256x32xf32>
    %c1_22 = arith.constant 1 : index
    %c0_23 = arith.constant 0 : index
    %c0_24 = arith.constant 0 : index
    %32 = vector.load %arg4[%c1_22, %c0_23, %c0_24] : memref<3x1x32xf32, #tpu.memory_space<vmem>>, vector<1x1x32xf32>
    %33 = vector.shape_cast %32 : vector<1x1x32xf32> to vector<1x32xf32>
    %34 = vector.broadcast %33 : vector<1x32xf32> to vector<256x32xf32>
    %35 = arith.addf %31, %34 : vector<256x32xf32>
    %cst_25 = arith.constant 0.000000e+00 : f32
    %36 = vector.broadcast %cst_25 : f32 to vector<256x32xf32>
    %37 = arith.maximumf %35, %36 : vector<256x32xf32>
    %38 = math.absf %35 : vector<256x32xf32>
    %cst_26 = arith.constant 0.000000e+00 : f32
    %39 = vector.broadcast %cst_26 : f32 to vector<256x32xf32>
    %40 = arith.subf %39, %38 : vector<256x32xf32>
    %41 = math.exp %40 : vector<256x32xf32>
    %42 = math.log1p %41 : vector<256x32xf32>
    %43 = arith.addf %37, %42 : vector<256x32xf32>
    %cst_27 = arith.constant 0.693147182 : f32
    %44 = vector.broadcast %cst_27 : f32 to vector<256x32xf32>
    %45 = arith.subf %43, %44 : vector<256x32xf32>
    %c1_28 = arith.constant 1 : index
    %c0_29 = arith.constant 0 : index
    %c0_30 = arith.constant 0 : index
    %46 = vector.load %arg5[%c1_28, %c0_29, %c0_30] : memref<3x32x32xf32, #tpu.memory_space<vmem>>, vector<1x32x32xf32>
    %47 = vector.shape_cast %46 : vector<1x32x32xf32> to vector<32x32xf32>
    %cst_31 = arith.constant dense<0.000000e+00> : vector<256x32xf32>
    %48 = tpu.matmul %45, %47, %cst_31 {dimension_numbers = #tpu.dot_dimension_numbers<[1], [0], [0], [1], [0, 0, 1, 1], [], []>} : vector<256x32xf32>, vector<32x32xf32>, vector<256x32xf32> -> vector<256x32xf32>
    %c1_32 = arith.constant 1 : index
    %c0_33 = arith.constant 0 : index
    %c0_34 = arith.constant 0 : index
    %49 = vector.load %arg6[%c1_32, %c0_33, %c0_34] : memref<3x1x32xf32, #tpu.memory_space<vmem>>, vector<1x1x32xf32>
    %50 = vector.shape_cast %49 : vector<1x1x32xf32> to vector<1x32xf32>
    %51 = vector.broadcast %50 : vector<1x32xf32> to vector<256x32xf32>
    %52 = arith.addf %48, %51 : vector<256x32xf32>
    %53 = vector.broadcast %1 : vector<256x1xf32> to vector<256x32xf32>
    %54 = arith.mulf %52, %53 : vector<256x32xf32>
    %55 = vector.shape_cast %54 : vector<256x32xf32> to vector<16x16x32xf32>
    %c2 = arith.constant 2 : index
    %c0_35 = arith.constant 0 : index
    %c0_36 = arith.constant 0 : index
    %56 = vector.load %arg3[%c2, %c0_35, %c0_36] : memref<3x16x32xf32, #tpu.memory_space<vmem>>, vector<1x16x32xf32>
    %57 = vector.shape_cast %56 : vector<1x16x32xf32> to vector<16x32xf32>
    %cst_37 = arith.constant dense<0.000000e+00> : vector<256x32xf32>
    %58 = tpu.matmul %0, %57, %cst_37 {dimension_numbers = #tpu.dot_dimension_numbers<[1], [0], [0], [1], [0, 0, 1, 1], [], []>} : vector<256x16xf32>, vector<16x32xf32>, vector<256x32xf32> -> vector<256x32xf32>
    %c2_38 = arith.constant 2 : index
    %c0_39 = arith.constant 0 : index
    %c0_40 = arith.constant 0 : index
    %59 = vector.load %arg4[%c2_38, %c0_39, %c0_40] : memref<3x1x32xf32, #tpu.memory_space<vmem>>, vector<1x1x32xf32>
    %60 = vector.shape_cast %59 : vector<1x1x32xf32> to vector<1x32xf32>
    %61 = vector.broadcast %60 : vector<1x32xf32> to vector<256x32xf32>
    %62 = arith.addf %58, %61 : vector<256x32xf32>
    %cst_41 = arith.constant 0.000000e+00 : f32
    %63 = vector.broadcast %cst_41 : f32 to vector<256x32xf32>
    %64 = arith.maximumf %62, %63 : vector<256x32xf32>
    %65 = math.absf %62 : vector<256x32xf32>
    %cst_42 = arith.constant 0.000000e+00 : f32
    %66 = vector.broadcast %cst_42 : f32 to vector<256x32xf32>
    %67 = arith.subf %66, %65 : vector<256x32xf32>
    %68 = math.exp %67 : vector<256x32xf32>
    %69 = math.log1p %68 : vector<256x32xf32>
    %70 = arith.addf %64, %69 : vector<256x32xf32>
    %cst_43 = arith.constant 0.693147182 : f32
    %71 = vector.broadcast %cst_43 : f32 to vector<256x32xf32>
    %72 = arith.subf %70, %71 : vector<256x32xf32>
    %c2_44 = arith.constant 2 : index
    %c0_45 = arith.constant 0 : index
    %c0_46 = arith.constant 0 : index
    %73 = vector.load %arg5[%c2_44, %c0_45, %c0_46] : memref<3x32x32xf32, #tpu.memory_space<vmem>>, vector<1x32x32xf32>
    %74 = vector.shape_cast %73 : vector<1x32x32xf32> to vector<32x32xf32>
    %cst_47 = arith.constant dense<0.000000e+00> : vector<256x32xf32>
    %75 = tpu.matmul %72, %74, %cst_47 {dimension_numbers = #tpu.dot_dimension_numbers<[1], [0], [0], [1], [0, 0, 1, 1], [], []>} : vector<256x32xf32>, vector<32x32xf32>, vector<256x32xf32> -> vector<256x32xf32>
    %c2_48 = arith.constant 2 : index
    %c0_49 = arith.constant 0 : index
    %c0_50 = arith.constant 0 : index
    %76 = vector.load %arg6[%c2_48, %c0_49, %c0_50] : memref<3x1x32xf32, #tpu.memory_space<vmem>>, vector<1x1x32xf32>
    %77 = vector.shape_cast %76 : vector<1x1x32xf32> to vector<1x32xf32>
    %78 = vector.broadcast %77 : vector<1x32xf32> to vector<256x32xf32>
    %79 = arith.addf %75, %78 : vector<256x32xf32>
    %80 = vector.broadcast %1 : vector<256x1xf32> to vector<256x32xf32>
    %81 = arith.mulf %79, %80 : vector<256x32xf32>
    %82 = vector.shape_cast %81 : vector<256x32xf32> to vector<16x16x32xf32>
    %c0_51 = arith.constant 0 : index
    %c0_52 = arith.constant 0 : index
    %83 = vector.load %arg0[%c0_51, %c0_52] : memref<16x32xf32, #tpu.memory_space<vmem>>, vector<16x32xf32>
    %c0_53 = arith.constant 0 : index
    %c0_54 = arith.constant 0 : index
    %c0_55 = arith.constant 0 : index
    %84 = vector.load %arg7[%c0_53, %c0_54, %c0_55] : memref<3x32x32xf32, #tpu.memory_space<vmem>>, vector<1x32x32xf32>
    %85 = vector.shape_cast %84 : vector<1x32x32xf32> to vector<32x32xf32>
    %cst_56 = arith.constant dense<0.000000e+00> : vector<16x32xf32>
    %86 = tpu.matmul %83, %85, %cst_56 {dimension_numbers = #tpu.dot_dimension_numbers<[1], [0], [0], [1], [0, 0, 1, 1], [], []>} : vector<16x32xf32>, vector<32x32xf32>, vector<16x32xf32> -> vector<16x32xf32>
    %87 = vector.shape_cast %86 : vector<16x32xf32> to vector<1x16x32xf32>
    %88 = vector.broadcast %87 : vector<1x16x32xf32> to vector<16x16x32xf32>
    %89 = arith.mulf %28, %88 : vector<16x16x32xf32>
    %cst_57 = arith.constant dense<0.000000e+00> : vector<16x32xf32>
    %90 = vector.multi_reduction <add>, %89, %cst_57 [1] : vector<16x16x32xf32> to vector<16x32xf32>
    %c0_58 = arith.constant 0 : index
    %c0_59 = arith.constant 0 : index
    %c0_60 = arith.constant 0 : index
    %91 = vector.load %arg8[%c0_58, %c0_59, %c0_60] : memref<3x32x32xf32, #tpu.memory_space<vmem>>, vector<1x32x32xf32>
    %92 = vector.shape_cast %91 : vector<1x32x32xf32> to vector<32x32xf32>
    %cst_61 = arith.constant dense<0.000000e+00> : vector<16x32xf32>
    %93 = tpu.matmul %90, %92, %cst_61 {dimension_numbers = #tpu.dot_dimension_numbers<[1], [0], [0], [1], [0, 0, 1, 1], [], []>} : vector<16x32xf32>, vector<32x32xf32>, vector<16x32xf32> -> vector<16x32xf32>
    %c0_62 = arith.constant 0 : index
    %c0_63 = arith.constant 0 : index
    %c0_64 = arith.constant 0 : index
    %94 = vector.load %arg9[%c0_62, %c0_63, %c0_64] : memref<3x1x32xf32, #tpu.memory_space<vmem>>, vector<1x1x32xf32>
    %95 = vector.shape_cast %94 : vector<1x1x32xf32> to vector<1x32xf32>
    %96 = vector.broadcast %95 : vector<1x32xf32> to vector<16x32xf32>
    %97 = arith.addf %93, %96 : vector<16x32xf32>
    %cst_65 = arith.constant 0.000000e+00 : f32
    %98 = vector.broadcast %cst_65 : f32 to vector<16x32xf32>
    %99 = arith.maximumf %97, %98 : vector<16x32xf32>
    %100 = math.absf %97 : vector<16x32xf32>
    %cst_66 = arith.constant 0.000000e+00 : f32
    %101 = vector.broadcast %cst_66 : f32 to vector<16x32xf32>
    %102 = arith.subf %101, %100 : vector<16x32xf32>
    %103 = math.exp %102 : vector<16x32xf32>
    %104 = math.log1p %103 : vector<16x32xf32>
    %105 = arith.addf %99, %104 : vector<16x32xf32>
    %cst_67 = arith.constant 0.693147182 : f32
    %106 = vector.broadcast %cst_67 : f32 to vector<16x32xf32>
    %107 = arith.subf %105, %106 : vector<16x32xf32>
    %c0_68 = arith.constant 0 : index
    %c0_69 = arith.constant 0 : index
    %c0_70 = arith.constant 0 : index
    %108 = vector.load %arg10[%c0_68, %c0_69, %c0_70] : memref<3x32x32xf32, #tpu.memory_space<vmem>>, vector<1x32x32xf32>
    %109 = vector.shape_cast %108 : vector<1x32x32xf32> to vector<32x32xf32>
    %cst_71 = arith.constant dense<0.000000e+00> : vector<16x32xf32>
    %110 = tpu.matmul %107, %109, %cst_71 {dimension_numbers = #tpu.dot_dimension_numbers<[1], [0], [0], [1], [0, 0, 1, 1], [], []>} : vector<16x32xf32>, vector<32x32xf32>, vector<16x32xf32> -> vector<16x32xf32>
    %111 = arith.addf %83, %110 : vector<16x32xf32>
    %c0_72 = arith.constant 0 : index
    %c0_73 = arith.constant 0 : index
    %c0_74 = arith.constant 0 : index
    %112 = vector.load %arg11[%c0_72, %c0_73, %c0_74] : memref<3x1x32xf32, #tpu.memory_space<vmem>>, vector<1x1x32xf32>
    %113 = vector.shape_cast %112 : vector<1x1x32xf32> to vector<1x32xf32>
    %114 = vector.broadcast %113 : vector<1x32xf32> to vector<16x32xf32>
    %115 = arith.addf %111, %114 : vector<16x32xf32>
    %c1_75 = arith.constant 1 : index
    %c0_76 = arith.constant 0 : index
    %c0_77 = arith.constant 0 : index
    %116 = vector.load %arg7[%c1_75, %c0_76, %c0_77] : memref<3x32x32xf32, #tpu.memory_space<vmem>>, vector<1x32x32xf32>
    %117 = vector.shape_cast %116 : vector<1x32x32xf32> to vector<32x32xf32>
    %cst_78 = arith.constant dense<0.000000e+00> : vector<16x32xf32>
    %118 = tpu.matmul %115, %117, %cst_78 {dimension_numbers = #tpu.dot_dimension_numbers<[1], [0], [0], [1], [0, 0, 1, 1], [], []>} : vector<16x32xf32>, vector<32x32xf32>, vector<16x32xf32> -> vector<16x32xf32>
    %119 = vector.shape_cast %118 : vector<16x32xf32> to vector<1x16x32xf32>
    %120 = vector.broadcast %119 : vector<1x16x32xf32> to vector<16x16x32xf32>
    %121 = arith.mulf %55, %120 : vector<16x16x32xf32>
    %cst_79 = arith.constant dense<0.000000e+00> : vector<16x32xf32>
    %122 = vector.multi_reduction <add>, %121, %cst_79 [1] : vector<16x16x32xf32> to vector<16x32xf32>
    %c1_80 = arith.constant 1 : index
    %c0_81 = arith.constant 0 : index
    %c0_82 = arith.constant 0 : index
    %123 = vector.load %arg8[%c1_80, %c0_81, %c0_82] : memref<3x32x32xf32, #tpu.memory_space<vmem>>, vector<1x32x32xf32>
    %124 = vector.shape_cast %123 : vector<1x32x32xf32> to vector<32x32xf32>
    %cst_83 = arith.constant dense<0.000000e+00> : vector<16x32xf32>
    %125 = tpu.matmul %122, %124, %cst_83 {dimension_numbers = #tpu.dot_dimension_numbers<[1], [0], [0], [1], [0, 0, 1, 1], [], []>} : vector<16x32xf32>, vector<32x32xf32>, vector<16x32xf32> -> vector<16x32xf32>
    %c1_84 = arith.constant 1 : index
    %c0_85 = arith.constant 0 : index
    %c0_86 = arith.constant 0 : index
    %126 = vector.load %arg9[%c1_84, %c0_85, %c0_86] : memref<3x1x32xf32, #tpu.memory_space<vmem>>, vector<1x1x32xf32>
    %127 = vector.shape_cast %126 : vector<1x1x32xf32> to vector<1x32xf32>
    %128 = vector.broadcast %127 : vector<1x32xf32> to vector<16x32xf32>
    %129 = arith.addf %125, %128 : vector<16x32xf32>
    %cst_87 = arith.constant 0.000000e+00 : f32
    %130 = vector.broadcast %cst_87 : f32 to vector<16x32xf32>
    %131 = arith.maximumf %129, %130 : vector<16x32xf32>
    %132 = math.absf %129 : vector<16x32xf32>
    %cst_88 = arith.constant 0.000000e+00 : f32
    %133 = vector.broadcast %cst_88 : f32 to vector<16x32xf32>
    %134 = arith.subf %133, %132 : vector<16x32xf32>
    %135 = math.exp %134 : vector<16x32xf32>
    %136 = math.log1p %135 : vector<16x32xf32>
    %137 = arith.addf %131, %136 : vector<16x32xf32>
    %cst_89 = arith.constant 0.693147182 : f32
    %138 = vector.broadcast %cst_89 : f32 to vector<16x32xf32>
    %139 = arith.subf %137, %138 : vector<16x32xf32>
    %c1_90 = arith.constant 1 : index
    %c0_91 = arith.constant 0 : index
    %c0_92 = arith.constant 0 : index
    %140 = vector.load %arg10[%c1_90, %c0_91, %c0_92] : memref<3x32x32xf32, #tpu.memory_space<vmem>>, vector<1x32x32xf32>
    %141 = vector.shape_cast %140 : vector<1x32x32xf32> to vector<32x32xf32>
    %cst_93 = arith.constant dense<0.000000e+00> : vector<16x32xf32>
    %142 = tpu.matmul %139, %141, %cst_93 {dimension_numbers = #tpu.dot_dimension_numbers<[1], [0], [0], [1], [0, 0, 1, 1], [], []>} : vector<16x32xf32>, vector<32x32xf32>, vector<16x32xf32> -> vector<16x32xf32>
    %143 = arith.addf %115, %142 : vector<16x32xf32>
    %c1_94 = arith.constant 1 : index
    %c0_95 = arith.constant 0 : index
    %c0_96 = arith.constant 0 : index
    %144 = vector.load %arg11[%c1_94, %c0_95, %c0_96] : memref<3x1x32xf32, #tpu.memory_space<vmem>>, vector<1x1x32xf32>
    %145 = vector.shape_cast %144 : vector<1x1x32xf32> to vector<1x32xf32>
    %146 = vector.broadcast %145 : vector<1x32xf32> to vector<16x32xf32>
    %147 = arith.addf %143, %146 : vector<16x32xf32>
    %c2_97 = arith.constant 2 : index
    %c0_98 = arith.constant 0 : index
    %c0_99 = arith.constant 0 : index
    %148 = vector.load %arg7[%c2_97, %c0_98, %c0_99] : memref<3x32x32xf32, #tpu.memory_space<vmem>>, vector<1x32x32xf32>
    %149 = vector.shape_cast %148 : vector<1x32x32xf32> to vector<32x32xf32>
    %cst_100 = arith.constant dense<0.000000e+00> : vector<16x32xf32>
    %150 = tpu.matmul %147, %149, %cst_100 {dimension_numbers = #tpu.dot_dimension_numbers<[1], [0], [0], [1], [0, 0, 1, 1], [], []>} : vector<16x32xf32>, vector<32x32xf32>, vector<16x32xf32> -> vector<16x32xf32>
    %151 = vector.shape_cast %150 : vector<16x32xf32> to vector<1x16x32xf32>
    %152 = vector.broadcast %151 : vector<1x16x32xf32> to vector<16x16x32xf32>
    %153 = arith.mulf %82, %152 : vector<16x16x32xf32>
    %cst_101 = arith.constant dense<0.000000e+00> : vector<16x32xf32>
    %154 = vector.multi_reduction <add>, %153, %cst_101 [1] : vector<16x16x32xf32> to vector<16x32xf32>
    %c2_102 = arith.constant 2 : index
    %c0_103 = arith.constant 0 : index
    %c0_104 = arith.constant 0 : index
    %155 = vector.load %arg8[%c2_102, %c0_103, %c0_104] : memref<3x32x32xf32, #tpu.memory_space<vmem>>, vector<1x32x32xf32>
    %156 = vector.shape_cast %155 : vector<1x32x32xf32> to vector<32x32xf32>
    %cst_105 = arith.constant dense<0.000000e+00> : vector<16x32xf32>
    %157 = tpu.matmul %154, %156, %cst_105 {dimension_numbers = #tpu.dot_dimension_numbers<[1], [0], [0], [1], [0, 0, 1, 1], [], []>} : vector<16x32xf32>, vector<32x32xf32>, vector<16x32xf32> -> vector<16x32xf32>
    %c2_106 = arith.constant 2 : index
    %c0_107 = arith.constant 0 : index
    %c0_108 = arith.constant 0 : index
    %158 = vector.load %arg9[%c2_106, %c0_107, %c0_108] : memref<3x1x32xf32, #tpu.memory_space<vmem>>, vector<1x1x32xf32>
    %159 = vector.shape_cast %158 : vector<1x1x32xf32> to vector<1x32xf32>
    %160 = vector.broadcast %159 : vector<1x32xf32> to vector<16x32xf32>
    %161 = arith.addf %157, %160 : vector<16x32xf32>
    %cst_109 = arith.constant 0.000000e+00 : f32
    %162 = vector.broadcast %cst_109 : f32 to vector<16x32xf32>
    %163 = arith.maximumf %161, %162 : vector<16x32xf32>
    %164 = math.absf %161 : vector<16x32xf32>
    %cst_110 = arith.constant 0.000000e+00 : f32
    %165 = vector.broadcast %cst_110 : f32 to vector<16x32xf32>
    %166 = arith.subf %165, %164 : vector<16x32xf32>
    %167 = math.exp %166 : vector<16x32xf32>
    %168 = math.log1p %167 : vector<16x32xf32>
    %169 = arith.addf %163, %168 : vector<16x32xf32>
    %cst_111 = arith.constant 0.693147182 : f32
    %170 = vector.broadcast %cst_111 : f32 to vector<16x32xf32>
    %171 = arith.subf %169, %170 : vector<16x32xf32>
    %c2_112 = arith.constant 2 : index
    %c0_113 = arith.constant 0 : index
    %c0_114 = arith.constant 0 : index
    %172 = vector.load %arg10[%c2_112, %c0_113, %c0_114] : memref<3x32x32xf32, #tpu.memory_space<vmem>>, vector<1x32x32xf32>
    %173 = vector.shape_cast %172 : vector<1x32x32xf32> to vector<32x32xf32>
    %cst_115 = arith.constant dense<0.000000e+00> : vector<16x32xf32>
    %174 = tpu.matmul %171, %173, %cst_115 {dimension_numbers = #tpu.dot_dimension_numbers<[1], [0], [0], [1], [0, 0, 1, 1], [], []>} : vector<16x32xf32>, vector<32x32xf32>, vector<16x32xf32> -> vector<16x32xf32>
    %175 = arith.addf %147, %174 : vector<16x32xf32>
    %c2_116 = arith.constant 2 : index
    %c0_117 = arith.constant 0 : index
    %c0_118 = arith.constant 0 : index
    %176 = vector.load %arg11[%c2_116, %c0_117, %c0_118] : memref<3x1x32xf32, #tpu.memory_space<vmem>>, vector<1x1x32xf32>
    %177 = vector.shape_cast %176 : vector<1x1x32xf32> to vector<1x32xf32>
    %178 = vector.broadcast %177 : vector<1x32xf32> to vector<16x32xf32>
    %179 = arith.addf %175, %178 : vector<16x32xf32>
    %c0_119 = arith.constant 0 : index
    %c0_120 = arith.constant 0 : index
    %180 = vector.load %arg12[%c0_119, %c0_120] : memref<16x32xf32, #tpu.memory_space<vmem>>, vector<16x32xf32>
    tpu.vector_store %arg12[%c0_119, %c0_120], %179 {strides = array<i32>} : memref<16x32xf32, #tpu.memory_space<vmem>>, vector<16x32xf32>,
    return
  }
}

</mosaic_0001>

<bundles_post_ra>
// kernel: _lambda_.1
= control target key start
LH: loop header
LB: loop body
LE: loop exit
PB: predicated region body
PF: predicated region fallthrough
CT: control target
= control target key end

     0   :  { %vm112_vm0 = vcmask 130048   ;;  %s7694_s0 = inlined_call_operand.vmem [shape: f32[16,32], index: 0, kind: input, shape index: {}]   ;;  %s7695_s1 = inlined_call_operand.vmem [shape: f32[256,16], index: 1, kind: input, shape index: {}]   ;;  %s7696_s2 = inlined_call_operand.vmem [shape: f32[256,1], index: 2, kind: input, shape index: {}]   ;;  %s7697_s3 = inlined_call_operand.vmem [shape: f32[3,16,32], index: 3, kind: input, shape index: {}]   ;;  %s7698_s4 = inlined_call_operand.vmem [shape: f32[3,1,32], index: 4, kind: input, shape index: {}]   ;;  %s7699_s5 = inlined_call_operand.vmem [shape: f32[3,32,32], index: 5, kind: input, shape index: {}]   ;;  %s7700_s6 = inlined_call_operand.vmem [shape: f32[3,1,32], index: 6, kind: input, shape index: {}]   ;;  %s7701_s7 = inlined_call_operand.vmem [shape: f32[3,32,32], index: 7, kind: input, shape index: {}]   ;;  %s7702_s8 = inlined_call_operand.vmem [shape: f32[3,32,32], index: 8, kind: input, shape index: {}]   ;;  %s7703_s9 = inlined_call_operand.vmem [shape: f32[3,1,32], index: 9, kind: input, shape index: {}]   ;;  %s7704_s10 = inlined_call_operand.vmem [shape: f32[3,32,32], index: 10, kind: input, shape index: {}]   ;;  %s7705_s11 = inlined_call_operand.vmem [shape: f32[3,1,32], index: 11, kind: input, shape index: {}]   ;;  %s7706_s12 = inlined_call_operand.hbm [shape: f32[16,32], index: 12, kind: output, shape index: {}]  }
   0x1   :  { %v107_v0 = vld [vmem:[%s7697_s3 + $0x8] sm:$0xff]  ;;  %v106_v1 = vld [vmem:[%s7697_s3] sm:$0xff] }
   0x2   :  { %223 = vmatpush.msra.mxu0 %v107_v0  ;;  %v42_v2 = vld [vmem:[%s7695_s1] sm:$0xff]  ;;  %4448 = vmatpush.msra.mxu3 %v107_v0 }
   0x4   :  { %224 = vmatpush.msra.mxu0 %v106_v1  ;;  %4449 = vmatpush.msra.mxu3 %v106_v1 }
   0x5   :  { %4092 = vmatmul.msk.f32.vlgmr.msra.gmra.mxu0 %vm112_vm0, %v42_v2 }
   0x6   :  { %17 = vsyncpa [#allocation3], 0  ;;  %v43_v3 = vld [vmem:[%s7695_s1 + $0x8] sm:$0xff]  ;;  %v44_v4 = vld [vmem:[%s7695_s1 + $0x10] sm:$0xff]  ;;  %v4947_v38 = vmov 0   ;;  %vm842_vm2 = vcmask 261120  }
   0x7   :  { %v45_v5 = vld [vmem:[%s7695_s1 + $0x18] sm:$0xff]  ;;  %v46_v6 = vld [vmem:[%s7695_s1 + $0x20] sm:$0xff]  ;;  %v47_v7 = vld [vmem:[%s7695_s1 + $0x28] sm:$0xff]  ;;  %4460 = vset.pattern.permute.xlu0 %v4947_v38  ;;  %4461 = vset.pattern.permute.xlu1 %v4947_v38  ;;  %s4948_s18 = smov [#allocation2]   ;;  %s4950_s21 = smov 8  }
   0x8   :  { %v48_v8 = vld [vmem:[%s7695_s1 + $0x30] sm:$0xff]  ;;  %v49_v9 = vld [vmem:[%s7695_s1 + $0x38] sm:$0xff]  ;;  %v50_v10 = vld [vmem:[%s7695_s1 + $0x40] sm:$0xff]  ;;  %4462 = vset.pattern.permute.xlu2 %v4947_v38 }
   0x9   :  { %v51_v11 = vld [vmem:[%s7695_s1 + $0x48] sm:$0xff]  ;;  %v52_v12 = vld [vmem:[%s7695_s1 + $0x50] sm:$0xff]  ;;  %v5069_v13 = vld [vmem:[%s7695_s1 + $0x58] sm:$0xff] }
   0xa   :  { %v5076_v14 = vld [vmem:[%s7695_s1 + $0x60] sm:$0xff]  ;;  %v5083_v15 = vld [vmem:[%s7695_s1 + $0x68] sm:$0xff]  ;;  %v5094_v17 = vld [vmem:[%s7695_s1 + $0x70] sm:$0xff] }
   0xb   :  { %v63_v16 = vld [vmem:[%s7695_s1 + $0xa8] sm:$0xff]  ;;  %v64_v18 = vld [vmem:[%s7695_s1 + $0xb0] sm:$0xff]  ;;  %v57_v19 = vld [vmem:[%s7695_s1 + $0x78] sm:$0xff] }
   0xc   :  { %4113 = vmatmul.msk.f32.vlgmr.msra.gmra.mxu3 %vm112_vm0, %v63_v16  ;;  %v837_v20 = vld [vmem:[%s7699_s5 + $0x18] sm:$0xff]  ;;  %v836_v21 = vld [vmem:[%s7699_s5 + $0x10] sm:$0xff]  ;;  %v835_v22 = vld [vmem:[%s7699_s5 + $0x8] sm:$0xff] }
   0xd   :  { %4093 = vmatmul.msk.f32.gmra.mxu0 %vm112_vm0, %v43_v3  ;;  %951 = vmatpush.msra.mxu1 %v837_v20  ;;  %v5118_v23 = vld [vmem:[%s7698_s4] ss:$0 sm:$0xff]  ;;  %v65_v24 = vld [vmem:[%s7695_s1 + $0xb8] sm:$0xff]  ;;  %v59_v34 = vld [vmem:[%s7695_s1 + $0x88] sm:$0xff] }
   0xe   :  { %v834_v25 = vld [vmem:[%s7699_s5] sm:$0xff]  ;;  %v4189_v36 = vld [vmem:[%s7697_s3 + $0x18] sm:$0xff]  ;;  %v67_v41 = vld [vmem:[%s7695_s1 + $0xc8] sm:$0xff] }
   0xf   :  { %952 = vmatpush.msra.mxu1 %v836_v21  ;;  %v58_v27 = vld [vmem:[%s7695_s1 + $0x80] sm:$0xff]  ;;  %4450 = vmatpush.msra.mxu2 %v4189_v36  ;;  %v60_v45 = vld [vmem:[%s7695_s1 + $0x90] sm:$0xff]  ;;  %v75_v50 = vld [vmem:[%s7696_s2 + $0x8] sm:$0xff] }
  0x10   :  { %v66_v31 = vld [vmem:[%s7695_s1 + $0xc0] sm:$0xff]  ;;  %v68_v53 = vld [vmem:[%s7695_s1 + $0xd0] sm:$0xff]  ;;  %v61_v59 = vld [vmem:[%s7695_s1 + $0x98] sm:$0xff] }
  0x11   :  { %953 = vmatpush.msra.mxu1 %v835_v22  ;;  %v74_v39 = vld [vmem:[%s7696_s2] sm:$0xff] }
  0x12   :  { %1054 = vperm.xlu0 %4460, %v74_v39  }
  0x13   :  { %954 = vmatpush.msra.mxu1 %v834_v25 }
  0x14   :  { %4114 = vmatmul.msk.f32.gmra.mxu3 %vm112_vm0, %v64_v18 }
  0x15   :  { %4094 = vmatmul.msk.f32.gmra.mxu0 %vm112_vm0, %v44_v4  ;;  %1266 = vmatpush.msrb.mxu1 %v4189_v36 }
  0x1a   :  { %1059 = vperm.xlu0 %4460, %v75_v50  }
  0x1c   :  { %4115 = vmatmul.msk.f32.gmra.mxu3 %vm112_vm0, %v65_v24 }
  0x1d   :  { %4095 = vmatmul.msk.f32.gmra.mxu0 %vm112_vm0, %v45_v5 }
  0x24   :  { %4116 = vmatmul.msk.f32.gmra.mxu3 %vm112_vm0, %v66_v31 }
  0x25   :  { %4096 = vmatmul.msk.f32.gmra.mxu0 %vm112_vm0, %v46_v6  ;;  %v76_v6 = vld [vmem:[%s7696_s2 + $0x10] sm:$0xff] }
  0x26   :  { %1064 = vperm.xlu1 %4461, %v76_v6   ;;  %v72_v6 = vld [vmem:[%s7695_s1 + $0xf0] sm:$0xff] }
  0x2c   :  { %4117 = vmatmul.msk.f32.gmra.mxu3 %vm112_vm0, %v67_v41 }
  0x2d   :  { %4097 = vmatmul.msk.f32.gmra.mxu0 %vm112_vm0, %v47_v7 }
  0x34   :  { %4118 = vmatmul.msk.f32.gmra.mxu3 %vm112_vm0, %v68_v53 }
  0x35   :  { %4098 = vmatmul.msk.f32.gmra.mxu0 %vm112_vm0, %v48_v8  ;;  %v69_v8 = vld [vmem:[%s7695_s1 + $0xd8] sm:$0xff] }
  0x3c   :  { %4119 = vmatmul.msk.f32.gmra.mxu3 %vm112_vm0, %v69_v8 }
  0x3d   :  { %4099 = vmatmul.msk.f32.gmra.mxu0 %vm112_vm0, %v49_v9 }
  0x45   :  { %4100 = vmatmul.msk.f32.gmra.mxu0 %vm112_vm0, %v50_v10 }
  0x4d   :  { %4101 = vmatmul.msk.f32.gmra.mxu0 %vm112_vm0, %v51_v11 }
  0x55   :  { %4102 = vmatmul.msk.f32.gmra.mxu0 %vm112_vm0, %v52_v12 }
  0x5d   :  { %4103 = vmatmul.msk.f32.gmra.mxu0 %vm112_vm0, %v5069_v13 }
  0x65   :  { %4104 = vmatmul.msk.f32.gmra.mxu0 %vm112_vm0, %v5076_v14 }
  0x6d   :  { %4105 = vmatmul.msk.f32.gmra.mxu0 %vm112_vm0, %v5083_v15 }
  0x75   :  { %4106 = vmatmul.msk.f32.gmra.mxu0 %vm112_vm0, %v5094_v17 }
  0x7d   :  { %4107 = vmatmul.msk.f32.gmra.mxu0 %vm112_vm0, %v57_v19  ;;  %v62_v19 = vld [vmem:[%s7695_s1 + $0xa0] sm:$0xff] }
  0x82   :  { %v226_v26 = vpop.f32.mrf.mxu0 }
  0x83   :  { %v227_v28 = vadd.f32 %v5118_v23, %v226_v26 }
  0x85   :  { %v354_v29 = vand.u32 2147483647, %v227_v28  ;;  %4108 = vmatmul.msk.f32.gmra.mxu0 %vm112_vm0, %v58_v27  ;;  %v322_v1 = vmax.f32 %v227_v28, 0.0 }
  0x87   :  { %v386_v30 = vsub.f32 0.0, %v354_v29 }
  0x89   :  { %v418_v32 = vmul.f32 1.442695, %v386_v30  ;;  %v77_v30 = vld [vmem:[%s7696_s2 + $0x18] sm:$0xff] }
  0x8a   :  { %v229_v33 = vpop.f32.mrf.mxu0  ;;  %1069 = vperm.xlu1 %4461, %v77_v30   ;;  %v73_v30 = vld [vmem:[%s7695_s1 + $0xf8] sm:$0xff] }
  0x8b   :  { %4475 = vpow2.f32 %v418_v32  ;;  %v5140_v35 = vadd.f32 %v5118_v23, %v229_v33  ;;  %v70_v33 = vld [vmem:[%s7695_s1 + $0xe0] sm:$0xff] }
  0x8c   :  { %4120 = vmatmul.msk.f32.gmra.mxu3 %vm112_vm0, %v70_v33 }
  0x8d   :  { %v355_v37 = vand.u32 2147483647, %v5140_v35  ;;  %4109 = vmatmul.msk.f32.gmra.mxu0 %vm112_vm0, %v59_v34  ;;  %v323_v26 = vmax.f32 %v5140_v35, 0.0 }
  0x8f   :  { %v387_v40 = vsub.f32 0.0, %v355_v37 }
  0x91   :  { %v4476_v42 = vpop.eup %4475  ;;  %v420_v43 = vmul.f32 1.442695, %v387_v40 }
  0x92   :  { %v232_v44 = vpop.f32.mrf.mxu0  ;;  %v482_v46 = vadd.f32 1.0, %v4476_v42  ;;  %v485_v48 = vmul.f32 -0.5, %v4476_v42  ;;  %v488_v54 = vand.u32 2147483647, %v4476_v42 }
  0x93   :  { %4477 = vpow2.f32 %v420_v43  ;;  %v5158_v47 = vadd.f32 %v5118_v23, %v232_v44 }
  0x94   :  { %4479 = vlog2.f32 %v482_v46  ;;  %v486_v52 = vadd.f32 1.0, %v485_v48  ;;  %vm489_vm1 = vcmp.lt.f32.partialorder %v488_v54, 0.0004427343 }
  0x95   :  { %v356_v49 = vand.u32 2147483647, %v5158_v47  ;;  %4110 = vmatmul.msk.f32.gmra.mxu0 %vm112_vm0, %v60_v45  ;;  %v324_v45 = vmax.f32 %v5158_v47, 0.0 }
  0x96   :  { %v487_v0 = vmul.f32 %v4476_v42, %v486_v52  ;;  %v71_v52 = vld [vmem:[%s7695_s1 + $0xe8] sm:$0xff] }
  0x97   :  { %v388_v51 = vsub.f32 0.0, %v356_v49  ;;  %4121 = vmatmul.msk.f32.gmra.mxu3 %vm112_vm0, %v71_v52 }
  0x99   :  { %v4478_v55 = vpop.eup %4477  ;;  %v422_v56 = vmul.f32 1.442695, %v388_v51 }
  0x9a   :  { %v4480_v57 = vpop.eup %4479  ;;  %v235_v58 = vpop.f32.mrf.mxu0  ;;  %v491_v60 = vadd.f32 1.0, %v4478_v55  ;;  %v494_v61 = vmul.f32 -0.5, %v4478_v55  ;;  %v497_v10 = vand.u32 2147483647, %v4478_v55 }
  0x9b   :  { %4481 = vpow2.f32 %v422_v56  ;;  %v5173_v62 = vadd.f32 %v5118_v23, %v235_v58  ;;  %v484_v63 = vmul.f32 0.6931472, %v4480_v57 }
  0x9c   :  { %4483 = vlog2.f32 %v491_v60  ;;  %v495_v5 = vadd.f32 1.0, %v494_v61  ;;  %vm498_vm3 = vcmp.lt.f32.partialorder %v497_v10, 0.0004427343 }
  0x9d   :  { %v357_v2 = vand.u32 2147483647, %v5173_v62  ;;  %4111 = vmatmul.msk.f32.gmra.mxu0 %vm112_vm0, %v61_v59  ;;  %v490_v3 = vsel %vm489_vm1, %v487_v0, %v484_v63  ;;  %v325_v0 = vmax.f32 %v5173_v62, 0.0 }
  0x9e   :  { %v770_v4 = vadd.f32 %v490_v3, %v322_v1  ;;  %v496_v20 = vmul.f32 %v4478_v55, %v495_v5 }
  0x9f   :  { %v389_v7 = vsub.f32 0.0, %v357_v2  ;;  %4122 = vmatmul.msk.f32.gmra.mxu3 %vm112_vm0, %v72_v6 }
  0xa0   :  { %v4124_v9 = vadd.f32 -0.6931472, %v770_v4 }
  0xa1   :  { %v4482_v11 = vpop.eup %4481  ;;  %v424_v12 = vmul.f32 1.442695, %v389_v7 }
  0xa2   :  { %v4484_v16 = vpop.eup %4483  ;;  %v238_v18 = vpop.f32.mrf.mxu0  ;;  %4156 = vmatmul.msk.f32.vlgmr.msra.gmra.mxu1 %vm842_vm2, %v4124_v9  ;;  %v500_v21 = vadd.f32 1.0, %v4482_v11  ;;  %v503_v25 = vmul.f32 -0.5, %v4482_v11  ;;  %v506_v35 = vand.u32 2147483647, %v4482_v11 }
  0xa3   :  { %4485 = vpow2.f32 %v424_v12  ;;  %v5189_v22 = vadd.f32 %v5118_v23, %v238_v18  ;;  %v493_v24 = vmul.f32 0.6931472, %v4484_v16 }
  0xa4   :  { %4487 = vlog2.f32 %v500_v21  ;;  %v504_v32 = vadd.f32 1.0, %v503_v25  ;;  %vm507_vm4 = vcmp.lt.f32.partialorder %v506_v35, 0.0004427343 }
  0xa5   :  { %v358_v27 = vand.u32 2147483647, %v5189_v22  ;;  %4112 = vmatmul.msk.f32.gmra.mxu0 %vm112_vm0, %v62_v19  ;;  %v499_v28 = vsel %vm498_vm3, %v496_v20, %v493_v24  ;;  %v326_v21 = vmax.f32 %v5189_v22, 0.0 }
  0xa6   :  { %v771_v29 = vadd.f32 %v499_v28, %v323_v26  ;;  %v505_v44 = vmul.f32 %v4482_v11, %v504_v32  ;;  %v80_v28 = vld [vmem:[%s7696_s2 + $0x30] sm:$0xff] }
  0xa7   :  { %v390_v31 = vsub.f32 0.0, %v358_v27  ;;  %1084 = vperm.xlu0 %4460, %v80_v28   ;;  %4123 = vmatmul.msk.f32.gmra.mxu3 %vm112_vm0, %v73_v30 }
  0xa8   :  { %v4125_v34 = vadd.f32 -0.6931472, %v771_v29 }
  0xa9   :  { %v4486_v36 = vpop.eup %4485  ;;  %v426_v37 = vmul.f32 1.442695, %v390_v31 }
  0xaa   :  { %v4488_v38 = vpop.eup %4487  ;;  %v241_v39 = vpop.f32.mrf.mxu0  ;;  %4157 = vmatmul.msk.f32.gmra.mxu1 %vm842_vm2, %v4125_v34  ;;  %v509_v40 = vadd.f32 1.0, %v4486_v36  ;;  %v512_v41 = vmul.f32 -0.5, %v4486_v36  ;;  %v515_v54 = vand.u32 2147483647, %v4486_v36 }
  0xab   :  { %4489 = vpow2.f32 %v426_v37  ;;  %v5203_v42 = vadd.f32 %v5118_v23, %v241_v39  ;;  %v502_v43 = vmul.f32 0.6931472, %v4488_v38 }
  0xac   :  { %4491 = vlog2.f32 %v509_v40  ;;  %v513_v50 = vadd.f32 1.0, %v512_v41  ;;  %vm516_vm5 = vcmp.lt.f32.partialorder %v515_v54, 0.0004427343 }
  0xad   :  { %v359_v46 = vand.u32 2147483647, %v5203_v42  ;;  %v508_v48 = vsel %vm507_vm4, %v505_v44, %v502_v43  ;;  %v327_v41 = vmax.f32 %v5203_v42, 0.0 }
  0xae   :  { %v772_v49 = vadd.f32 %v508_v48, %v324_v45  ;;  %v514_v58 = vmul.f32 %v4486_v36, %v513_v50  ;;  %v81_v48 = vld [vmem:[%s7696_s2 + $0x38] sm:$0xff] }
  0xaf   :  { %v391_v51 = vsub.f32 0.0, %v359_v46  ;;  %v78_v46 = vld [vmem:[%s7696_s2 + $0x20] sm:$0xff]  ;;  %1089 = vperm.xlu1 %4461, %v81_v48  }
  0xb0   :  { %v4126_v53 = vadd.f32 -0.6931472, %v772_v49  ;;  %1074 = vperm.xlu2 %4462, %v78_v46  }
  0xb1   :  { %v4490_v55 = vpop.eup %4489  ;;  %v428_v56 = vmul.f32 1.442695, %v391_v51 }
  0xb2   :  { %v4492_v57 = vpop.eup %4491  ;;  %v244_v47 = vpop.f32.mrf.mxu0  ;;  %4158 = vmatmul.msk.f32.gmra.mxu1 %vm842_vm2, %v4126_v53  ;;  %v518_v59 = vadd.f32 1.0, %v4490_v55  ;;  %v521_v63 = vmul.f32 -0.5, %v4490_v55  ;;  %v524_v8 = vand.u32 2147483647, %v4490_v55 }
  0xb3   :  { %4493 = vpow2.f32 %v428_v56  ;;  %v5213_v60 = vadd.f32 %v5118_v23, %v244_v47  ;;  %v511_v61 = vmul.f32 0.6931472, %v4492_v57 }
  0xb4   :  { %4495 = vlog2.f32 %v518_v59  ;;  %v522_v5 = vadd.f32 1.0, %v521_v63  ;;  %vm525_vm6 = vcmp.lt.f32.partialorder %v524_v8, 0.0004427343 }
  0xb5   :  { %v360_v1 = vand.u32 2147483647, %v5213_v60  ;;  %v517_v2 = vsel %vm516_vm5, %v514_v58, %v511_v61  ;;  %v328_v61 = vmax.f32 %v5213_v60, 0.0 }
  0xb6   :  { %v773_v3 = vadd.f32 %v517_v2, %v325_v0  ;;  %v523_v20 = vmul.f32 %v4490_v55, %v522_v5 }
  0xb7   :  { %v392_v4 = vsub.f32 0.0, %v360_v1 }
  0xb8   :  { %v4127_v7 = vadd.f32 -0.6931472, %v773_v3  ;;  %v79_v3 = vld [vmem:[%s7696_s2 + $0x28] sm:$0xff] }
  0xb9   :  { %v4494_v9 = vpop.eup %4493  ;;  %v430_v10 = vmul.f32 1.442695, %v392_v4  ;;  %1079 = vperm.xlu2 %4462, %v79_v3  }
  0xba   :  { %v4496_v11 = vpop.eup %4495  ;;  %v247_v62 = vpop.f32.mrf.mxu0  ;;  %4159 = vmatmul.msk.f32.gmra.mxu1 %vm842_vm2, %v4127_v7  ;;  %v527_v12 = vadd.f32 1.0, %v4494_v9  ;;  %v530_v16 = vmul.f32 -0.5, %v4494_v9  ;;  %v533_v32 = vand.u32 2147483647, %v4494_v9 }
  0xbb   :  { %4497 = vpow2.f32 %v430_v10  ;;  %v5223_v18 = vadd.f32 %v5118_v23, %v247_v62  ;;  %v520_v19 = vmul.f32 0.6931472, %v4496_v11 }
  0xbc   :  { %4499 = vlog2.f32 %v527_v12  ;;  %v531_v27 = vadd.f32 1.0, %v530_v16  ;;  %vm534_vm7 = vcmp.lt.f32.partialorder %v533_v32, 0.0004427343 }
  0xbd   :  { %v361_v24 = vand.u32 2147483647, %v5223_v18  ;;  %v526_v25 = vsel %vm525_vm6, %v523_v20, %v520_v19  ;;  %v329_v19 = vmax.f32 %v5223_v18, 0.0 }
  0xbe   :  { %v774_v26 = vadd.f32 %v526_v25, %v326_v21  ;;  %v532_v36 = vmul.f32 %v4494_v9, %v531_v27  ;;  %v83_v25 = vld [vmem:[%s7696_s2 + $0x48] sm:$0xff] }
  0xbf   :  { %v393_v29 = vsub.f32 0.0, %v361_v24  ;;  %1099 = vperm.xlu0 %4460, %v83_v25  }
  0xc0   :  { %v4128_v31 = vadd.f32 -0.6931472, %v774_v26 }
  0xc1   :  { %v4498_v22 = vpop.eup %4497  ;;  %v432_v33 = vmul.f32 1.442695, %v393_v29 }
  0xc2   :  { %v4500_v34 = vpop.eup %4499  ;;  %v250_v35 = vpop.f32.mrf.mxu0  ;;  %4160 = vmatmul.msk.f32.gmra.mxu1 %vm842_vm2, %v4128_v31  ;;  %v536_v37 = vadd.f32 1.0, %v4498_v22  ;;  %v539_v40 = vmul.f32 -0.5, %v4498_v22  ;;  %v542_v42 = vand.u32 2147483647, %v4498_v22 }
  0xc3   :  { %4501 = vpow2.f32 %v432_v33  ;;  %v5236_v38 = vadd.f32 %v5118_v23, %v250_v35  ;;  %v529_v39 = vmul.f32 0.6931472, %v4500_v34 }
  0xc4   :  { %4503 = vlog2.f32 %v536_v37  ;;  %v540_v50 = vadd.f32 1.0, %v539_v40  ;;  %vm543_vm8 = vcmp.lt.f32.partialorder %v542_v42, 0.0004427343 }
  0xc5   :  { %v362_v43 = vand.u32 2147483647, %v5236_v38  ;;  %v535_v44 = vsel %vm534_vm7, %v532_v36, %v529_v39  ;;  %v330_v37 = vmax.f32 %v5236_v38, 0.0 }
  0xc6   :  { %v775_v45 = vadd.f32 %v535_v44, %v327_v41  ;;  %v541_v59 = vmul.f32 %v4498_v22, %v540_v50  ;;  %v84_v44 = vld [vmem:[%s7696_s2 + $0x50] sm:$0xff] }
  0xc7   :  { %v394_v49 = vsub.f32 0.0, %v362_v43  ;;  %1104 = vperm.xlu1 %4461, %v84_v44  }
  0xc8   :  { %v4129_v51 = vadd.f32 -0.6931472, %v775_v45 }
  0xc9   :  { %v4502_v52 = vpop.eup %4501  ;;  %v434_v53 = vmul.f32 1.442695, %v394_v49 }
  0xca   :  { %v4504_v54 = vpop.eup %4503  ;;  %v253_v55 = vpop.f32.mrf.mxu0  ;;  %4161 = vmatmul.msk.f32.gmra.mxu1 %vm842_vm2, %v4129_v51  ;;  %v545_v56 = vadd.f32 1.0, %v4502_v52  ;;  %v548_v57 = vmul.f32 -0.5, %v4502_v52  ;;  %v551_v6 = vand.u32 2147483647, %v4502_v52 }
  0xcb   :  { %4505 = vpow2.f32 %v434_v53  ;;  %v5248_v47 = vadd.f32 %v5118_v23, %v253_v55  ;;  %v538_v58 = vmul.f32 0.6931472, %v4504_v54 }
  0xcc   :  { %4507 = vlog2.f32 %v545_v56  ;;  %v549_v2 = vadd.f32 1.0, %v548_v57  ;;  %vm552_vm9 = vcmp.lt.f32.partialorder %v551_v6, 0.0004427343 }
  0xcd   :  { %v363_v63 = vand.u32 2147483647, %v5248_v47  ;;  %v544_v0 = vsel %vm543_vm8, %v541_v59, %v538_v58  ;;  %v331_v56 = vmax.f32 %v5248_v47, 0.0 }
  0xce   :  { %v776_v1 = vadd.f32 %v544_v0, %v328_v61  ;;  %v550_v60 = vmul.f32 %v4502_v52, %v549_v2  ;;  %v82_v61 = vld [vmem:[%s7696_s2 + $0x40] sm:$0xff] }
  0xcf   :  { %v395_v4 = vsub.f32 0.0, %v363_v63  ;;  %1094 = vperm.xlu2 %4462, %v82_v61  }
  0xd0   :  { %v4130_v5 = vadd.f32 -0.6931472, %v776_v1 }
  0xd1   :  { %v4506_v7 = vpop.eup %4505  ;;  %v436_v8 = vmul.f32 1.442695, %v395_v4 }
  0xd2   :  { %v4508_v9 = vpop.eup %4507  ;;  %v256_v10 = vpop.f32.mrf.mxu0  ;;  %4162 = vmatmul.msk.f32.gmra.mxu1 %vm842_vm2, %v4130_v5  ;;  %v554_v11 = vadd.f32 1.0, %v4506_v7  ;;  %v557_v16 = vmul.f32 -0.5, %v4506_v7  ;;  %v560_v29 = vand.u32 2147483647, %v4506_v7 }
  0xd3   :  { %4509 = vpow2.f32 %v436_v8  ;;  %v5257_v62 = vadd.f32 %v5118_v23, %v256_v10  ;;  %v547_v12 = vmul.f32 0.6931472, %v4508_v9 }
  0xd4   :  { %4511 = vlog2.f32 %v554_v11  ;;  %v558_v27 = vadd.f32 1.0, %v557_v16  ;;  %vm561_vm10 = vcmp.lt.f32.partialorder %v560_v29, 0.0004427343 }
  0xd5   :  { %v364_v20 = vand.u32 2147483647, %v5257_v62  ;;  %v553_v21 = vsel %vm552_vm9, %v550_v60, %v547_v12  ;;  %v332_v60 = vmax.f32 %v5257_v62, 0.0 }
  0xd6   :  { %v777_v24 = vadd.f32 %v553_v21, %v329_v19  ;;  %v559_v36 = vmul.f32 %v4506_v7, %v558_v27 }
  0xd7   :  { %v396_v26 = vsub.f32 0.0, %v364_v20  ;;  %v86_v20 = vld [vmem:[%s7696_s2 + $0x60] sm:$0xff] }
  0xd8   :  { %v4131_v28 = vadd.f32 -0.6931472, %v777_v24  ;;  %1114 = vperm.xlu0 %4460, %v86_v20  }
  0xd9   :  { %v4510_v30 = vpop.eup %4509  ;;  %v438_v31 = vmul.f32 1.442695, %v396_v26 }
  0xda   :  { %v4512_v32 = vpop.eup %4511  ;;  %v259_v22 = vpop.f32.mrf.mxu0  ;;  %4163 = vmatmul.msk.f32.gmra.mxu1 %vm842_vm2, %v4131_v28  ;;  %v563_v18 = vadd.f32 1.0, %v4510_v30  ;;  %v566_v33 = vmul.f32 -0.5, %v4510_v30  ;;  %v569_v48 = vand.u32 2147483647, %v4510_v30 }
  0xdb   :  { %4513 = vpow2.f32 %v438_v31  ;;  %v5266_v34 = vadd.f32 %v5118_v23, %v259_v22  ;;  %v556_v35 = vmul.f32 0.6931472, %v4512_v32 }
  0xdc   :  { %4515 = vlog2.f32 %v563_v18  ;;  %v567_v43 = vadd.f32 1.0, %v566_v33  ;;  %vm570_vm11 = vcmp.lt.f32.partialorder %v569_v48, 0.0004427343 }
  0xdd   :  { %v365_v39 = vand.u32 2147483647, %v5266_v34  ;;  %v562_v40 = vsel %vm561_vm10, %v559_v36, %v556_v35  ;;  %v333_v18 = vmax.f32 %v5266_v34, 0.0 }
  0xde   :  { %v778_v41 = vadd.f32 %v562_v40, %v330_v37  ;;  %v568_v38 = vmul.f32 %v4510_v30, %v567_v43  ;;  %v87_v37 = vld [vmem:[%s7696_s2 + $0x68] sm:$0xff] }
  0xdf   :  { %v397_v45 = vsub.f32 0.0, %v365_v39  ;;  %1119 = vperm.xlu1 %4461, %v87_v37  }
  0xe0   :  { %v4132_v46 = vadd.f32 -0.6931472, %v778_v41 }
  0xe1   :  { %v4514_v49 = vpop.eup %4513  ;;  %v440_v50 = vmul.f32 1.442695, %v397_v45 }
  0xe2   :  { %v4516_v51 = vpop.eup %4515  ;;  %v262_v42 = vpop.f32.mrf.mxu0  ;;  %4164 = vmatmul.msk.f32.gmra.mxu1 %vm842_vm2, %v4132_v46  ;;  %v572_v52 = vadd.f32 1.0, %v4514_v49  ;;  %v575_v55 = vmul.f32 -0.5, %v4514_v49  ;;  %v578_v2 = vand.u32 2147483647, %v4514_v49 }
  0xe3   :  { %4517 = vpow2.f32 %v440_v50  ;;  %v5275_v53 = vadd.f32 %v5118_v23, %v262_v42  ;;  %v565_v54 = vmul.f32 0.6931472, %v4516_v51 }
  0xe4   :  { %4519 = vlog2.f32 %v572_v52  ;;  %v576_v0 = vadd.f32 1.0, %v575_v55  ;;  %vm579_vm12 = vcmp.lt.f32.partialorder %v578_v2, 0.0004427343 }
  0xe5   :  { %v366_v57 = vand.u32 2147483647, %v5275_v53  ;;  %v571_v58 = vsel %vm570_vm11, %v568_v38, %v565_v54  ;;  %v334_v38 = vmax.f32 %v5275_v53, 0.0 }
  0xe6   :  { %v779_v59 = vadd.f32 %v571_v58, %v331_v56  ;;  %v577_v10 = vmul.f32 %v4514_v49, %v576_v0 }
  0xe7   :  { %v398_v63 = vsub.f32 0.0, %v366_v57  ;;  %v85_v57 = vld [vmem:[%s7696_s2 + $0x58] sm:$0xff] }
  0xe8   :  { %v4133_v1 = vadd.f32 -0.6931472, %v779_v59  ;;  %1109 = vperm.xlu2 %4462, %v85_v57  }
  0xe9   :  { %v4518_v3 = vpop.eup %4517  ;;  %v442_v4 = vmul.f32 1.442695, %v398_v63 }
  0xea   :  { %v4520_v5 = vpop.eup %4519  ;;  %v265_v6 = vpop.f32.mrf.mxu0  ;;  %4165 = vmatmul.msk.f32.gmra.mxu1 %vm842_vm2, %v4133_v1  ;;  %v581_v47 = vadd.f32 1.0, %v4518_v3  ;;  %v584_v7 = vmul.f32 -0.5, %v4518_v3  ;;  %v587_v25 = vand.u32 2147483647, %v4518_v3 }
  0xeb   :  { %4521 = vpow2.f32 %v442_v4  ;;  %v5284_v8 = vadd.f32 %v5118_v23, %v265_v6  ;;  %v574_v9 = vmul.f32 0.6931472, %v4520_v5  ;;  %v5309_v1 = vpop.f32.mrf.mxu3 }
  0xec   :  { %4523 = vlog2.f32 %v581_v47  ;;  %v585_v19 = vadd.f32 1.0, %v584_v7  ;;  %vm588_vm13 = vcmp.lt.f32.partialorder %v587_v25, 0.0004427343 }
  0xed   :  { %v367_v11 = vand.u32 2147483647, %v5284_v8  ;;  %v580_v12 = vsel %vm579_vm12, %v577_v10, %v574_v9  ;;  %v335_v7 = vmax.f32 %v5284_v8, 0.0 }
  0xee   :  { %v780_v16 = vadd.f32 %v580_v12, %v332_v60  ;;  %v586_v62 = vmul.f32 %v4518_v3, %v585_v19 }
  0xef   :  { %v399_v21 = vsub.f32 0.0, %v367_v11  ;;  %v89_v11 = vld [vmem:[%s7696_s2 + $0x78] sm:$0xff] }
  0xf0   :  { %v4134_v24 = vadd.f32 -0.6931472, %v780_v16  ;;  %1129 = vperm.xlu0 %4460, %v89_v11  }
  0xf1   :  { %v4522_v26 = vpop.eup %4521  ;;  %v444_v27 = vmul.f32 1.442695, %v399_v21 }
  0xf2   :  { %v4524_v28 = vpop.eup %4523  ;;  %v268_v29 = vpop.f32.mrf.mxu0  ;;  %4166 = vmatmul.msk.f32.gmra.mxu1 %vm842_vm2, %v4134_v24  ;;  %v590_v30 = vadd.f32 1.0, %v4522_v26  ;;  %v593_v22 = vmul.f32 -0.5, %v4522_v26  ;;  %v596_v43 = vand.u32 2147483647, %v4522_v26 }
  0xf3   :  { %4525 = vpow2.f32 %v444_v27  ;;  %v5293_v31 = vadd.f32 %v5118_v23, %v268_v29  ;;  %v583_v32 = vmul.f32 0.6931472, %v4524_v28 }
  0xf4   :  { %4527 = vlog2.f32 %v590_v30  ;;  %v594_v40 = vadd.f32 1.0, %v593_v22  ;;  %vm597_vm14 = vcmp.lt.f32.partialorder %v596_v43, 0.0004427343  ;;  %v5324_v30 = vpop.f32.mrf.mxu3  ;;  %v90_v22 = vld [vmem:[%s7696_s2 + $0x80] sm:$0xff] }
  0xf5   :  { %v368_v33 = vand.u32 2147483647, %v5293_v31  ;;  %v589_v35 = vsel %vm588_vm13, %v586_v62, %v583_v32  ;;  %v4188_v32 = vld [vmem:[%s7697_s3 + $0x10] sm:$0xff]  ;;  %1134 = vperm.xlu1 %4461, %v90_v22  }
  0xf6   :  { %v781_v36 = vadd.f32 %v589_v35, %v333_v18  ;;  %v595_v42 = vmul.f32 %v4522_v26, %v594_v40  ;;  %v336_v18 = vmax.f32 %v5293_v31, 0.0  ;;  %1267 = vmatpush.msrb.mxu1 %v4188_v32  ;;  %4451 = vmatpush.msra.mxu2 %v4188_v32 }
  0xf7   :  { %v400_v39 = vsub.f32 0.0, %v368_v33  ;;  %4202 = vmatmul.msk.f32.vlgmr.msra.gmra.mxu2 %vm112_vm0, %v5069_v13  ;;  %v88_v13 = vld [vmem:[%s7696_s2 + $0x70] sm:$0xff] }
  0xf8   :  { %v4135_v41 = vadd.f32 -0.6931472, %v781_v36  ;;  %1124 = vperm.xlu2 %4462, %v88_v13  }
  0xf9   :  { %v4526_v44 = vpop.eup %4525  ;;  %v446_v45 = vmul.f32 1.442695, %v400_v39 }
  0xfa   :  { %v4528_v46 = vpop.eup %4527  ;;  %v271_v48 = vpop.f32.mrf.mxu0  ;;  %4167 = vmatmul.msk.f32.gmra.mxu1 %vm842_vm2, %v4135_v41  ;;  %v599_v34 = vadd.f32 1.0, %v4526_v44  ;;  %v602_v49 = vmul.f32 -0.5, %v4526_v44  ;;  %v605_v61 = vand.u32 2147483647, %v4526_v44 }
  0xfb   :  { %4529 = vpow2.f32 %v446_v45  ;;  %v5302_v50 = vadd.f32 %v5118_v23, %v271_v48  ;;  %v592_v51 = vmul.f32 0.6931472, %v4528_v46 }
  0xfc   :  { %4531 = vlog2.f32 %v599_v34  ;;  %v603_v56 = vadd.f32 1.0, %v602_v49  ;;  %vm606_vm15 = vcmp.lt.f32.partialorder %v605_v61, 0.0004427343 }
  0xfd   :  { %v369_v52 = vand.u32 2147483647, %v5302_v50  ;;  %v598_v54 = vsel %vm597_vm14, %v595_v42, %v592_v51  ;;  %v337_v42 = vmax.f32 %v5302_v50, 0.0 }
  0xfe   :  { %v782_v55 = vadd.f32 %v598_v54, %v334_v38  ;;  %v604_v3 = vmul.f32 %v4526_v44, %v603_v56 }
  0xff   :  { %v401_v58 = vsub.f32 0.0, %v369_v52  ;;  %v5347_v52 = vadd.f32 %v5118_v23, %v5309_v1  ;;  %4203 = vmatmul.msk.f32.gmra.mxu2 %vm112_vm0, %v5076_v14 }
 0x100   :  { %v4136_v59 = vadd.f32 -0.6931472, %v782_v55  ;;  %v295_v55 = vpop.f32.mrf.mxu3 }
 0x101   :  { %v4530_v63 = vpop.eup %4529  ;;  %v448_v0 = vmul.f32 1.442695, %v401_v58 }
 0x102   :  { %v4532_v53 = vpop.eup %4531  ;;  %v274_v2 = vpop.f32.mrf.mxu0  ;;  %4168 = vmatmul.msk.f32.gmra.mxu1 %vm842_vm2, %v4136_v59  ;;  %v608_v4 = vadd.f32 1.0, %v4530_v63  ;;  %v611_v47 = vmul.f32 -0.5, %v4530_v63  ;;  %v614_v20 = vand.u32 2147483647, %v4530_v63 }
 0x103   :  { %4533 = vpow2.f32 %v448_v0  ;;  %v5313_v5 = vadd.f32 %v5118_v23, %v274_v2  ;;  %v601_v6 = vmul.f32 0.6931472, %v4532_v53  ;;  %v375_v0 = vand.u32 2147483647, %v5347_v52 }
 0x104   :  { %4535 = vlog2.f32 %v608_v4  ;;  %v612_v16 = vadd.f32 1.0, %v611_v47  ;;  %vm615_vm1 = vcmp.lt.f32.partialorder %v614_v20, 0.0004427343 }
 0x105   :  { %v370_v9 = vand.u32 2147483647, %v5313_v5  ;;  %v607_v10 = vsel %vm606_vm15, %v604_v3, %v601_v6  ;;  %v338_v47 = vmax.f32 %v5313_v5, 0.0  ;;  %v5369_v5 = vadd.f32 %v5118_v23, %v5324_v30 }
 0x106   :  { %v783_v60 = vadd.f32 %v607_v10, %v335_v7  ;;  %v613_v62 = vmul.f32 %v4530_v63, %v612_v16  ;;  %v407_v7 = vsub.f32 0.0, %v375_v0 }
 0x107   :  { %v402_v12 = vsub.f32 0.0, %v370_v9  ;;  %4204 = vmatmul.msk.f32.gmra.mxu2 %vm112_vm0, %v5083_v15 }
 0x108   :  { %v4137_v19 = vadd.f32 -0.6931472, %v783_v60  ;;  %v5365_v20 = vpop.f32.mrf.mxu3 }
 0x109   :  { %v4534_v21 = vpop.eup %4533  ;;  %v450_v24 = vmul.f32 1.442695, %v402_v12  ;;  %v92_v12 = vld [vmem:[%s7696_s2 + $0x90] sm:$0xff] }
 0x10a   :  { %v4536_v25 = vpop.eup %4535  ;;  %v277_v26 = vpop.f32.mrf.mxu0  ;;  %4169 = vmatmul.msk.f32.gmra.mxu1 %vm842_vm2, %v4137_v19  ;;  %v617_v8 = vadd.f32 1.0, %v4534_v21  ;;  %v620_v27 = vmul.f32 -0.5, %v4534_v21  ;;  %v623_v41 = vand.u32 2147483647, %v4534_v21  ;;  %1144 = vperm.xlu0 %4460, %v92_v12  }
 0x10b   :  { %4537 = vpow2.f32 %v450_v24  ;;  %v5322_v28 = vadd.f32 %v5118_v23, %v277_v26  ;;  %v610_v29 = vmul.f32 0.6931472, %v4536_v25  ;;  %v460_v26 = vmul.f32 1.442695, %v407_v7 }
 0x10c   :  { %4539 = vlog2.f32 %v617_v8  ;;  %v621_v37 = vadd.f32 1.0, %v620_v27  ;;  %vm624_vm3 = vcmp.lt.f32.partialorder %v623_v41, 0.0004427343 }
 0x10d   :  { %v371_v33 = vand.u32 2147483647, %v5322_v28  ;;  %v616_v35 = vsel %vm615_vm1, %v613_v62, %v610_v29  ;;  %v339_v30 = vmax.f32 %v5322_v28, 0.0 }
 0x10e   :  { %v784_v36 = vadd.f32 %v616_v35, %v336_v18  ;;  %v622_v46 = vmul.f32 %v4534_v21, %v621_v37  ;;  %v5379_v37 = vadd.f32 %v5118_v23, %v295_v55 }
 0x10f   :  { %v403_v39 = vsub.f32 0.0, %v371_v33  ;;  %v376_v33 = vand.u32 2147483647, %v5369_v5  ;;  %4205 = vmatmul.msk.f32.gmra.mxu2 %vm112_vm0, %v5094_v17 }
 0x110   :  { %v4138_v40 = vadd.f32 -0.6931472, %v784_v36 }
 0x111   :  { %v4538_v43 = vpop.eup %4537  ;;  %v452_v44 = vmul.f32 1.442695, %v403_v39  ;;  %v408_v28 = vsub.f32 0.0, %v376_v33 }
 0x112   :  { %v4540_v45 = vpop.eup %4539  ;;  %v280_v31 = vpop.f32.mrf.mxu0  ;;  %4170 = vmatmul.msk.f32.gmra.mxu1 %vm842_vm2, %v4138_v40  ;;  %v626_v48 = vadd.f32 1.0, %v4538_v43  ;;  %v629_v51 = vmul.f32 -0.5, %v4538_v43  ;;  %v632_v59 = vand.u32 2147483647, %v4538_v43 }
 0x113   :  { %4541 = vpow2.f32 %v452_v44  ;;  %v5338_v34 = vadd.f32 %v5118_v23, %v280_v31  ;;  %v619_v49 = vmul.f32 0.6931472, %v4540_v45  ;;  %v93_v31 = vld [vmem:[%s7696_s2 + $0x98] sm:$0xff] }
 0x114   :  { %4543 = vlog2.f32 %v626_v48  ;;  %v630_v57 = vadd.f32 1.0, %v629_v51  ;;  %vm633_vm4 = vcmp.lt.f32.partialorder %v632_v59, 0.0004427343  ;;  %1149 = vperm.xlu1 %4461, %v93_v31   ;;  %v377_v51 = vand.u32 2147483647, %v5379_v37 }
 0x115   :  { %v372_v38 = vand.u32 2147483647, %v5338_v34  ;;  %v625_v54 = vsel %vm624_vm3, %v622_v46, %v619_v49  ;;  %v301_v49 = vpop.f32.mrf.mxu3  ;;  %v340_v55 = vmax.f32 %v5338_v34, 0.0 }
 0x116   :  { %v785_v56 = vadd.f32 %v625_v54, %v337_v42  ;;  %v631_v14 = vmul.f32 %v4538_v43, %v630_v57  ;;  %v409_v34 = vsub.f32 0.0, %v377_v51  ;;  %v96_v51 = vld [vmem:[%s7696_s2 + $0xb0] sm:$0xff] }
 0x117   :  { %v404_v50 = vsub.f32 0.0, %v372_v38 }
 0x118   :  { %v4139_v58 = vadd.f32 -0.6931472, %v785_v56  ;;  %v462_v56 = vmul.f32 1.442695, %v408_v28 }
 0x119   :  { %v4542_v61 = vpop.eup %4541  ;;  %v454_v63 = vmul.f32 1.442695, %v404_v50  ;;  %v91_v50 = vld [vmem:[%s7696_s2 + $0x88] sm:$0xff] }
 0x11a   :  { %v4544_v53 = vpop.eup %4543  ;;  %v283_v2 = vpop.f32.mrf.mxu0  ;;  %4171 = vmatmul.msk.f32.gmra.mxu1 %vm842_vm2, %v4139_v58  ;;  %v635_v1 = vadd.f32 1.0, %v4542_v61  ;;  %v638_v3 = vmul.f32 -0.5, %v4542_v61  ;;  %v641_v24 = vand.u32 2147483647, %v4542_v61  ;;  %1139 = vperm.xlu2 %4462, %v91_v50  }
 0x11b   :  { %4545 = vpow2.f32 %v454_v63  ;;  %v5354_v4 = vadd.f32 %v5118_v23, %v283_v2  ;;  %v628_v6 = vmul.f32 0.6931472, %v4544_v53  ;;  %v5409_v53 = vld [vmem:[%s7698_s4] ss:$0 sm:$0xff] }
 0x11c   :  { %4547 = vlog2.f32 %v635_v1  ;;  %v639_v11 = vadd.f32 1.0, %v638_v3  ;;  %vm642_vm5 = vcmp.lt.f32.partialorder %v641_v24, 0.0004427343  ;;  %v5413_v2 = vadd.f32 %v5409_v53, %v5365_v20  ;;  %1164 = vperm.xlu1 %4461, %v96_v51  }
 0x11d   :  { %v373_v9 = vand.u32 2147483647, %v5354_v4  ;;  %v634_v10 = vsel %vm633_vm4, %v631_v14, %v628_v6 }
 0x11e   :  { %v786_v60 = vadd.f32 %v634_v10, %v338_v47  ;;  %v640_v15 = vmul.f32 %v4542_v61, %v639_v11  ;;  %v5400_v61 = vld [vmem:[%s7695_s1 + $0x78] sm:$0xff]  ;;  %v464_v47 = vmul.f32 1.442695, %v409_v34  ;;  %v304_v10 = vpop.f32.mrf.mxu3  ;;  %v341_v11 = vmax.f32 %v5354_v4, 0.0 }
 0x11f   :  { %v405_v16 = vsub.f32 0.0, %v373_v9  ;;  %v5363_v19 = vpop.f32.mrf.mxu1  ;;  %4206 = vmatmul.msk.f32.gmra.mxu2 %vm112_vm0, %v5400_v61  ;;  %v378_v12 = vand.u32 2147483647, %v5413_v2 }
 0x120   :  { %v4140_v21 = vadd.f32 -0.6931472, %v786_v60 }
 0x121   :  { %v4546_v25 = vpop.eup %4545  ;;  %v456_v8 = vmul.f32 1.442695, %v405_v16 }
 0x122   :  { %v4548_v27 = vpop.eup %4547  ;;  %v286_v29 = vpop.f32.mrf.mxu0  ;;  %4172 = vmatmul.msk.f32.gmra.mxu1 %vm842_vm2, %v4140_v21  ;;  %v644_v62 = vadd.f32 1.0, %v4546_v25  ;;  %v647_v18 = vmul.f32 -0.5, %v4546_v25  ;;  %v650_v45 = vand.u32 2147483647, %v4546_v25 }
 0x123   :  { %4549 = vpow2.f32 %v456_v8  ;;  %v5373_v32 = vadd.f32 %v5118_v23, %v286_v29  ;;  %v637_v22 = vmul.f32 0.6931472, %v4548_v27  ;;  %v5427_v8 = vld [vmem:[%s7695_s1 + $0x80] sm:$0xff]  ;;  %v410_v29 = vsub.f32 0.0, %v378_v12 }
 0x124   :  { %4551 = vlog2.f32 %v644_v62  ;;  %v648_v43 = vadd.f32 1.0, %v647_v18  ;;  %vm651_vm6 = vcmp.lt.f32.partialorder %v650_v45, 0.0004427343 }
 0x125   :  { %4553 = vpow2.f32 %v460_v26  ;;  %v374_v35 = vand.u32 2147483647, %v5373_v32  ;;  %v643_v36 = vsel %vm642_vm5, %v640_v15, %v637_v22  ;;  %v95_v26 = vld [vmem:[%s7696_s2 + $0xa8] sm:$0xff]  ;;  %v5434_v15 = vadd.f32 %v5409_v53, %v301_v49 }
 0x126   :  { %v787_v39 = vadd.f32 %v643_v36, %v339_v30  ;;  %v649_v38 = vmul.f32 %v4546_v25, %v648_v43  ;;  %1159 = vperm.xlu0 %4460, %v95_v26   ;;  %v342_v45 = vmax.f32 %v5373_v32, 0.0  ;;  %v307_v31 = vpop.f32.mrf.mxu3 }
 0x127   :  { %v406_v40 = vsub.f32 0.0, %v374_v35  ;;  %v5383_v41 = vpop.f32.mrf.mxu1  ;;  %4207 = vmatmul.msk.f32.gmra.mxu2 %vm112_vm0, %v5427_v8 }
 0x128   :  { %v4141_v44 = vadd.f32 -0.6931472, %v787_v39  ;;  %v466_v39 = vmul.f32 1.442695, %v410_v29 }
 0x129   :  { %v4550_v46 = vpop.eup %4549  ;;  %v458_v48 = vmul.f32 1.442695, %v406_v40  ;;  %v379_v40 = vand.u32 2147483647, %v5434_v15 }
 0x12a   :  { %v4552_v23 = vpop.eup %4551  ;;  %4173 = vmatmul.msk.f32.gmra.mxu1 %vm842_vm2, %v4141_v44  ;;  %v653_v17 = vadd.f32 1.0, %v4550_v46  ;;  %v656_v54 = vmul.f32 -0.5, %v4550_v46  ;;  %v659_v3 = vand.u32 2147483647, %v4550_v46 }
 0x12b   :  { %v5390_v42 = vpop.eup %4553  ;;  %4555 = vpow2.f32 %v458_v48  ;;  %v646_v13 = vmul.f32 0.6931472, %v4552_v23 }
 0x12c   :  { %4557 = vlog2.f32 %v653_v17  ;;  %v671_v59 = vadd.f32 1.0, %v5390_v42  ;;  %v657_v0 = vadd.f32 1.0, %v656_v54  ;;  %vm660_vm7 = vcmp.lt.f32.partialorder %v659_v3, 0.0004427343  ;;  %v5451_v17 = vld [vmem:[%s7695_s1 + $0x88] sm:$0xff] }
 0x12d   :  { %v652_v57 = vsel %vm651_vm6, %v649_v38, %v646_v13  ;;  %4559 = vpow2.f32 %v462_v56  ;;  %v674_v25 = vmul.f32 -0.5, %v5390_v42  ;;  %v677_v36 = vand.u32 2147483647, %v5390_v42 }
 0x12e   :  { %v788_v58 = vadd.f32 %v652_v57, %v340_v55  ;;  %4561 = vlog2.f32 %v671_v59  ;;  %v658_v9 = vmul.f32 %v4550_v46, %v657_v0  ;;  %v5462_v54 = vadd.f32 %v5409_v53, %v304_v10  ;;  %v4293_v55 = vld [vmem:[%s7697_s3 + $0x28] sm:$0xff] }
 0x12f   :  { %v5404_v63 = vpop.f32.mrf.mxu1  ;;  %v675_v33 = vadd.f32 1.0, %v674_v25  ;;  %4208 = vmatmul.msk.f32.gmra.mxu2 %vm112_vm0, %v5451_v17  ;;  %vm5457_vm9 = vcmp.lt.f32.partialorder %v677_v36, 0.0004427343  ;;  %v343_v56 = vmax.f32 %v5347_v52, 0.0  ;;  %2150 = vmatpush.msrb.mxu0 %v4293_v55  ;;  %v94_v52 = vld [vmem:[%s7696_s2 + $0xa0] sm:$0xff]  ;;  %v344_v25 = vmax.f32 %v5369_v5, 0.0 }
 0x130   :  { %v4142_v1 = vadd.f32 -0.6931472, %v788_v58  ;;  %1154 = vperm.xlu2 %4462, %v94_v52   ;;  %v5517_v36 = vld [vmem:[%s7695_s1 + $0x8] sm:$0xff] }
 0x131   :  { %v4556_v6 = vpop.eup %4555  ;;  %v676_v49 = vmul.f32 %v5390_v42, %v675_v33  ;;  %v411_v42 = vsub.f32 0.0, %v379_v40 }
 0x132   :  { %v4558_v14 = vpop.eup %4557  ;;  %4174 = vmatmul.msk.f32.gmra.mxu1 %vm842_vm2, %v4142_v1  ;;  %v662_v60 = vadd.f32 1.0, %v4556_v6  ;;  %v665_v16 = vmul.f32 -0.5, %v4556_v6  ;;  %v668_v18 = vand.u32 2147483647, %v4556_v6  ;;  %v4292_v1 = vld [vmem:[%s7697_s3 + $0x20] sm:$0xff]  ;;  %s4078_s3 = sshll.u32 %s4948_s18, 4  ;;  %s4079_s3 = int_to_ptr.vmem [resolvable:$true] %s4078_s3 }
 0x133   :  { %v655_v7 = vmul.f32 0.6931472, %v4558_v14  ;;  %v5418_v21 = vpop.eup %4559  ;;  %v468_v3 = vmul.f32 1.442695, %v411_v42  ;;  %2151 = vmatpush.msrb.mxu0 %v4292_v1 }
 0x134   :  { %4563 = vlog2.f32 %v662_v60  ;;  %v4562_v27 = vpop.eup %4561  ;;  %v666_v22 = vadd.f32 1.0, %v665_v16  ;;  %v680_v30 = vadd.f32 1.0, %v5418_v21  ;;  %vm669_vm8 = vcmp.lt.f32.partialorder %v668_v18, 0.0004427343  ;;  %v310_v16 = vpop.f32.mrf.mxu3 }
 0x135   :  { %v661_v20 = vsel %vm660_vm7, %v658_v9, %v655_v7  ;;  %4565 = vpow2.f32 %v464_v47  ;;  %v673_v48 = vmul.f32 0.6931472, %v4562_v27  ;;  %v683_v23 = vmul.f32 -0.5, %v5418_v21  ;;  %v5483_v47 = vld [vmem:[%s7695_s1] sm:$0xff] }
 0x136   :  { %v789_v24 = vadd.f32 %v661_v20, %v341_v11  ;;  %v667_v28 = vmul.f32 %v4556_v6, %v666_v22  ;;  %4567 = vlog2.f32 %v680_v30  ;;  %v686_v0 = vand.u32 2147483647, %v5418_v21  ;;  %4295 = vmatmul.msk.f32.vlgmr.msrb.gmra.mxu0 %vm112_vm0, %v5483_v47  ;;  %v5492_v11 = vld [vmem:[%s7695_s1 + $0x90] sm:$0xff]  ;;  %v98_v30 = vld [vmem:[%s7696_s2 + $0xc0] sm:$0xff] }
 0x137   :  { %v5431_v4 = vpop.f32.mrf.mxu1  ;;  %4569 = vpow2.f32 %v466_v39  ;;  %v679_v58 = vsel %vm5457_vm9, %v676_v49, %v673_v48  ;;  %v684_v59 = vadd.f32 1.0, %v683_v23  ;;  %v380_v6 = vand.u32 2147483647, %v5462_v54  ;;  %4209 = vmatmul.msk.f32.gmra.mxu2 %vm112_vm0, %v5492_v11  ;;  %1174 = vperm.xlu0 %4460, %v98_v30  }
 0x138   :  { %v4143_v62 = vadd.f32 -0.6931472, %v789_v24  ;;  %v791_v14 = vadd.f32 %v679_v58, %v343_v56  ;;  %vm5498_vm10 = vcmp.lt.f32.partialorder %v686_v0, 0.0004427343  ;;  %v5536_v49 = vadd.f32 %v5409_v53, %v310_v16 }
 0x139   :  { %v685_v10 = vmul.f32 %v5418_v21, %v684_v59  ;;  %v412_v24 = vsub.f32 0.0, %v380_v6  ;;  %v5503_v21 = vadd.f32 %v5409_v53, %v307_v31  ;;  %v5549_v59 = vld [vmem:[%s7695_s1 + $0x10] sm:$0xff] }
 0x13a   :  { %4175 = vmatmul.msk.f32.gmra.mxu1 %vm842_vm2, %v4143_v62  ;;  %v4564_v35 = vpop.eup %4563  ;;  %v4145_v27 = vadd.f32 -0.6931472, %v791_v14  ;;  %v382_v58 = vand.u32 2147483647, %v5536_v49  ;;  %v5618_v6 = vld [vmem:[%s7695_s1 + $0xb0] sm:$0xff] }
 0x13b   :  { %v664_v43 = vmul.f32 0.6931472, %v4564_v35  ;;  %v5440_v44 = vpop.eup %4565  ;;  %v470_v33 = vmul.f32 1.442695, %v412_v24  ;;  %v381_v35 = vand.u32 2147483647, %v5503_v21 }
 0x13c   :  { %v689_v57 = vadd.f32 1.0, %v5440_v44  ;;  %v4568_v34 = vpop.eup %4567  ;;  %v692_v60 = vmul.f32 -0.5, %v5440_v44  ;;  %v695_v18 = vand.u32 2147483647, %v5440_v44 }
 0x13d   :  { %v670_v46 = vsel %vm669_vm8, %v667_v28, %v664_v43  ;;  %v4570_v7 = vpop.eup %4569  ;;  %v682_v9 = vmul.f32 0.6931472, %v4568_v34  ;;  %v413_v48 = vsub.f32 0.0, %v381_v35 }
 0x13e   :  { %v790_v13 = vadd.f32 %v670_v46, %v342_v45  ;;  %4571 = vlog2.f32 %v689_v57  ;;  %v698_v26 = vadd.f32 1.0, %v4570_v7  ;;  %v693_v62 = vadd.f32 1.0, %v692_v60  ;;  %4296 = vmatmul.msk.f32.gmra.mxu0 %vm112_vm0, %v5517_v36  ;;  %v5525_v45 = vld [vmem:[%s7695_s1 + $0x98] sm:$0xff] }
 0x13f   :  { %v5455_v32 = vpop.f32.mrf.mxu1  ;;  %4573 = vpow2.f32 %v468_v3  ;;  %v688_v29 = vsel %vm5498_vm10, %v685_v10, %v682_v9  ;;  %v701_v40 = vmul.f32 -0.5, %v4570_v7  ;;  %4210 = vmatmul.msk.f32.gmra.mxu2 %vm112_vm0, %v5525_v45  ;;  %vm5531_vm11 = vcmp.lt.f32.partialorder %v695_v18, 0.0004427343  ;;  %v5556_v3 = vld [vmem:[%s7695_s1 + $0xa0] sm:$0xff]  ;;  %v5580_v18 = vld [vmem:[%s7695_s1 + $0x18] sm:$0xff] }
 0x140   :  { %v4144_v50 = vadd.f32 -0.6931472, %v790_v13  ;;  %4575 = vlog2.f32 %v698_v26  ;;  %v792_v5 = vadd.f32 %v688_v29, %v344_v25  ;;  %v694_v28 = vmul.f32 %v5440_v44, %v693_v62  ;;  %v313_v13 = vpop.f32.mrf.mxu3  ;;  %v97_v29 = vld [vmem:[%s7696_s2 + $0xb8] sm:$0xff] }
 0x141   :  { %4577 = vpow2.f32 %v470_v33  ;;  %v345_v44 = vmax.f32 %v5379_v37, 0.0  ;;  %v702_v38 = vadd.f32 1.0, %v701_v40  ;;  %v704_v56 = vand.u32 2147483647, %v4570_v7  ;;  %1169 = vperm.xlu2 %4462, %v97_v29   ;;  %v5587_v40 = vld [vmem:[%s7695_s1 + $0xa8] sm:$0xff] }
 0x142   :  { %4176 = vmatmul.msk.f32.gmra.mxu1 %vm842_vm2, %v4144_v50  ;;  %v4146_v51 = vadd.f32 -0.6931472, %v792_v5  ;;  %v99_v50 = vld [vmem:[%s7696_s2 + $0xc8] sm:$0xff]  ;;  %v472_v57 = vmul.f32 1.442695, %v413_v48  ;;  %v414_v9 = vsub.f32 0.0, %v382_v58  ;;  %v5567_v10 = vadd.f32 %v5409_v53, %v313_v13 }
 0x143   :  { %1179 = vperm.xlu1 %4461, %v99_v50   ;;  %v703_v1 = vmul.f32 %v4570_v7, %v702_v38  ;;  %vm5560_vm12 = vcmp.lt.f32.partialorder %v704_v56, 0.0004427343  ;;  %v346_v7 = vmax.f32 %v5413_v2, 0.0  ;;  %v5611_v58 = vld [vmem:[%s7695_s1 + $0x20] sm:$0xff] }
 0x144   :  { %v4572_v22 = vpop.eup %4571  ;;  %v474_v62 = vmul.f32 1.442695, %v414_v9  ;;  %v5670_v9 = vld [vmem:[%s7695_s1 + $0xc0] sm:$0xff] }
 0x145   :  { %v4574_v39 = vpop.eup %4573  ;;  %v691_v43 = vmul.f32 0.6931472, %v4572_v22  ;;  %v383_v22 = vand.u32 2147483647, %v5567_v10 }
 0x146   :  { %v707_v23 = vadd.f32 1.0, %v4574_v39  ;;  %v4576_v55 = vpop.eup %4575  ;;  %4297 = vmatmul.msk.f32.gmra.mxu0 %vm112_vm0, %v5549_v59  ;;  %v710_v52 = vmul.f32 -0.5, %v4574_v39  ;;  %v713_v26 = vand.u32 2147483647, %v4574_v39 }
 0x147   :  { %v5496_v12 = vpop.f32.mrf.mxu1  ;;  %v697_v42 = vsel %vm5531_vm11, %v694_v28, %v691_v43  ;;  %v4578_v34 = vpop.eup %4577  ;;  %v700_v0 = vmul.f32 0.6931472, %v4576_v55  ;;  %4211 = vmatmul.msk.f32.gmra.mxu2 %vm112_vm0, %v5556_v3  ;;  %v415_v46 = vsub.f32 0.0, %v383_v22  ;;  %v101_v55 = vld [vmem:[%s7696_s2 + $0xd8] sm:$0xff] }
 0x148   :  { %7769 = vst [vmem:[#allocation5_spill] sm:$0xff] %v5496_v12  ;;  %4579 = vlog2.f32 %v707_v23  ;;  %v793_v37 = vadd.f32 %v697_v42, %v345_v44  ;;  %v716_v60 = vadd.f32 1.0, %v4578_v34  ;;  %v711_v24 = vadd.f32 1.0, %v710_v52  ;;  %1189 = vperm.xlu0 %4460, %v101_v55  }
 0x149   :  { %4581 = vpow2.f32 %v472_v57  ;;  %v706_v20 = vsel %vm5560_vm12, %v703_v1, %v700_v0  ;;  %v719_v5 = vmul.f32 -0.5, %v4578_v34  ;;  %vm5591_vm13 = vcmp.lt.f32.partialorder %v713_v26, 0.0004427343 }
 0x14a   :  { %4177 = vmatmul.msk.f32.gmra.mxu1 %vm842_vm2, %v4145_v27  ;;  %v4147_v16 = vadd.f32 -0.6931472, %v793_v37  ;;  %v316_v27 = vpop.f32.mrf.mxu3  ;;  %v794_v2 = vadd.f32 %v706_v20, %v346_v7  ;;  %4583 = vlog2.f32 %v716_v60  ;;  %v712_v35 = vmul.f32 %v4574_v39, %v711_v24 }
 0x14b   :  { %4585 = vpow2.f32 %v474_v62  ;;  %v5598_v48 = vadd.f32 %v5409_v53, %v316_v27  ;;  %v347_v44 = vmax.f32 %v5434_v15, 0.0  ;;  %v720_v13 = vadd.f32 1.0, %v719_v5  ;;  %v102_v62 = vld [vmem:[%s7696_s2 + $0xe0] sm:$0xff] }
 0x14c   :  { %v4148_v39 = vadd.f32 -0.6931472, %v794_v2  ;;  %v722_v42 = vand.u32 2147483647, %v4578_v34  ;;  %v476_v56 = vmul.f32 1.442695, %v415_v46  ;;  %1194 = vperm.xlu1 %4461, %v102_v62  }
 0x14d   :  { %v384_v50 = vand.u32 2147483647, %v5598_v48  ;;  %v721_v1 = vmul.f32 %v4578_v34, %v720_v13  ;;  %v348_v20 = vmax.f32 %v5462_v54, 0.0  ;;  %v5642_v54 = vld [vmem:[%s7695_s1 + $0x28] sm:$0xff]  ;;  %v5649_v46 = vld [vmem:[%s7695_s1 + $0xb8] sm:$0xff] }
 0x14e   :  { %v4580_v25 = vpop.eup %4579  ;;  %4298 = vmatmul.msk.f32.gmra.mxu0 %vm112_vm0, %v5580_v18  ;;  %vm5622_vm14 = vcmp.lt.f32.partialorder %v722_v42, 0.0004427343 }
 0x14f   :  { %v5529_v31 = vpop.f32.mrf.mxu1  ;;  %v4582_v30 = vpop.eup %4581  ;;  %v709_v33 = vmul.f32 0.6931472, %v4580_v25  ;;  %4212 = vmatmul.msk.f32.gmra.mxu2 %vm112_vm0, %v5587_v40  ;;  %v416_v60 = vsub.f32 0.0, %v384_v50 }
 0x150   :  { %7772 = vst [vmem:[#allocation6_spill] sm:$0xff] %v5529_v31  ;;  %v725_v23 = vadd.f32 1.0, %v4582_v30  ;;  %v4584_v38 = vpop.eup %4583  ;;  %v728_v52 = vmul.f32 -0.5, %v4582_v30  ;;  %v731_v29 = vand.u32 2147483647, %v4582_v30 }
 0x151   :  { %v4586_v37 = vpop.eup %4585  ;;  %v718_v0 = vmul.f32 0.6931472, %v4584_v38  ;;  %v478_v22 = vmul.f32 1.442695, %v416_v60 }
 0x152   :  { %4178 = vmatmul.msk.f32.gmra.mxu1 %vm842_vm2, %v4146_v51  ;;  %v715_v51 = vsel %vm5591_vm13, %v712_v35, %v709_v33  ;;  %4587 = vlog2.f32 %v725_v23  ;;  %v319_v15 = vpop.f32.mrf.mxu3  ;;  %v734_v24 = vadd.f32 1.0, %v4586_v37  ;;  %v729_v26 = vadd.f32 1.0, %v728_v52 }
 0x153   :  { %v795_v57 = vadd.f32 %v715_v51, %v347_v44  ;;  %4589 = vpow2.f32 %v476_v56  ;;  %v724_v25 = vsel %vm5622_vm14, %v721_v1, %v718_v0  ;;  %v737_v43 = vmul.f32 -0.5, %v4586_v37  ;;  %v100_v56 = vld [vmem:[%s7696_s2 + $0xd0] sm:$0xff] }
 0x154   :  { %v796_v2 = vadd.f32 %v724_v25, %v348_v20  ;;  %4591 = vlog2.f32 %v734_v24  ;;  %v730_v5 = vmul.f32 %v4582_v30, %v729_v26  ;;  %vm732_vm15 = vcmp.lt.f32.partialorder %v731_v29, 0.0004427343  ;;  %1184 = vperm.xlu2 %4462, %v100_v56   ;;  %v104_v29 = vld [vmem:[%s7696_s2 + $0xf0] sm:$0xff]  ;;  %v5705_v56 = vld [vmem:[%s7695_s1 + $0x40] sm:$0xff] }
 0x155   :  { %v4149_v34 = vadd.f32 -0.6931472, %v795_v57  ;;  %4593 = vpow2.f32 %v478_v22  ;;  %v349_v51 = vmax.f32 %v5503_v21, 0.0  ;;  %v738_v30 = vadd.f32 1.0, %v737_v43  ;;  %1204 = vperm.xlu0 %4460, %v104_v29   ;;  %v5684_v22 = vld [vmem:[%s7695_s1 + $0x38] sm:$0xff] }
 0x156   :  { %4299 = vmatmul.msk.f32.gmra.mxu0 %vm112_vm0, %v5611_v58  ;;  %v4150_v23 = vadd.f32 -0.6931472, %v796_v2  ;;  %v740_v55 = vand.u32 2147483647, %v4586_v37  ;;  %v350_v20 = vmax.f32 %v5536_v49, 0.0 }
 0x157   :  { %v5564_v14 = vpop.f32.mrf.mxu1  ;;  %4213 = vmatmul.msk.f32.gmra.mxu2 %vm112_vm0, %v5618_v6  ;;  %v739_v1 = vmul.f32 %v4586_v37, %v738_v30 }
 0x158   :  { %7777 = vst [vmem:[#allocation7_spill] sm:$0xff] %v5564_v14  ;;  %v4588_v27 = vpop.eup %4587  ;;  %vm741_vm1 = vcmp.lt.f32.partialorder %v740_v55, 0.0004427343 }
 0x159   :  { %v4590_v33 = vpop.eup %4589  ;;  %v727_v35 = vmul.f32 0.6931472, %v4588_v27 }
 0x15a   :  { %4179 = vmatmul.msk.f32.gmra.mxu1 %vm842_vm2, %v4147_v16  ;;  %v5629_v16 = vadd.f32 %v5409_v53, %v319_v15  ;;  %v743_v13 = vadd.f32 1.0, %v4590_v33  ;;  %v4592_v42 = vpop.eup %4591  ;;  %v5663_v15 = vld [vmem:[%s7695_s1 + $0x30] sm:$0xff]  ;;  %v746_v52 = vmul.f32 -0.5, %v4590_v33  ;;  %v749_v27 = vand.u32 2147483647, %v4590_v33 }
 0x15b   :  { %v733_v38 = vsel %vm732_vm15, %v730_v5, %v727_v35  ;;  %v4594_v21 = vpop.eup %4593  ;;  %v736_v0 = vmul.f32 0.6931472, %v4592_v42  ;;  %v5691_v5 = vld [vmem:[%s7695_s1 + $0xc8] sm:$0xff]  ;;  %v105_v42 = vld [vmem:[%s7696_s2 + $0xf8] sm:$0xff] }
 0x15c   :  { %v385_v53 = vand.u32 2147483647, %v5629_v16  ;;  %v797_v57 = vadd.f32 %v733_v38, %v349_v51  ;;  %4595 = vlog2.f32 %v743_v13  ;;  %v752_v24 = vadd.f32 1.0, %v4594_v21  ;;  %1209 = vperm.xlu1 %4461, %v105_v42   ;;  %v4911_v42 = vld [vmem:[%s7695_s1 + $0x60] sm:$0xff] }
 0x15d   :  { %v742_v25 = vsel %vm741_vm1, %v739_v1, %v736_v0  ;;  %v747_v26 = vadd.f32 1.0, %v746_v52  ;;  %v755_v35 = vmul.f32 -0.5, %v4594_v21  ;;  %vm750_vm3 = vcmp.lt.f32.partialorder %v749_v27, 0.0004427343  ;;  %v5712_v0 = vld [vmem:[%s7695_s1 + $0xd0] sm:$0xff]  ;;  %v5726_v27 = vld [vmem:[%s7695_s1 + $0x48] sm:$0xff] }
 0x15e   :  { %4300 = vmatmul.msk.f32.gmra.mxu0 %vm112_vm0, %v5642_v54  ;;  %v417_v44 = vsub.f32 0.0, %v385_v53  ;;  %v798_v62 = vadd.f32 %v742_v25, %v350_v20 }
 0x15f   :  { %v5595_v28 = vpop.f32.mrf.mxu1  ;;  %4214 = vmatmul.msk.f32.gmra.mxu2 %vm112_vm0, %v5649_v46  ;;  %v748_v2 = vmul.f32 %v4590_v33, %v747_v26  ;;  %v756_v38 = vadd.f32 1.0, %v755_v35  ;;  %v758_v33 = vand.u32 2147483647, %v4594_v21  ;;  %v353_v35 = vmax.f32 %v5629_v16, 0.0 }
 0x160   :  { %7780 = vst [vmem:[#allocation8_spill] sm:$0xff] %v5595_v28  ;;  %v480_v50 = vmul.f32 1.442695, %v417_v44  ;;  %v4152_v44 = vadd.f32 -0.6931472, %v798_v62  ;;  %v5733_v62 = vld [vmem:[%s7695_s1 + $0xd8] sm:$0xff] }
 0x161   :  { %vm759_vm4 = vcmp.lt.f32.partialorder %v758_v33, 0.0004427343 }
 0x162   :  { %4180 = vmatmul.msk.f32.gmra.mxu1 %vm842_vm2, %v4148_v39  ;;  %4597 = vpow2.f32 %v480_v50  ;;  %v4596_v37 = vpop.eup %4595  ;;  %v757_v50 = vmul.f32 %v4594_v21, %v756_v38  ;;  %v103_v21 = vld [vmem:[%s7696_s2 + $0xe8] sm:$0xff]  ;;  %v4909_v38 = vld [vmem:[%s7695_s1 + $0x58] sm:$0xff] }
 0x163   :  { %4599 = vlog2.f32 %v752_v24  ;;  %v745_v53 = vmul.f32 0.6931472, %v4596_v37  ;;  %1199 = vperm.xlu2 %4462, %v103_v21  }
 0x165   :  { %v751_v13 = vsel %vm750_vm3, %v748_v2, %v745_v53 }
 0x166   :  { %4301 = vmatmul.msk.f32.gmra.mxu0 %vm112_vm0, %v5663_v15 }
 0x167   :  { %v5626_v7 = vpop.f32.mrf.mxu1  ;;  %4215 = vmatmul.msk.f32.gmra.mxu2 %vm112_vm0, %v5670_v9 }
 0x168   :  { %7783 = vst [vmem:[#allocation9_spill] sm:$0xff] %v5626_v7  ;;  %v4598_v49 = vpop.eup %4597 }
 0x169   :  { %v761_v51 = vadd.f32 1.0, %v4598_v49  ;;  %v4600_v30 = vpop.eup %4599  ;;  %v767_v26 = vand.u32 2147483647, %v4598_v49 }
 0x16a   :  { %4181 = vmatmul.msk.f32.gmra.mxu1 %vm842_vm2, %v4149_v34  ;;  %v4151_v34 = vadd.f32 -0.6931472, %v797_v57  ;;  %v764_v57 = vmul.f32 -0.5, %v4598_v49 }
 0x16b   :  { %4601 = vlog2.f32 %v761_v51  ;;  %vm768_vm5 = vcmp.lt.f32.partialorder %v767_v26, 0.0004427343  ;;  %v5751_v51 = vld [vmem:[%s7695_s1 + $0xe0] sm:$0xff]  ;;  %v4258_v26 = vld [vmem:[%s7699_s5 + $0x38] sm:$0xff] }
 0x16c   :  { %v765_v24 = vadd.f32 1.0, %v764_v57  ;;  %1995 = vmatpush.msrb.mxu3 %v4258_v26 }
 0x16e   :  { %4302 = vmatmul.msk.f32.gmra.mxu0 %vm112_vm0, %v5684_v22  ;;  %v766_v29 = vmul.f32 %v4598_v49, %v765_v24  ;;  %v5744_v49 = vld [vmem:[%s7695_s1 + $0x50] sm:$0xff] }
 0x16f   :  { %v5653_v39 = vpop.f32.mrf.mxu1  ;;  %4216 = vmatmul.msk.f32.gmra.mxu2 %vm112_vm0, %v5691_v5 }
 0x170   :  { %7784 = vst [vmem:[#allocation10_spill] sm:$0xff] %v5653_v39 }
 0x171   :  { %v4602_v25 = vpop.eup %4601 }
 0x172   :  { %4182 = vmatmul.msk.f32.gmra.mxu1 %vm842_vm2, %v4150_v23  ;;  %v351_v23 = vmax.f32 %v5567_v10, 0.0  ;;  %v754_v10 = vmul.f32 0.6931472, %v4600_v30  ;;  %v5765_v30 = vld [vmem:[%s7695_s1 + $0xe8] sm:$0xff] }
 0x174   :  { %v799_v55 = vadd.f32 %v751_v13, %v351_v23  ;;  %v760_v20 = vsel %vm759_vm4, %v757_v50, %v754_v10  ;;  %v5795_v50 = vld [vmem:[%s7695_s1 + $0xf8] sm:$0xff] }
 0x176   :  { %4303 = vmatmul.msk.f32.gmra.mxu0 %vm112_vm0, %v5705_v56  ;;  %v4153_v52 = vadd.f32 -0.6931472, %v799_v55  ;;  %v5780_v55 = vld [vmem:[%s7695_s1 + $0xf0] sm:$0xff] }
 0x177   :  { %v5674_v60 = vpop.f32.mrf.mxu1  ;;  %4217 = vmatmul.msk.f32.gmra.mxu2 %vm112_vm0, %v5712_v0 }
 0x178   :  { %7785 = vst [vmem:[#allocation11_spill] sm:$0xff] %v5674_v60 }
 0x17a   :  { %4183 = vmatmul.msk.f32.gmra.mxu1 %vm842_vm2, %v4151_v34  ;;  %v352_v34 = vmax.f32 %v5598_v48, 0.0  ;;  %v763_v48 = vmul.f32 0.6931472, %v4602_v25 }
 0x17c   :  { %v800_v37 = vadd.f32 %v760_v20, %v352_v34 }
 0x17e   :  { %4304 = vmatmul.msk.f32.gmra.mxu0 %vm112_vm0, %v5726_v27  ;;  %v4154_v2 = vadd.f32 -0.6931472, %v800_v37 }
 0x17f   :  { %v5695_v43 = vpop.f32.mrf.mxu1  ;;  %4218 = vmatmul.msk.f32.gmra.mxu2 %vm112_vm0, %v5733_v62 }
 0x180   :  { %7786 = vst [vmem:[#allocation12_spill] sm:$0xff] %v5695_v43 }
 0x182   :  { %4184 = vmatmul.msk.f32.gmra.mxu1 %vm842_vm2, %v4152_v44  ;;  %v769_v44 = vsel %vm768_vm5, %v766_v29, %v763_v48 }
 0x183   :  { %v801_v23 = vadd.f32 %v769_v44, %v353_v35  ;;  %v5845_v44 = vld [vmem:[%s7701_s7 + $0x18] sm:$0xff] }
 0x184   :  { %3036 = vmatpush.msra.mxu1 %v5845_v44 }
 0x185   :  { %v4155_v13 = vadd.f32 -0.6931472, %v801_v23 }
 0x186   :  { %4305 = vmatmul.msk.f32.gmra.mxu0 %vm112_vm0, %v5744_v49 }
 0x187   :  { %v5716_v1 = vpop.f32.mrf.mxu1  ;;  %4219 = vmatmul.msk.f32.gmra.mxu2 %vm112_vm0, %v5751_v51 }
 0x188   :  { %7787 = vst [vmem:[#allocation13_spill] sm:$0xff] %v5716_v1 }
 0x18a   :  { %4185 = vmatmul.msk.f32.gmra.mxu1 %vm842_vm2, %v4153_v52 }
 0x18e   :  { %4306 = vmatmul.msk.f32.gmra.mxu0 %vm112_vm0, %v4909_v38 }
 0x18f   :  { %v5737_v53 = vpop.f32.mrf.mxu1  ;;  %4220 = vmatmul.msk.f32.gmra.mxu2 %vm112_vm0, %v5765_v30 }
 0x190   :  { %7788 = vst [vmem:[#allocation14_spill] sm:$0xff] %v5737_v53 }
 0x192   :  { %4186 = vmatmul.msk.f32.gmra.mxu1 %vm842_vm2, %v4154_v2 }
 0x196   :  { %4307 = vmatmul.msk.f32.gmra.mxu0 %vm112_vm0, %v4911_v42 }
 0x197   :  { %v5755_v16 = vpop.f32.mrf.mxu1  ;;  %4221 = vmatmul.msk.f32.gmra.mxu2 %vm112_vm0, %v5780_v55 }
 0x198   :  { %7789 = vst [vmem:[#allocation15_spill] sm:$0xff] %v5755_v16 }
 0x19a   :  { %4187 = vmatmul.msk.f32.gmra.mxu1 %vm842_vm2, %v4155_v13 }
 0x19f   :  { %v5769_v33 = vpop.f32.mrf.mxu1  ;;  %4222 = vmatmul.msk.f32.gmra.mxu2 %vm112_vm0, %v5795_v50 }
 0x1a0   :  { %7790 = vst [vmem:[#allocation16_spill] sm:$0xff] %v5769_v33 }
 0x1a2   :  { %4191 = vmatmul.msk.f32.vlgmr.msrb.gmra.mxu1 %vm112_vm0, %v5483_v47  ;;  %v4913_v47 = vld [vmem:[%s7695_s1 + $0x68] sm:$0xff] }
 0x1a3   :  { %4308 = vmatmul.msk.f32.gmra.mxu0 %vm112_vm0, %v4913_v47 }
 0x1a7   :  { %v5784_v10 = vpop.f32.mrf.mxu1 }
 0x1a8   :  { %7791 = vst [vmem:[#allocation17_spill] sm:$0xff] %v5784_v10 }
 0x1aa   :  { %4192 = vmatmul.msk.f32.gmra.mxu1 %vm112_vm0, %v5517_v36  ;;  %v4915_v36 = vld [vmem:[%s7695_s1 + $0x70] sm:$0xff] }
 0x1ab   :  { %4309 = vmatmul.msk.f32.gmra.mxu0 %vm112_vm0, %v4915_v36  ;;  %v5864_v36 = vld [vmem:[%s7701_s7 + $0x8] sm:$0xff] }
 0x1af   :  { %v5799_v57 = vpop.f32.mrf.mxu1 }
 0x1b0   :  { %7792 = vst [vmem:[#allocation18_spill] sm:$0xff] %v5799_v57 }
 0x1b2   :  { %4193 = vmatmul.msk.f32.gmra.mxu1 %vm112_vm0, %v5549_v59  ;;  %v5820_v59 = vld [vmem:[%s7698_s4 + $0x2] ss:$0 sm:$0xff] }
 0x1b3   :  { %4310 = vmatmul.msk.f32.gmra.mxu0 %vm112_vm0, %v5400_v61  ;;  %v2153_v20 = vpop.f32.mrf.mxu0 }
 0x1b4   :  { %v2154_v24 = vadd.f32 %v5820_v59, %v2153_v20 }
 0x1b7   :  { %v5807_v52 = vpop.f32.mrf.mxu1 }
 0x1b8   :  { %7793 = vst [vmem:[#allocation19_spill] sm:$0xff] %v5807_v52 }
 0x1ba   :  { %4194 = vmatmul.msk.f32.gmra.mxu1 %vm112_vm0, %v5580_v18  ;;  %v2281_v18 = vand.u32 2147483647, %v2154_v24 }
 0x1bb   :  { %4311 = vmatmul.msk.f32.gmra.mxu0 %vm112_vm0, %v5427_v8  ;;  %v2156_v21 = vpop.f32.mrf.mxu0 }
 0x1bc   :  { %v2313_v61 = vsub.f32 0.0, %v2281_v18  ;;  %v5833_v37 = vadd.f32 %v5820_v59, %v2156_v21  ;;  %v5872_v18 = vld [vmem:[%s7701_s7] sm:$0xff] }
 0x1be   :  { %v2282_v8 = vand.u32 2147483647, %v5833_v37 }
 0x1bf   :  { %v5813_v34 = vpop.f32.mrf.mxu1 }
 0x1c0   :  { %7794 = vst [vmem:[#allocation20_spill] sm:$0xff] %v5813_v34  ;;  %v2314_v29 = vsub.f32 0.0, %v2282_v8 }
 0x1c2   :  { %4195 = vmatmul.msk.f32.gmra.mxu1 %vm112_vm0, %v5611_v58  ;;  %v2345_v58 = vmul.f32 1.442695, %v2313_v61  ;;  %v2347_v35 = vmul.f32 1.442695, %v2314_v29  ;;  %v4362_v61 = vld [vmem:[%s7699_s5 + $0x58] sm:$0xff]  ;;  %v4361_v29 = vld [vmem:[%s7699_s5 + $0x50] sm:$0xff] }
 0x1c3   :  { %4312 = vmatmul.msk.f32.gmra.mxu0 %vm112_vm0, %v5451_v17  ;;  %v5851_v17 = vld [vmem:[%s7701_s7 + $0x10] sm:$0xff]  ;;  %2879 = vmatpush.msrb.mxu2 %v4362_v61  ;;  %v4359_v61 = vld [vmem:[%s7699_s5 + $0x40] sm:$0xff] }
 0x1c4   :  { %4603 = vpow2.f32 %v2345_v58  ;;  %3037 = vmatpush.msra.mxu1 %v5851_v17  ;;  %v2249_v58 = vmax.f32 %v2154_v24, 0.0  ;;  %v4257_v24 = vld [vmem:[%s7699_s5 + $0x30] sm:$0xff] }
 0x1c5   :  { %2880 = vmatpush.msrb.mxu2 %v4361_v29  ;;  %1996 = vmatpush.msrb.mxu3 %v4257_v24 }
 0x1c6   :  { %3038 = vmatpush.msra.mxu1 %v5864_v36 }
 0x1c7   :  { %v5825_v25 = vpop.f32.mrf.mxu1 }
 0x1c8   :  { %7795 = vst [vmem:[#allocation21_spill] sm:$0xff] %v5825_v25  ;;  %3039 = vmatpush.msra.mxu1 %v5872_v18 }
 0x1ca   :  { %4196 = vmatmul.msk.f32.gmra.mxu1 %vm112_vm0, %v5642_v54  ;;  %v4604_v2 = vpop.eup %4603  ;;  %v2159_v54 = vpop.f32.mrf.mxu0 }
 0x1cb   :  { %v2409_v23 = vadd.f32 1.0, %v4604_v2  ;;  %v2412_v13 = vmul.f32 -0.5, %v4604_v2  ;;  %4313 = vmatmul.msk.f32.gmra.mxu0 %vm112_vm0, %v5492_v11  ;;  %v2415_v42 = vand.u32 2147483647, %v4604_v2  ;;  %v5859_v47 = vadd.f32 %v5820_v59, %v2159_v54  ;;  %v4360_v54 = vld [vmem:[%s7699_s5 + $0x48] sm:$0xff] }
 0x1cc   :  { %2881 = vmatpush.msrb.mxu2 %v4360_v54 }
 0x1cd   :  { %4605 = vlog2.f32 %v2409_v23  ;;  %vm5877_vm6 = vcmp.lt.f32.partialorder %v2415_v42, 0.0004427343  ;;  %v2283_v8 = vand.u32 2147483647, %v5859_v47 }
 0x1ce   :  { %4607 = vpow2.f32 %v2347_v35  ;;  %2882 = vmatpush.msrb.mxu2 %v4359_v61 }
 0x1cf   :  { %v5838_v48 = vpop.f32.mrf.mxu1 }
 0x1d0   :  { %7796 = vst [vmem:[#allocation22_spill] sm:$0xff] %v5838_v48 }
 0x1d2   :  { %4197 = vmatmul.msk.f32.gmra.mxu1 %vm112_vm0, %v5663_v15  ;;  %v2413_v15 = vadd.f32 1.0, %v2412_v13  ;;  %v2162_v20 = vpop.f32.mrf.mxu0 }
 0x1d3   :  { %v4606_v26 = vpop.eup %4605  ;;  %4314 = vmatmul.msk.f32.gmra.mxu0 %vm112_vm0, %v5525_v45 }
 0x1d4   :  { %v2414_v11 = vmul.f32 %v4604_v2, %v2413_v15  ;;  %v4608_v2 = vpop.eup %4607  ;;  %v2411_v35 = vmul.f32 0.6931472, %v4606_v26 }
 0x1d5   :  { %v2418_v45 = vadd.f32 1.0, %v4608_v2 }
 0x1d6   :  { %v2417_v23 = vsel %vm5877_vm6, %v2414_v11, %v2411_v35 }
 0x1d7   :  { %v5856_v38 = vpop.f32.mrf.mxu1  ;;  %v2697_v42 = vadd.f32 %v2417_v23, %v2249_v58  ;;  %4609 = vlog2.f32 %v2418_v45  ;;  %v2421_v58 = vmul.f32 -0.5, %v4608_v2 }
 0x1d8   :  { %7797 = vst [vmem:[#allocation23_spill] sm:$0xff] %v5856_v38 }
 0x1d9   :  { %v4327_v26 = vadd.f32 -0.6931472, %v2697_v42 }
 0x1da   :  { %4198 = vmatmul.msk.f32.gmra.mxu1 %vm112_vm0, %v5684_v22  ;;  %v5883_v22 = vadd.f32 %v5820_v59, %v2162_v20  ;;  %v2315_v20 = vsub.f32 0.0, %v2283_v8  ;;  %v2165_v21 = vpop.f32.mrf.mxu0 }
 0x1db   :  { %v5908_v35 = vadd.f32 %v5820_v59, %v2165_v21  ;;  %4364 = vmatmul.msk.f32.vlgmr.msrb.gmra.mxu2 %vm842_vm2, %v4327_v26  ;;  %4315 = vmatmul.msk.f32.gmra.mxu0 %vm112_vm0, %v5556_v3 }
 0x1dc   :  { %v2284_v13 = vand.u32 2147483647, %v5883_v22  ;;  %v2349_v11 = vmul.f32 1.442695, %v2315_v20 }
 0x1dd   :  { %v2285_v24 = vand.u32 2147483647, %v5908_v35  ;;  %v4610_v23 = vpop.eup %4609 }
 0x1de   :  { %v2316_v29 = vsub.f32 0.0, %v2284_v13  ;;  %4611 = vpow2.f32 %v2349_v11  ;;  %v2424_v13 = vand.u32 2147483647, %v4608_v2  ;;  %v2420_v3 = vmul.f32 0.6931472, %v4610_v23 }
 0x1df   :  { %v5900_v15 = vpop.f32.mrf.mxu1  ;;  %v2317_v42 = vsub.f32 0.0, %v2285_v24 }
 0x1e0   :  { %7800 = vst [vmem:[#allocation24_spill] sm:$0xff] %v5900_v15  ;;  %v2351_v8 = vmul.f32 1.442695, %v2316_v29  ;;  %v2250_v29 = vmax.f32 %v5833_v37, 0.0  ;;  %vm2425_vm7 = vcmp.lt.f32.partialorder %v2424_v13, 0.0004427343 }
 0x1e1   :  { %v2353_v21 = vmul.f32 1.442695, %v2317_v42  ;;  %v3012_v42 = vld [vmem:[%s7694_s0] sm:$0xff] }
 0x1e2   :  { %4199 = vmatmul.msk.f32.gmra.mxu1 %vm112_vm0, %v5705_v56  ;;  %v2422_v56 = vadd.f32 1.0, %v2421_v58  ;;  %4613 = vpow2.f32 %v2351_v8  ;;  %v2168_v20 = vpop.f32.mrf.mxu0 }
 0x1e3   :  { %v5919_v45 = vadd.f32 %v5820_v59, %v2168_v20  ;;  %4316 = vmatmul.msk.f32.gmra.mxu0 %vm112_vm0, %v5587_v40  ;;  %4615 = vpow2.f32 %v2353_v21 }
 0x1e4   :  { %v2423_v61 = vmul.f32 %v4608_v2, %v2422_v56  ;;  %v4612_v26 = vpop.eup %4611 }
 0x1e5   :  { %v2427_v24 = vadd.f32 1.0, %v4612_v26 }
 0x1e6   :  { %v2426_v8 = vsel %vm2425_vm7, %v2423_v61, %v2420_v3 }
 0x1e7   :  { %v5914_v54 = vpop.f32.mrf.mxu1  ;;  %4617 = vlog2.f32 %v2427_v24 }
 0x1e8   :  { %7801 = vst [vmem:[#allocation25_spill] sm:$0xff] %v5914_v54  ;;  %v4614_v58 = vpop.eup %4613  ;;  %v2698_v54 = vadd.f32 %v2426_v8, %v2250_v29  ;;  %v2433_v29 = vand.u32 2147483647, %v4612_v26 }
 0x1e9   :  { %v2436_v56 = vadd.f32 1.0, %v4614_v58  ;;  %v4616_v20 = vpop.eup %4615  ;;  %v2439_v3 = vmul.f32 -0.5, %v4614_v58 }
 0x1ea   :  { %4200 = vmatmul.msk.f32.gmra.mxu1 %vm112_vm0, %v5726_v27  ;;  %v2286_v27 = vand.u32 2147483647, %v5919_v45  ;;  %v4328_v40 = vadd.f32 -0.6931472, %v2698_v54  ;;  %v2171_v23 = vpop.f32.mrf.mxu0  ;;  %v4256_v54 = vld [vmem:[%s7699_s5 + $0x28] sm:$0xff]  ;;  %v2445_v21 = vadd.f32 1.0, %v4616_v20 }
 0x1eb   :  { %4317 = vmatmul.msk.f32.gmra.mxu0 %vm112_vm0, %v5618_v6  ;;  %4619 = vlog2.f32 %v2436_v56  ;;  %1997 = vmatpush.msrb.mxu3 %v4256_v54  ;;  %v5941_v6 = vadd.f32 %v5820_v59, %v2171_v23  ;;  %v2440_v24 = vadd.f32 1.0, %v2439_v3  ;;  %vm5947_vm8 = vcmp.lt.f32.partialorder %v2433_v29, 0.0004427343 }
 0x1ec   :  { %v2318_v2 = vsub.f32 0.0, %v2286_v27  ;;  %4365 = vmatmul.msk.f32.gmra.mxu2 %vm842_vm2, %v4328_v40  ;;  %v2442_v40 = vand.u32 2147483647, %v4614_v58  ;;  %v2448_v48 = vmul.f32 -0.5, %v4616_v20 }
 0x1ed   :  { %v4618_v61 = vpop.eup %4617  ;;  %v2287_v27 = vand.u32 2147483647, %v5941_v6  ;;  %v2441_v38 = vmul.f32 %v4614_v58, %v2440_v24 }
 0x1ee   :  { %v2355_v37 = vmul.f32 1.442695, %v2318_v2  ;;  %vm2443_vm9 = vcmp.lt.f32.partialorder %v2442_v40, 0.0004427343 }
 0x1ef   :  { %v5924_v11 = vpop.f32.mrf.mxu1  ;;  %v2319_v54 = vsub.f32 0.0, %v2287_v27  ;;  %v5957_v27 = vpop.f32.mrf.mxu2 }
 0x1f0   :  { %7802 = vst [vmem:[#allocation26_spill] sm:$0xff] %v5924_v11  ;;  %4621 = vpow2.f32 %v2355_v37  ;;  %v2251_v37 = vmax.f32 %v5859_v47, 0.0  ;;  %v2252_v47 = vmax.f32 %v5883_v22, 0.0 }
 0x1f1   :  { %v4620_v56 = vpop.eup %4619  ;;  %4623 = vlog2.f32 %v2445_v21 }
 0x1f2   :  { %4201 = vmatmul.msk.f32.gmra.mxu1 %vm112_vm0, %v5744_v49  ;;  %v2430_v49 = vmul.f32 -0.5, %v4612_v26  ;;  %v2174_v2 = vpop.f32.mrf.mxu0  ;;  %v2438_v15 = vmul.f32 0.6931472, %v4620_v56 }
 0x1f3   :  { %4318 = vmatmul.msk.f32.gmra.mxu0 %vm112_vm0, %v5649_v46  ;;  %v5955_v46 = vadd.f32 %v5820_v59, %v2174_v2  ;;  %v2451_v2 = vand.u32 2147483647, %v4616_v20 }
 0x1f4   :  { %v2431_v8 = vadd.f32 1.0, %v2430_v49  ;;  %v2357_v49 = vmul.f32 1.442695, %v2319_v54  ;;  %v2444_v21 = vsel %vm2443_vm9, %v2441_v38, %v2438_v15 }
 0x1f5   :  { %v2288_v56 = vand.u32 2147483647, %v5955_v46  ;;  %v2700_v11 = vadd.f32 %v2444_v21, %v2252_v47  ;;  %vm5971_vm10 = vcmp.lt.f32.partialorder %v2451_v2, 0.0004427343  ;;  %v2253_v47 = vmax.f32 %v5908_v35, 0.0 }
 0x1f6   :  { %v2432_v23 = vmul.f32 %v4612_v26, %v2431_v8  ;;  %v4622_v3 = vpop.eup %4621  ;;  %4625 = vpow2.f32 %v2357_v49  ;;  %v2449_v8 = vadd.f32 1.0, %v2448_v48 }
 0x1f7   :  { %v5932_v13 = vpop.f32.mrf.mxu1  ;;  %v4624_v24 = vpop.eup %4623  ;;  %v2457_v15 = vmul.f32 -0.5, %v4622_v3 }
 0x1f8   :  { %7803 = vst [vmem:[#allocation27_spill] sm:$0xff] %v5932_v13  ;;  %v2429_v13 = vmul.f32 0.6931472, %v4618_v61  ;;  %v2454_v61 = vadd.f32 1.0, %v4622_v3  ;;  %v2447_v48 = vmul.f32 0.6931472, %v4624_v24  ;;  %v2450_v22 = vmul.f32 %v4616_v20, %v2449_v8  ;;  %v5976_v49 = vpop.f32.mrf.mxu2 }
 0x1f9   :  { %v2458_v21 = vadd.f32 1.0, %v2457_v15 }
 0x1fa   :  { %4396 = vmatmul.msk.f32.vlgmr.msra.gmra.mxu1 %vm842_vm2, %v3012_v42  ;;  %v2435_v26 = vsel %vm5947_vm8, %v2432_v23, %v2429_v13  ;;  %v2177_v58 = vpop.f32.mrf.mxu0  ;;  %4627 = vlog2.f32 %v2454_v61  ;;  %v2320_v23 = vsub.f32 0.0, %v2288_v56  ;;  %v2453_v61 = vsel %vm5971_vm10, %v2450_v22, %v2447_v48 }
 0x1fb   :  { %v2699_v29 = vadd.f32 %v2435_v26, %v2251_v37  ;;  %4319 = vmatmul.msk.f32.gmra.mxu0 %vm112_vm0, %v5670_v9  ;;  %v5966_v40 = vadd.f32 %v5820_v59, %v2177_v58  ;;  %v4330_v26 = vadd.f32 -0.6931472, %v2700_v11  ;;  %v2460_v56 = vand.u32 2147483647, %v4622_v3 }
 0x1fc   :  { %v4626_v38 = vpop.eup %4625  ;;  %v2359_v58 = vmul.f32 1.442695, %v2320_v23  ;;  %v2459_v15 = vmul.f32 %v4622_v3, %v2458_v21 }
 0x1fd   :  { %v4329_v54 = vadd.f32 -0.6931472, %v2699_v29  ;;  %v2289_v9 = vand.u32 2147483647, %v5966_v40  ;;  %v2463_v29 = vadd.f32 1.0, %v4626_v38  ;;  %v2466_v23 = vmul.f32 -0.5, %v4626_v38 }
 0x1fe   :  { %4629 = vpow2.f32 %v2359_v58  ;;  %vm2461_vm11 = vcmp.lt.f32.partialorder %v2460_v56, 0.0004427343 }
 0x1ff   :  { %v5952_v42 = vpop.f32.mrf.mxu1  ;;  %4366 = vmatmul.msk.f32.gmra.mxu2 %vm842_vm2, %v4329_v54  ;;  %v2321_v24 = vsub.f32 0.0, %v2289_v9  ;;  %v2701_v54 = vadd.f32 %v2453_v61, %v2253_v47  ;;  %4631 = vlog2.f32 %v2463_v29  ;;  %v2254_v9 = vmax.f32 %v5919_v45, 0.0 }
 0x200   :  { %7806 = vst [vmem:[#allocation28_spill] sm:$0xff] %v5952_v42  ;;  %v4628_v8 = vpop.eup %4627  ;;  %v2467_v47 = vadd.f32 1.0, %v2466_v23  ;;  %v2469_v61 = vand.u32 2147483647, %v4626_v38 }
 0x201   :  { %v2361_v35 = vmul.f32 1.442695, %v2321_v24  ;;  %v2456_v22 = vmul.f32 0.6931472, %v4628_v8  ;;  %v4331_v37 = vadd.f32 -0.6931472, %v2701_v54 }
 0x202   :  { %v2180_v20 = vpop.f32.mrf.mxu0  ;;  %v2468_v45 = vmul.f32 %v4626_v38, %v2467_v47  ;;  %vm2470_vm12 = vcmp.lt.f32.partialorder %v2469_v61, 0.0004427343 }
 0x203   :  { %4320 = vmatmul.msk.f32.gmra.mxu0 %vm112_vm0, %v5691_v5  ;;  %v5984_v2 = vadd.f32 %v5820_v59, %v2180_v20  ;;  %4633 = vpow2.f32 %v2361_v35  ;;  %v2462_v58 = vsel %vm2461_vm11, %v2459_v15, %v2456_v22  ;;  %v6002_v15 = vld [vmem:[%s7698_s4 + $0x1] ss:$0 sm:$0xff] }
 0x204   :  { %v4630_v20 = vpop.eup %4629  ;;  %v2702_v3 = vadd.f32 %v2462_v58, %v2254_v9 }
 0x205   :  { %v2290_v48 = vand.u32 2147483647, %v5984_v2  ;;  %v4632_v29 = vpop.eup %4631  ;;  %v2472_v24 = vadd.f32 1.0, %v4630_v20  ;;  %v2475_v35 = vmul.f32 -0.5, %v4630_v20  ;;  %v2478_v38 = vand.u32 2147483647, %v4630_v20 }
 0x206   :  { %v2465_v54 = vmul.f32 0.6931472, %v4632_v29 }
 0x207   :  { %v5968_v13 = vpop.f32.mrf.mxu1  ;;  %4367 = vmatmul.msk.f32.gmra.mxu2 %vm842_vm2, %v4330_v26  ;;  %v2322_v5 = vsub.f32 0.0, %v2290_v48  ;;  %v5993_v26 = vpop.f32.mrf.mxu2  ;;  %4635 = vlog2.f32 %v2472_v24  ;;  %v4332_v48 = vadd.f32 -0.6931472, %v2702_v3  ;;  %vm6019_vm13 = vcmp.lt.f32.partialorder %v2478_v38, 0.0004427343 }
 0x208   :  { %7807 = vst [vmem:[#allocation29_spill] sm:$0xff] %v5968_v13  ;;  %v2471_v23 = vsel %vm2470_vm12, %v2468_v45, %v2465_v54  ;;  %v2257_v45 = vmax.f32 %v5966_v40, 0.0 }
 0x209   :  { %v2363_v8 = vmul.f32 1.442695, %v2322_v5  ;;  %v4634_v56 = vpop.eup %4633  ;;  %v2476_v5 = vadd.f32 1.0, %v2475_v35 }
 0x20a   :  { %v2481_v22 = vadd.f32 1.0, %v4634_v56  ;;  %v2183_v9 = vpop.f32.mrf.mxu0  ;;  %v2484_v54 = vmul.f32 -0.5, %v4634_v56 }
 0x20b   :  { %4321 = vmatmul.msk.f32.gmra.mxu0 %vm112_vm0, %v5712_v0  ;;  %4637 = vpow2.f32 %v2363_v8  ;;  %v2255_v0 = vmax.f32 %v5941_v6, 0.0  ;;  %v6013_v61 = vadd.f32 %v5820_v59, %v2183_v9  ;;  %v2477_v8 = vmul.f32 %v4630_v20, %v2476_v5 }
 0x20c   :  { %4639 = vlog2.f32 %v2481_v22  ;;  %v2485_v5 = vadd.f32 1.0, %v2484_v54 }
 0x20d   :  { %v4636_v58 = vpop.eup %4635  ;;  %v2703_v47 = vadd.f32 %v2471_v23, %v2255_v0  ;;  %v2256_v0 = vmax.f32 %v5955_v46, 0.0 }
 0x20e   :  { %v2474_v24 = vmul.f32 0.6931472, %v4636_v58 }
 0x20f   :  { %v5986_v11 = vpop.f32.mrf.mxu1  ;;  %4368 = vmatmul.msk.f32.gmra.mxu2 %vm842_vm2, %v4331_v37  ;;  %v4255_v37 = vld [vmem:[%s7699_s5 + $0x20] sm:$0xff]  ;;  %v6009_v6 = vpop.f32.mrf.mxu2 }
 0x210   :  { %7810 = vst [vmem:[#allocation30_spill] sm:$0xff] %v5986_v11  ;;  %1998 = vmatpush.msrb.mxu3 %v4255_v37  ;;  %v2480_v20 = vsel %vm6019_vm13, %v2477_v8, %v2474_v24 }
 0x211   :  { %v2704_v37 = vadd.f32 %v2480_v20, %v2256_v0 }
 0x212   :  { %4452 = vmatpush.msra.mxu3 %v5845_v44  ;;  %v2291_v44 = vand.u32 2147483647, %v6013_v61 }
 0x213   :  { %4322 = vmatmul.msk.f32.gmra.mxu0 %vm112_vm0, %v5733_v62  ;;  %v4638_v62 = vpop.eup %4637  ;;  %v4334_v54 = vadd.f32 -0.6931472, %v2704_v37 }
 0x214   :  { %4453 = vmatpush.msra.mxu3 %v5851_v17  ;;  %v2490_v22 = vadd.f32 1.0, %v4638_v62  ;;  %v4640_v9 = vpop.eup %4639  ;;  %v2487_v17 = vand.u32 2147483647, %v4634_v56  ;;  %v2323_v58 = vsub.f32 0.0, %v2291_v44  ;;  %v2496_v44 = vand.u32 2147483647, %v4638_v62 }
 0x216   :  { %4454 = vmatpush.msra.mxu3 %v5864_v36  ;;  %4641 = vlog2.f32 %v2490_v22  ;;  %v2483_v36 = vmul.f32 0.6931472, %v4640_v9  ;;  %vm6036_vm14 = vcmp.lt.f32.partialorder %v2487_v17, 0.0004427343  ;;  %vm6053_vm15 = vcmp.lt.f32.partialorder %v2496_v44, 0.0004427343 }
 0x217   :  { %v5995_v21 = vpop.f32.mrf.mxu1  ;;  %4369 = vmatmul.msk.f32.gmra.mxu2 %vm842_vm2, %v4332_v48  ;;  %v4333_v48 = vadd.f32 -0.6931472, %v2703_v47  ;;  %v2486_v47 = vmul.f32 %v4634_v56, %v2485_v5  ;;  %v6034_v24 = vpop.f32.mrf.mxu2 }
 0x218   :  { %7811 = vst [vmem:[#allocation31_spill] sm:$0xff] %v5995_v21  ;;  %4455 = vmatpush.msra.mxu3 %v5872_v18  ;;  %v2365_v18 = vmul.f32 1.442695, %v2323_v58 }
 0x21b   :  { %4323 = vmatmul.msk.f32.gmra.mxu0 %vm112_vm0, %v5751_v51 }
 0x21c   :  { %v4642_v0 = vpop.eup %4641 }
 0x21d   :  { %v2492_v17 = vmul.f32 0.6931472, %v4642_v0 }
 0x21f   :  { %v1269_v29 = vpop.f32.mrf.mxu1  ;;  %4370 = vmatmul.msk.f32.gmra.mxu2 %vm842_vm2, %v4333_v48  ;;  %v2489_v48 = vsel %vm6036_vm14, %v2486_v47, %v2483_v36 }
 0x220   :  { %v6017_v3 = vadd.f32 %v6002_v15, %v1269_v29  ;;  %v2493_v29 = vmul.f32 -0.5, %v4638_v62  ;;  %v2705_v9 = vadd.f32 %v2489_v48, %v2257_v45 }
 0x222   :  { %v1397_v35 = vand.u32 2147483647, %v6017_v3  ;;  %v2494_v56 = vadd.f32 1.0, %v2493_v29  ;;  %v6058_v29 = vpop.f32.mrf.mxu2  ;;  %v4335_v8 = vadd.f32 -0.6931472, %v2705_v9 }
 0x223   :  { %4324 = vmatmul.msk.f32.gmra.mxu0 %vm112_vm0, %v5765_v30 }
 0x224   :  { %v1429_v23 = vsub.f32 0.0, %v1397_v35  ;;  %v2186_v35 = vpop.f32.mrf.mxu0 }
 0x226   :  { %v1461_v38 = vmul.f32 1.442695, %v1429_v23  ;;  %v6050_v23 = vadd.f32 %v5820_v59, %v2186_v35 }
 0x227   :  { %v1272_v46 = vpop.f32.mrf.mxu1  ;;  %4371 = vmatmul.msk.f32.gmra.mxu2 %vm842_vm2, %v4334_v54 }
 0x228   :  { %4643 = vpow2.f32 %v1461_v38  ;;  %v6041_v51 = vadd.f32 %v6002_v15, %v1272_v46  ;;  %v2495_v38 = vmul.f32 %v4638_v62, %v2494_v56  ;;  %v2292_v47 = vand.u32 2147483647, %v6050_v23 }
 0x229   :  { %4645 = vpow2.f32 %v2365_v18  ;;  %v2258_v18 = vmax.f32 %v5984_v2, 0.0 }
 0x22a   :  { %v1398_v22 = vand.u32 2147483647, %v6041_v51  ;;  %v2498_v62 = vsel %vm6053_vm15, %v2495_v38, %v2492_v17  ;;  %v1365_v17 = vmax.f32 %v6017_v3, 0.0  ;;  %v6077_v3 = vpop.f32.mrf.mxu2 }
 0x22b   :  { %4325 = vmatmul.msk.f32.gmra.mxu0 %vm112_vm0, %v5780_v55  ;;  %v2706_v9 = vadd.f32 %v2498_v62, %v2258_v18  ;;  %v2259_v62 = vmax.f32 %v6013_v61, 0.0 }
 0x22c   :  { %v1430_v46 = vsub.f32 0.0, %v1398_v22  ;;  %v2324_v22 = vsub.f32 0.0, %v2292_v47  ;;  %v2189_v44 = vpop.f32.mrf.mxu0 }
 0x22d   :  { %v6071_v55 = vadd.f32 %v5820_v59, %v2189_v44  ;;  %v4336_v18 = vadd.f32 -0.6931472, %v2706_v9 }
 0x22e   :  { %v4644_v20 = vpop.eup %4643  ;;  %v1463_v48 = vmul.f32 1.442695, %v1430_v46 }
 0x22f   :  { %v1525_v5 = vadd.f32 1.0, %v4644_v20  ;;  %v1528_v40 = vmul.f32 -0.5, %v4644_v20  ;;  %v4646_v37 = vpop.eup %4645  ;;  %v1275_v54 = vpop.f32.mrf.mxu1  ;;  %v1531_v35 = vand.u32 2147483647, %v4644_v20  ;;  %4372 = vmatmul.msk.f32.gmra.mxu2 %vm842_vm2, %v4335_v8 }
 0x230   :  { %v2499_v58 = vadd.f32 1.0, %v4646_v37  ;;  %v2502_v36 = vmul.f32 -0.5, %v4646_v37  ;;  %v6066_v56 = vadd.f32 %v6002_v15, %v1275_v54  ;;  %v2505_v2 = vand.u32 2147483647, %v4646_v37 }
 0x231   :  { %4647 = vlog2.f32 %v1525_v5  ;;  %v1529_v45 = vadd.f32 1.0, %v1528_v40  ;;  %vm1532_vm1 = vcmp.lt.f32.partialorder %v1531_v35, 0.0004427343 }
 0x232   :  { %4649 = vlog2.f32 %v2499_v58  ;;  %v2503_v0 = vadd.f32 1.0, %v2502_v36  ;;  %v1399_v46 = vand.u32 2147483647, %v6066_v56  ;;  %v2367_v36 = vmul.f32 1.442695, %v2324_v22 }
 0x233   :  { %v1530_v30 = vmul.f32 %v4644_v20, %v1529_v45  ;;  %4651 = vpow2.f32 %v1463_v48  ;;  %vm2506_vm3 = vcmp.lt.f32.partialorder %v2505_v2, 0.0004427343  ;;  %4326 = vmatmul.msk.f32.gmra.mxu0 %vm112_vm0, %v5795_v50  ;;  %v2293_v48 = vand.u32 2147483647, %v6071_v55 }
 0x234   :  { %v2504_v58 = vmul.f32 %v4646_v37, %v2503_v0  ;;  %4653 = vpow2.f32 %v2367_v36  ;;  %v1431_v45 = vsub.f32 0.0, %v1399_v46 }
 0x235   :  { %v2325_v22 = vsub.f32 0.0, %v2293_v48 }
 0x237   :  { %v4648_v5 = vpop.eup %4647  ;;  %4373 = vmatmul.msk.f32.gmra.mxu2 %vm842_vm2, %v4336_v18  ;;  %v1278_v61 = vpop.f32.mrf.mxu1 }
 0x238   :  { %v1527_v40 = vmul.f32 0.6931472, %v4648_v5  ;;  %v4650_v47 = vpop.eup %4649  ;;  %v1465_v5 = vmul.f32 1.442695, %v1431_v45  ;;  %v6083_v50 = vadd.f32 %v6002_v15, %v1278_v61  ;;  %v2192_v45 = vpop.f32.mrf.mxu0 }
 0x239   :  { %v2501_v8 = vmul.f32 0.6931472, %v4650_v47  ;;  %v4652_v37 = vpop.eup %4651 }
 0x23a   :  { %v1533_v38 = vsel %vm1532_vm1, %v1530_v30, %v1527_v40  ;;  %v4654_v44 = vpop.eup %4653  ;;  %v1534_v9 = vadd.f32 1.0, %v4652_v37  ;;  %v1537_v46 = vmul.f32 -0.5, %v4652_v37  ;;  %v1400_v36 = vand.u32 2147483647, %v6083_v50 }
 0x23b   :  { %v1813_v54 = vadd.f32 %v1533_v38, %v1365_v17  ;;  %v2507_v35 = vsel %vm2506_vm3, %v2504_v58, %v2501_v8  ;;  %v2508_v40 = vadd.f32 1.0, %v4654_v44  ;;  %v2511_v30 = vmul.f32 -0.5, %v4654_v44  ;;  %v6085_v58 = vpop.f32.mrf.mxu2 }
 0x23c   :  { %v2707_v0 = vadd.f32 %v2507_v35, %v2259_v62  ;;  %v2369_v17 = vmul.f32 1.442695, %v2325_v22  ;;  %4655 = vlog2.f32 %v1534_v9  ;;  %v2514_v47 = vand.u32 2147483647, %v4654_v44 }
 0x23d   :  { %v4223_v20 = vadd.f32 -0.6931472, %v1813_v54  ;;  %4657 = vlog2.f32 %v2508_v40  ;;  %v2512_v38 = vadd.f32 1.0, %v2511_v30  ;;  %v1538_v54 = vadd.f32 1.0, %v1537_v46 }
 0x23e   :  { %v4337_v2 = vadd.f32 -0.6931472, %v2707_v0  ;;  %4659 = vpow2.f32 %v2369_v17  ;;  %v1540_v18 = vand.u32 2147483647, %v4652_v37  ;;  %v2260_v8 = vmax.f32 %v6050_v23, 0.0 }
 0x23f   :  { %4260 = vmatmul.msk.f32.vlgmr.msrb.gmra.mxu3 %vm842_vm2, %v4223_v20  ;;  %4661 = vpow2.f32 %v1465_v5  ;;  %v2513_v20 = vmul.f32 %v4654_v44, %v2512_v38  ;;  %v1432_v48 = vsub.f32 0.0, %v1400_v36  ;;  %vm2515_vm0 = vcmp.lt.f32.partialorder %v2514_v47, 0.0004427343  ;;  %v1281_v47 = vpop.f32.mrf.mxu1 }
 0x240   :  { %4374 = vmatmul.msk.f32.gmra.mxu2 %vm842_vm2, %v4337_v2  ;;  %v1539_v61 = vmul.f32 %v4652_v37, %v1538_v54  ;;  %v1366_v5 = vmax.f32 %v6041_v51, 0.0  ;;  %vm1541_vm4 = vcmp.lt.f32.partialorder %v1540_v18, 0.0004427343  ;;  %v6092_v44 = vadd.f32 %v5820_v59, %v2192_v45 }
 0x241   :  { %v1467_v11 = vmul.f32 1.442695, %v1432_v48 }
 0x242   :  { %v4656_v62 = vpop.eup %4655  ;;  %v2294_v18 = vand.u32 2147483647, %v6092_v44 }
 0x243   :  { %v4658_v35 = vpop.eup %4657  ;;  %v1536_v0 = vmul.f32 0.6931472, %v4656_v62  ;;  %v6094_v62 = vpop.f32.mrf.mxu2 }
 0x244   :  { %v4660_v22 = vpop.eup %4659  ;;  %v2510_v9 = vmul.f32 0.6931472, %v4658_v35  ;;  %v2195_v35 = vpop.f32.mrf.mxu0 }
 0x245   :  { %v4662_v40 = vpop.eup %4661  ;;  %v2517_v30 = vadd.f32 1.0, %v4660_v22  ;;  %v2520_v2 = vmul.f32 -0.5, %v4660_v22  ;;  %v1542_v17 = vsel %vm1541_vm4, %v1539_v61, %v1536_v0  ;;  %v2523_v54 = vand.u32 2147483647, %v4660_v22 }
 0x246   :  { %v2516_v46 = vsel %vm2515_vm0, %v2513_v20, %v2510_v9  ;;  %v1814_v21 = vadd.f32 %v1542_v17, %v1366_v5  ;;  %v1543_v36 = vadd.f32 1.0, %v4662_v40  ;;  %v1546_v20 = vmul.f32 -0.5, %v4662_v40 }
 0x247   :  { %v2708_v23 = vadd.f32 %v2516_v46, %v2260_v8  ;;  %4663 = vlog2.f32 %v2517_v30  ;;  %v2521_v38 = vadd.f32 1.0, %v2520_v2  ;;  %v6100_v8 = vadd.f32 %v6002_v15, %v1281_v47 }
 0x248   :  { %v4224_v51 = vadd.f32 -0.6931472, %v1814_v21  ;;  %4665 = vpow2.f32 %v1467_v11  ;;  %v2261_v0 = vmax.f32 %v6071_v55, 0.0  ;;  %vm2524_vm5 = vcmp.lt.f32.partialorder %v2523_v54, 0.0004427343  ;;  %v1284_v55 = vpop.f32.mrf.mxu1 }
 0x249   :  { %v4338_v37 = vadd.f32 -0.6931472, %v2708_v23  ;;  %v2522_v45 = vmul.f32 %v4660_v22, %v2521_v38  ;;  %4667 = vlog2.f32 %v1543_v36  ;;  %v2326_v21 = vsub.f32 0.0, %v2294_v18 }
 0x24a   :  { %4261 = vmatmul.msk.f32.gmra.mxu3 %vm842_vm2, %v4224_v51  ;;  %v1547_v5 = vadd.f32 1.0, %v1546_v20  ;;  %v6104_v9 = vadd.f32 %v5820_v59, %v2195_v35  ;;  %v1401_v30 = vand.u32 2147483647, %v6100_v8  ;;  %v1549_v17 = vand.u32 2147483647, %v4662_v40 }
 0x24b   :  { %4375 = vmatmul.msk.f32.gmra.mxu2 %vm842_vm2, %v4338_v37  ;;  %v2371_v11 = vmul.f32 1.442695, %v2326_v21  ;;  %v6108_v54 = vpop.f32.mrf.mxu2  ;;  %v1367_v51 = vmax.f32 %v6066_v56, 0.0 }
 0x24c   :  { %v2295_v38 = vand.u32 2147483647, %v6104_v9  ;;  %v1548_v47 = vmul.f32 %v4662_v40, %v1547_v5  ;;  %v1433_v18 = vsub.f32 0.0, %v1401_v30  ;;  %vm1550_vm6 = vcmp.lt.f32.partialorder %v1549_v17, 0.0004427343  ;;  %v2198_v56 = vpop.f32.mrf.mxu0 }
 0x24d   :  { %v4664_v48 = vpop.eup %4663  ;;  %4669 = vpow2.f32 %v2371_v11 }
 0x24e   :  { %v2519_v61 = vmul.f32 0.6931472, %v4664_v48  ;;  %v4666_v46 = vpop.eup %4665  ;;  %v2327_v20 = vsub.f32 0.0, %v2295_v38  ;;  %v6113_v48 = vadd.f32 %v6002_v15, %v1284_v55  ;;  %v1469_v40 = vmul.f32 1.442695, %v1433_v18 }
 0x24f   :  { %v4668_v22 = vpop.eup %4667  ;;  %v1555_v11 = vmul.f32 -0.5, %v4666_v46  ;;  %v1558_v38 = vand.u32 2147483647, %v4666_v46  ;;  %v6118_v55 = vadd.f32 %v5820_v59, %v2198_v56 }
 0x250   :  { %v2525_v2 = vsel %vm2524_vm5, %v2522_v45, %v2519_v61  ;;  %v1545_v37 = vmul.f32 0.6931472, %v4668_v22  ;;  %v1552_v45 = vadd.f32 1.0, %v4666_v46  ;;  %v2373_v21 = vmul.f32 1.442695, %v2327_v20 }
 0x251   :  { %v2709_v23 = vadd.f32 %v2525_v2, %v2261_v0  ;;  %v1402_v30 = vand.u32 2147483647, %v6113_v48  ;;  %v1556_v17 = vadd.f32 1.0, %v1555_v11  ;;  %v2262_v11 = vmax.f32 %v6092_v44, 0.0 }
 0x252   :  { %v1551_v35 = vsel %vm1550_vm6, %v1548_v47, %v1545_v37  ;;  %4671 = vlog2.f32 %v1552_v45  ;;  %v1287_v47 = vpop.f32.mrf.mxu1  ;;  %v2296_v45 = vand.u32 2147483647, %v6118_v55  ;;  %vm1559_vm7 = vcmp.lt.f32.partialorder %v1558_v38, 0.0004427343 }
 0x253   :  { %v4339_v36 = vadd.f32 -0.6931472, %v2709_v23  ;;  %v1815_v0 = vadd.f32 %v1551_v35, %v1367_v51  ;;  %v4670_v61 = vpop.eup %4669  ;;  %4673 = vpow2.f32 %v2373_v21  ;;  %v6120_v51 = vpop.f32.mrf.mxu2  ;;  %v1434_v18 = vsub.f32 0.0, %v1402_v30 }
 0x254   :  { %v2526_v5 = vadd.f32 1.0, %v4670_v61  ;;  %v2529_v2 = vmul.f32 -0.5, %v4670_v61  ;;  %v1557_v35 = vmul.f32 %v4666_v46, %v1556_v17  ;;  %v1368_v21 = vmax.f32 %v6083_v50, 0.0  ;;  %v2201_v46 = vpop.f32.mrf.mxu0 }
 0x255   :  { %4376 = vmatmul.msk.f32.gmra.mxu2 %vm842_vm2, %v4339_v36  ;;  %v4225_v23 = vadd.f32 -0.6931472, %v1815_v0  ;;  %v2532_v36 = vand.u32 2147483647, %v4670_v61  ;;  %v2328_v25 = vsub.f32 0.0, %v2296_v45  ;;  %v6127_v38 = vadd.f32 %v6002_v15, %v1287_v47 }
 0x256   :  { %4675 = vlog2.f32 %v2526_v5  ;;  %v2530_v22 = vadd.f32 1.0, %v2529_v2 }
 0x257   :  { %4262 = vmatmul.msk.f32.gmra.mxu3 %vm842_vm2, %v4225_v23  ;;  %4677 = vpow2.f32 %v1469_v40  ;;  %vm2533_vm8 = vcmp.lt.f32.partialorder %v2532_v36, 0.0004427343  ;;  %v2375_v44 = vmul.f32 1.442695, %v2328_v25  ;;  %v6133_v25 = vadd.f32 %v5820_v59, %v2201_v46 }
 0x258   :  { %v4672_v37 = vpop.eup %4671  ;;  %v2531_v5 = vmul.f32 %v4670_v61, %v2530_v22 }
 0x259   :  { %v1554_v20 = vmul.f32 0.6931472, %v4672_v37  ;;  %v4674_v0 = vpop.eup %4673  ;;  %v1471_v37 = vmul.f32 1.442695, %v1434_v18 }
 0x25a   :  { %v2535_v2 = vadd.f32 1.0, %v4674_v0  ;;  %v2538_v23 = vmul.f32 -0.5, %v4674_v0  ;;  %v2541_v50 = vand.u32 2147483647, %v4674_v0 }
 0x25b   :  { %v1560_v56 = vsel %vm1559_vm7, %v1557_v35, %v1554_v20  ;;  %v1290_v20 = vpop.f32.mrf.mxu1  ;;  %v6129_v35 = vpop.f32.mrf.mxu2 }
 0x25c   :  { %v4676_v40 = vpop.eup %4675  ;;  %v1816_v42 = vadd.f32 %v1560_v56, %v1368_v21  ;;  %4679 = vlog2.f32 %v2535_v2  ;;  %v2539_v34 = vadd.f32 1.0, %v2538_v23  ;;  %vm2542_vm9 = vcmp.lt.f32.partialorder %v2541_v50, 0.0004427343 }
 0x25d   :  { %v2528_v13 = vmul.f32 0.6931472, %v4676_v40  ;;  %v4678_v30 = vpop.eup %4677  ;;  %4681 = vpow2.f32 %v1471_v37 }
 0x25e   :  { %v4226_v57 = vadd.f32 -0.6931472, %v1816_v42  ;;  %v1561_v61 = vadd.f32 1.0, %v4678_v30  ;;  %v2540_v36 = vmul.f32 %v4674_v0, %v2539_v34  ;;  %4683 = vpow2.f32 %v2375_v44 }
 0x25f   :  { %v2534_v17 = vsel %vm2533_vm8, %v2531_v5, %v2528_v13  ;;  %v2263_v13 = vmax.f32 %v6104_v9, 0.0  ;;  %v1564_v45 = vmul.f32 -0.5, %v4678_v30  ;;  %v6139_v34 = vadd.f32 %v6002_v15, %v5957_v27 }
 0x260   :  { %v2710_v52 = vadd.f32 %v2534_v17, %v2262_v11  ;;  %4263 = vmatmul.msk.f32.gmra.mxu3 %vm842_vm2, %v4226_v57  ;;  %4685 = vlog2.f32 %v1561_v61  ;;  %v2297_v57 = vand.u32 2147483647, %v6133_v25  ;;  %v1403_v9 = vand.u32 2147483647, %v6127_v38  ;;  %v2204_v11 = vpop.f32.mrf.mxu0 }
 0x261   :  { %v1565_v21 = vadd.f32 1.0, %v1564_v45  ;;  %v6145_v5 = vadd.f32 %v6002_v15, %v1290_v20  ;;  %v1567_v40 = vand.u32 2147483647, %v4678_v30  ;;  %v1408_v27 = vand.u32 2147483647, %v6139_v34 }
 0x262   :  { %v4340_v22 = vadd.f32 -0.6931472, %v2710_v52  ;;  %v4680_v18 = vpop.eup %4679  ;;  %v2329_v37 = vsub.f32 0.0, %v2297_v57  ;;  %v6150_v17 = vadd.f32 %v6002_v15, %v5993_v26  ;;  %v1435_v50 = vsub.f32 0.0, %v1403_v9 }
 0x263   :  { %v2537_v52 = vmul.f32 0.6931472, %v4680_v18  ;;  %v6141_v47 = vpop.eup %4681  ;;  %v1566_v61 = vmul.f32 %v4678_v30, %v1565_v21  ;;  %v1293_v20 = vpop.f32.mrf.mxu1  ;;  %vm1568_vm10 = vcmp.lt.f32.partialorder %v1567_v40, 0.0004427343  ;;  %v1404_v45 = vand.u32 2147483647, %v6145_v5 }
 0x264   :  { %4377 = vmatmul.msk.f32.gmra.mxu2 %vm842_vm2, %v4340_v22  ;;  %v4684_v59 = vpop.eup %4683  ;;  %v1369_v22 = vmax.f32 %v6100_v8, 0.0  ;;  %v1570_v18 = vadd.f32 1.0, %v6141_v47  ;;  %v2377_v57 = vmul.f32 1.442695, %v2329_v37  ;;  %v1410_v30 = vand.u32 2147483647, %v6150_v17 }
 0x265   :  { %v2543_v42 = vsel %vm2542_vm9, %v2540_v36, %v2537_v52  ;;  %v2544_v23 = vadd.f32 1.0, %v4684_v59  ;;  %v2547_v56 = vmul.f32 -0.5, %v4684_v59  ;;  %v2550_v52 = vand.u32 2147483647, %v4684_v59 }
 0x266   :  { %v2711_v0 = vadd.f32 %v2543_v42, %v2263_v13  ;;  %v4686_v46 = vpop.eup %4685  ;;  %v6155_v13 = vpop.f32.mrf.mxu2  ;;  %v6160_v42 = vadd.f32 %v6002_v15, %v5976_v49  ;;  %v1440_v8 = vsub.f32 0.0, %v1408_v27  ;;  %v1573_v21 = vmul.f32 -0.5, %v6141_v47 }
 0x267   :  { %4687 = vlog2.f32 %v2544_v23  ;;  %v1563_v44 = vmul.f32 0.6931472, %v4686_v46  ;;  %v2548_v36 = vadd.f32 1.0, %v2547_v56  ;;  %v6167_v23 = vld [vmem:[%s7698_s4 + $0x2] ss:$0 sm:$0xff]  ;;  %v1436_v37 = vsub.f32 0.0, %v1404_v45 }
 0x268   :  { %v4341_v2 = vadd.f32 -0.6931472, %v2711_v0  ;;  %v1473_v0 = vmul.f32 1.442695, %v1435_v50  ;;  %4689 = vpow2.f32 %v2377_v57  ;;  %v6170_v56 = vadd.f32 %v6167_v23, %v2204_v11  ;;  %v2207_v50 = vpop.f32.mrf.mxu0 }
 0x269   :  { %v1569_v26 = vsel %vm1568_vm10, %v1566_v61, %v1563_v44  ;;  %v2549_v40 = vmul.f32 %v4684_v59, %v2548_v36  ;;  %4691 = vlog2.f32 %v1570_v18  ;;  %v2264_v46 = vmax.f32 %v6118_v55, 0.0 }
 0x26a   :  { %v1817_v9 = vadd.f32 %v1569_v26, %v1369_v22  ;;  %vm2551_vm11 = vcmp.lt.f32.partialorder %v2550_v52, 0.0004427343  ;;  %v6174_v27 = vadd.f32 %v6002_v15, %v1293_v20  ;;  %v1409_v59 = vand.u32 2147483647, %v6160_v42 }
 0x26b   :  { %v1442_v44 = vsub.f32 0.0, %v1410_v30  ;;  %4693 = vpow2.f32 %v1473_v0  ;;  %v1574_v22 = vadd.f32 1.0, %v1573_v21  ;;  %v2298_v11 = vand.u32 2147483647, %v6170_v56 }
 0x26c   :  { %4378 = vmatmul.msk.f32.gmra.mxu2 %vm842_vm2, %v4341_v2  ;;  %v4227_v2 = vadd.f32 -0.6931472, %v1817_v9  ;;  %v1483_v36 = vmul.f32 1.442695, %v1440_v8  ;;  %v1576_v45 = vand.u32 2147483647, %v6141_v47 }
 0x26d   :  { %v4688_v49 = vpop.eup %4687  ;;  %v1475_v52 = vmul.f32 1.442695, %v1436_v37  ;;  %v1405_v20 = vand.u32 2147483647, %v6174_v27  ;;  %v2330_v57 = vsub.f32 0.0, %v2298_v11  ;;  %v1441_v10 = vsub.f32 0.0, %v1409_v59 }
 0x26e   :  { %v2546_v61 = vmul.f32 0.6931472, %v4688_v49  ;;  %4264 = vmatmul.msk.f32.gmra.mxu3 %vm842_vm2, %v4227_v2  ;;  %v4690_v55 = vpop.eup %4689  ;;  %v1487_v30 = vmul.f32 1.442695, %v1442_v44  ;;  %v1296_v2 = vpop.f32.mrf.mxu1  ;;  %v1575_v8 = vmul.f32 %v6141_v47, %v1574_v22  ;;  %v6186_v37 = vadd.f32 %v6002_v15, %v6009_v6 }
 0x26f   :  { %v4692_v9 = vpop.eup %4691  ;;  %v2553_v49 = vadd.f32 1.0, %v4690_v55  ;;  %v2556_v33 = vmul.f32 -0.5, %v4690_v55  ;;  %v6181_v0 = vpop.f32.mrf.mxu2  ;;  %vm1577_vm12 = vcmp.lt.f32.partialorder %v1576_v45, 0.0004427343  ;;  %v1437_v44 = vsub.f32 0.0, %v1405_v20 }
 0x270   :  { %v2552_v18 = vsel %vm2551_vm11, %v2549_v40, %v2546_v61  ;;  %v1572_v16 = vmul.f32 0.6931472, %v4692_v9  ;;  %v2379_v40 = vmul.f32 1.442695, %v2330_v57  ;;  %v6193_v47 = vadd.f32 %v6167_v23, %v2207_v50 }
 0x271   :  { %v2712_v26 = vadd.f32 %v2552_v18, %v2264_v46  ;;  %v1370_v46 = vmax.f32 %v6113_v48, 0.0  ;;  %4695 = vlog2.f32 %v2553_v49  ;;  %v6189_v59 = vpop.eup %4693  ;;  %v2557_v61 = vadd.f32 1.0, %v2556_v33  ;;  %v6198_v48 = vpop.f32.mrf.mxu0 }
 0x272   :  { %4697 = vpow2.f32 %v1475_v52  ;;  %v1578_v11 = vsel %vm1577_vm12, %v1575_v8, %v1572_v16  ;;  %v2559_v18 = vand.u32 2147483647, %v4690_v55  ;;  %v6196_v6 = vadd.f32 %v6002_v15, %v1296_v2 }
 0x273   :  { %v4342_v21 = vadd.f32 -0.6931472, %v2712_v26  ;;  %v1818_v26 = vadd.f32 %v1578_v11, %v1370_v46  ;;  %4699 = vpow2.f32 %v2379_v40  ;;  %v1411_v22 = vand.u32 2147483647, %v6186_v37 }
 0x274   :  { %4701 = vpow2.f32 %v1487_v30  ;;  %v1579_v33 = vadd.f32 1.0, %v6189_v59  ;;  %v6203_v52 = vmul.f32 1.442695, %v1441_v10  ;;  %v1477_v20 = vmul.f32 1.442695, %v1437_v44 }
 0x275   :  { %4379 = vmatmul.msk.f32.gmra.mxu2 %vm842_vm2, %v4342_v21  ;;  %v4228_v45 = vadd.f32 -0.6931472, %v1818_v26  ;;  %v2558_v57 = vmul.f32 %v4690_v55, %v2557_v61  ;;  %4703 = vpow2.f32 %v1483_v36  ;;  %v2265_v50 = vmax.f32 %v6133_v25, 0.0 }
 0x276   :  { %vm6206_vm13 = vcmp.lt.f32.partialorder %v2559_v18, 0.0004427343  ;;  %v2299_v30 = vand.u32 2147483647, %v6193_v47  ;;  %v1406_v8 = vand.u32 2147483647, %v6196_v6  ;;  %v1299_v46 = vpop.f32.mrf.mxu1  ;;  %4705 = vlog2.f32 %v1579_v33 }
 0x277   :  { %v4696_v9 = vpop.eup %4695  ;;  %4265 = vmatmul.msk.f32.gmra.mxu3 %vm842_vm2, %v4228_v45  ;;  %v1582_v55 = vmul.f32 -0.5, %v6189_v59  ;;  %v1443_v40 = vsub.f32 0.0, %v1411_v22  ;;  %v6218_v61 = vpop.f32.mrf.mxu2  ;;  %4707 = vpow2.f32 %v1477_v20  ;;  %v6227_v33 = vadd.f32 %v6002_v15, %v1299_v46 }
 0x278   :  { %v6212_v2 = vpop.eup %4697  ;;  %v2555_v10 = vmul.f32 0.6931472, %v4696_v9  ;;  %v2331_v44 = vsub.f32 0.0, %v2299_v30  ;;  %v1438_v22 = vsub.f32 0.0, %v1406_v8  ;;  %v2266_v43 = vmax.f32 %v6170_v56, 0.0 }
 0x279   :  { %v4700_v36 = vpop.eup %4699  ;;  %v1588_v25 = vadd.f32 1.0, %v6212_v2  ;;  %v1583_v30 = vadd.f32 1.0, %v1582_v55  ;;  %v1489_v9 = vmul.f32 1.442695, %v1443_v40  ;;  %v1371_v40 = vmax.f32 %v6127_v38, 0.0 }
 0x27a   :  { %v2561_v11 = vsel %vm6206_vm13, %v2558_v57, %v2555_v10  ;;  %v2562_v18 = vadd.f32 1.0, %v4700_v36  ;;  %v2565_v26 = vmul.f32 -0.5, %v4700_v36  ;;  %v6222_v45 = vpop.eup %4701  ;;  %v2381_v16 = vmul.f32 1.442695, %v2331_v44 }
 0x27b   :  { %v2713_v21 = vadd.f32 %v2561_v11, %v2265_v50  ;;  %v6229_v20 = vpop.eup %4703  ;;  %v1585_v10 = vand.u32 2147483647, %v6189_v59  ;;  %v1642_v53 = vadd.f32 1.0, %v6222_v45  ;;  %v2568_v50 = vand.u32 2147483647, %v4700_v36  ;;  %v6234_v11 = vpop.f32.mrf.mxu0 }
 0x27c   :  { %4709 = vlog2.f32 %v2562_v18  ;;  %v2566_v57 = vadd.f32 1.0, %v2565_v26  ;;  %v1591_v44 = vmul.f32 -0.5, %v6212_v2  ;;  %v4706_v8 = vpop.eup %4705  ;;  %v1645_v46 = vmul.f32 -0.5, %v6222_v45 }
 0x27d   :  { %v4343_v49 = vadd.f32 -0.6931472, %v2713_v21  ;;  %4711 = vpow2.f32 %v2381_v16  ;;  %v1648_v55 = vand.u32 2147483647, %v6222_v45  ;;  %v6240_v21 = vadd.f32 %v6002_v15, %v6034_v24  ;;  %v6243_v16 = vpop.eup %4707 }
 0x27e   :  { %4713 = vlog2.f32 %v1588_v25  ;;  %v1479_v18 = vmul.f32 1.442695, %v1438_v22  ;;  %v1581_v26 = vmul.f32 0.6931472, %v4706_v8  ;;  %v1584_v1 = vmul.f32 %v6189_v59, %v1583_v30 }
 0x27f   :  { %4380 = vmatmul.msk.f32.gmra.mxu2 %vm842_vm2, %v4343_v49  ;;  %v2567_v60 = vmul.f32 %v4700_v36, %v2566_v57  ;;  %v1407_v39 = vand.u32 2147483647, %v6227_v33  ;;  %vm1586_vm14 = vcmp.lt.f32.partialorder %v1585_v10, 0.0004427343  ;;  %vm6249_vm15 = vcmp.lt.f32.partialorder %v2568_v50, 0.0004427343  ;;  %v6259_v57 = vpop.f32.mrf.mxu2 }
 0x280   :  { %v1587_v25 = vsel %vm1586_vm14, %v1584_v1, %v1581_v26  ;;  %v1592_v49 = vadd.f32 1.0, %v1591_v44  ;;  %v6255_v38 = vadd.f32 %v6167_v23, %v6198_v48  ;;  %v1412_v59 = vand.u32 2147483647, %v6240_v21 }
 0x281   :  { %v1819_v56 = vadd.f32 %v1587_v25, %v1371_v40  ;;  %v1597_v36 = vadd.f32 1.0, %v6243_v16  ;;  %v1372_v10 = vmax.f32 %v6145_v5, 0.0  ;;  %v1594_v1 = vand.u32 2147483647, %v6212_v2 }
 0x282   :  { %v4710_v7 = vpop.eup %4709  ;;  %4715 = vpow2.f32 %v1479_v18  ;;  %v2300_v28 = vand.u32 2147483647, %v6255_v38  ;;  %v1439_v40 = vsub.f32 0.0, %v1407_v39  ;;  %v1593_v25 = vmul.f32 %v6212_v2, %v1592_v49 }
 0x283   :  { %v4712_v22 = vpop.eup %4711  ;;  %v2564_v30 = vmul.f32 0.6931472, %v4710_v7  ;;  %v4229_v26 = vadd.f32 -0.6931472, %v1819_v56  ;;  %v6268_v12 = vpop.f32.mrf.mxu0  ;;  %vm1595_vm1 = vcmp.lt.f32.partialorder %v1594_v1, 0.0004427343 }
 0x284   :  { %v2571_v50 = vadd.f32 1.0, %v4712_v22  ;;  %v2574_v8 = vmul.f32 -0.5, %v4712_v22  ;;  %v4714_v44 = vpop.eup %4713  ;;  %v2332_v31 = vsub.f32 0.0, %v2300_v28  ;;  %v2577_v24 = vand.u32 2147483647, %v4712_v22 }
 0x285   :  { %v2570_v48 = vsel %vm6249_vm15, %v2567_v60, %v2564_v30  ;;  %4266 = vmatmul.msk.f32.gmra.mxu3 %vm842_vm2, %v4229_v26  ;;  %v1590_v14 = vmul.f32 0.6931472, %v4714_v44  ;;  %v1646_v60 = vadd.f32 1.0, %v1645_v46  ;;  %vm6270_vm3 = vcmp.lt.f32.partialorder %v1648_v55, 0.0004427343 }
 0x286   :  { %v2714_v7 = vadd.f32 %v2570_v48, %v2266_v43  ;;  %4717 = vlog2.f32 %v2571_v50  ;;  %v2575_v5 = vadd.f32 1.0, %v2574_v8  ;;  %v2383_v43 = vmul.f32 1.442695, %v2332_v31 }
 0x287   :  { %4719 = vlog2.f32 %v1597_v36  ;;  %v1596_v30 = vsel %vm1595_vm1, %v1593_v25, %v1590_v14  ;;  %v1444_v2 = vsub.f32 0.0, %v1412_v59  ;;  %v1481_v49 = vmul.f32 1.442695, %v1439_v40 }
 0x288   :  { %4721 = vlog2.f32 %v1642_v53  ;;  %v4344_v18 = vadd.f32 -0.6931472, %v2714_v7  ;;  %v1820_v56 = vadd.f32 %v1596_v30, %v1372_v10  ;;  %v6275_v28 = vpop.eup %4715  ;;  %v2267_v53 = vmax.f32 %v6193_v47, 0.0 }
 0x289   :  { %4723 = vpow2.f32 %v1489_v9  ;;  %v2576_v36 = vmul.f32 %v4712_v22, %v2575_v5  ;;  %v1600_v46 = vmul.f32 -0.5, %v6243_v16  ;;  %vm6280_vm0 = vcmp.lt.f32.partialorder %v2577_v24, 0.0004427343 }
 0x28a   :  { %4381 = vmatmul.msk.f32.gmra.mxu2 %vm842_vm2, %v4344_v18  ;;  %4725 = vpow2.f32 %v2383_v43  ;;  %v4230_v14 = vadd.f32 -0.6931472, %v1820_v56  ;;  %v1603_v55 = vand.u32 2147483647, %v6243_v16  ;;  %v1380_v10 = vmax.f32 %v6240_v21, 0.0 }
 0x28b   :  { %4727 = vpow2.f32 %v6203_v52  ;;  %v1601_v8 = vadd.f32 1.0, %v1600_v46  ;;  %v6288_v47 = vadd.f32 %v6167_v23, %v6234_v11  ;;  %v1647_v1 = vmul.f32 %v6222_v45, %v1646_v60  ;;  %v6291_v52 = vpop.f32.mrf.mxu2  ;;  %v2219_v18 = vpop.f32.mrf.mxu0 }
 0x28c   :  { %v4718_v9 = vpop.eup %4717  ;;  %4729 = vpow2.f32 %v1481_v49  ;;  %v1606_v48 = vadd.f32 1.0, %v6275_v28  ;;  %v1491_v7 = vmul.f32 1.442695, %v1444_v2  ;;  %v1609_v25 = vmul.f32 -0.5, %v6275_v28 }
 0x28d   :  { %v4720_v59 = vpop.eup %4719  ;;  %v2573_v50 = vmul.f32 0.6931472, %v4718_v9  ;;  %4267 = vmatmul.msk.f32.gmra.mxu3 %vm842_vm2, %v4230_v14  ;;  %v1602_v11 = vmul.f32 %v6243_v16, %v1601_v8  ;;  %vm1604_vm4 = vcmp.lt.f32.partialorder %v1603_v55, 0.0004427343  ;;  %v2301_v45 = vand.u32 2147483647, %v6288_v47 }
 0x28e   :  { %v4722_v22 = vpop.eup %4721  ;;  %v1599_v44 = vmul.f32 0.6931472, %v4720_v59  ;;  %4731 = vlog2.f32 %v1606_v48  ;;  %v6304_v30 = vadd.f32 %v6002_v15, %v6058_v29  ;;  %v1373_v43 = vmax.f32 %v6174_v27, 0.0 }
 0x28f   :  { %v6294_v26 = vpop.eup %4723  ;;  %v2579_v40 = vsel %vm6280_vm0, %v2576_v36, %v2573_v50  ;;  %v1644_v60 = vmul.f32 0.6931472, %v4722_v22  ;;  %4733 = vpow2.f32 %v1491_v7  ;;  %v2333_v9 = vsub.f32 0.0, %v2301_v45 }
 0x290   :  { %v2715_v5 = vadd.f32 %v2579_v40, %v2267_v53  ;;  %v4726_v24 = vpop.eup %4725  ;;  %v1605_v2 = vsel %vm1604_vm4, %v1602_v11, %v1599_v44  ;;  %v1651_v16 = vadd.f32 1.0, %v6294_v26  ;;  %v1610_v31 = vadd.f32 1.0, %v1609_v25 }
 0x291   :  { %v6307_v49 = vpop.eup %4727  ;;  %v2580_v53 = vadd.f32 1.0, %v4726_v24  ;;  %v2583_v36 = vmul.f32 -0.5, %v4726_v24  ;;  %v1821_v46 = vadd.f32 %v1605_v2, %v1373_v43  ;;  %v1654_v55 = vmul.f32 -0.5, %v6294_v26 }
 0x292   :  { %v4345_v56 = vadd.f32 -0.6931472, %v2715_v5  ;;  %v6310_v14 = vpop.eup %4729  ;;  %v1657_v15 = vand.u32 2147483647, %v6294_v26  ;;  %v1650_v27 = vsel %vm6270_vm3, %v1647_v1, %v1644_v60  ;;  %v2385_v50 = vmul.f32 1.442695, %v2333_v9 }
 0x293   :  { %4735 = vlog2.f32 %v2580_v53  ;;  %v2584_v29 = vadd.f32 1.0, %v2583_v36  ;;  %v4231_v59 = vadd.f32 -0.6931472, %v1821_v46  ;;  %v1612_v8 = vand.u32 2147483647, %v6275_v28  ;;  %v6329_v60 = vpop.f32.mrf.mxu2  ;;  %v2222_v9 = vpop.f32.mrf.mxu0 }
 0x294   :  { %4382 = vmatmul.msk.f32.gmra.mxu2 %vm842_vm2, %v4345_v56  ;;  %v4732_v22 = vpop.eup %4731  ;;  %v1413_v48 = vand.u32 2147483647, %v6304_v30  ;;  %v2586_v7 = vand.u32 2147483647, %v4726_v24  ;;  %v6322_v40 = vadd.f32 %v6167_v23, %v6268_v12  ;;  %4737 = vpow2.f32 %v2385_v50 }
 0x295   :  { %4268 = vmatmul.msk.f32.gmra.mxu3 %vm842_vm2, %v4231_v59  ;;  %v1608_v11 = vmul.f32 0.6931472, %v4732_v22  ;;  %v1611_v39 = vmul.f32 %v6275_v28, %v1610_v31  ;;  %v1615_v1 = vadd.f32 1.0, %v6310_v14  ;;  %v7826_v25 = vmax.f32 %v6150_v17, 0.0  ;;  %v6332_v2 = vpop.eup %4733 }
 0x296   :  { %v1655_v45 = vadd.f32 1.0, %v1654_v55  ;;  %v1374_v43 = vmax.f32 %v6196_v6, 0.0  ;;  %vm1613_vm5 = vcmp.lt.f32.partialorder %v1612_v8, 0.0004427343  ;;  %v2585_v12 = vmul.f32 %v4726_v24, %v2584_v29 }
 0x297   :  { %v1826_v5 = vadd.f32 %v1650_v27, %v7826_v25  ;;  %v1614_v56 = vsel %vm1613_vm5, %v1611_v39, %v1608_v11  ;;  %v2302_v53 = vand.u32 2147483647, %v6322_v40  ;;  %4739 = vlog2.f32 %v1615_v1 }
 0x298   :  { %4741 = vlog2.f32 %v1651_v16  ;;  %v2268_v28 = vmax.f32 %v6255_v38, 0.0  ;;  %vm6336_vm6 = vcmp.lt.f32.partialorder %v2586_v7, 0.0004427343  ;;  %v1822_v46 = vadd.f32 %v1614_v56, %v1374_v43 }
 0x299   :  { %v4736_v36 = vpop.eup %4735  ;;  %v1445_v31 = vsub.f32 0.0, %v1413_v48  ;;  %v2334_v55 = vsub.f32 0.0, %v2302_v53  ;;  %v1618_v27 = vmul.f32 -0.5, %v6310_v14  ;;  %v6341_v24 = vadd.f32 -0.6931472, %v1826_v5 }
 0x29a   :  { %v2582_v6 = vmul.f32 0.6931472, %v4736_v36  ;;  %v6344_v29 = vmul.f32 %v6294_v26, %v1655_v45  ;;  %v4232_v59 = vadd.f32 -0.6931472, %v1822_v46  ;;  %v6347_v16 = vadd.f32 %v6167_v23, %v2219_v18  ;;  %v4738_v38 = vpop.eup %4737 }
 0x29b   :  { %v1660_v50 = vadd.f32 1.0, %v6332_v2  ;;  %v2387_v22 = vmul.f32 1.442695, %v2334_v55  ;;  %v1619_v48 = vadd.f32 1.0, %v1618_v27  ;;  %v2589_v11 = vadd.f32 1.0, %v4738_v38 }
 0x29c   :  { %v2588_v8 = vsel %vm6336_vm6, %v2585_v12, %v2582_v6  ;;  %v2592_v39 = vmul.f32 -0.5, %v4738_v38  ;;  %v1621_v1 = vand.u32 2147483647, %v6310_v14  ;;  %v6354_v5 = vmul.f32 -0.5, %v6332_v2  ;;  %v6361_v12 = vld [vmem:[%s7698_s4 + $0x1] ss:$0 sm:$0xff]  ;;  %v6369_v6 = vpop.f32.mrf.mxu2 }
 0x29d   :  { %v2716_v7 = vadd.f32 %v2588_v8, %v2268_v28  ;;  %v4740_v25 = vpop.eup %4739  ;;  %v1493_v45 = vmul.f32 1.442695, %v1445_v31  ;;  %4269 = vmatmul.msk.f32.gmra.mxu3 %vm842_vm2, %v4232_v59  ;;  %4743 = vpow2.f32 %v2387_v22  ;;  %v2303_v18 = vand.u32 2147483647, %v6347_v16 }
 0x29e   :  { %v4742_v43 = vpop.eup %4741  ;;  %v6365_v56 = vadd.f32 %v6361_v12, %v6077_v3  ;;  %v1375_v53 = vmax.f32 %v6227_v33, 0.0  ;;  %4745 = vlog2.f32 %v2589_v11  ;;  %v2593_v28 = vadd.f32 1.0, %v2592_v39  ;;  %v2225_v3 = vpop.f32.mrf.mxu0 }
 0x29f   :  { %v4346_v36 = vadd.f32 -0.6931472, %v2716_v7  ;;  %v1617_v17 = vmul.f32 0.6931472, %v4740_v25  ;;  %v1620_v46 = vmul.f32 %v6310_v14, %v1619_v48  ;;  %v2335_v31 = vsub.f32 0.0, %v2303_v18 }
 0x2a0   :  { %v2595_v55 = vand.u32 2147483647, %v4738_v38  ;;  %vm1622_vm7 = vcmp.lt.f32.partialorder %v1621_v1, 0.0004427343  ;;  %v1624_v27 = vadd.f32 1.0, %v6229_v20  ;;  %v1627_v59 = vmul.f32 -0.5, %v6229_v20 }
 0x2a1   :  { %4383 = vmatmul.msk.f32.gmra.mxu2 %vm842_vm2, %v4346_v36  ;;  %v6374_v8 = vmul.f32 0.6931472, %v4742_v43  ;;  %v1623_v33 = vsel %vm1622_vm7, %v1620_v46, %v1617_v17  ;;  %v2389_v22 = vmul.f32 1.442695, %v2335_v31  ;;  %v6377_v7 = vadd.f32 %v6167_v23, %v2222_v9 }
 0x2a2   :  { %v1414_v14 = vand.u32 2147483647, %v6365_v56  ;;  %v1823_v48 = vadd.f32 %v1623_v33, %v1375_v53  ;;  %4747 = vlog2.f32 %v1624_v27  ;;  %v1628_v11 = vadd.f32 1.0, %v1627_v59 }
 0x2a3   :  { %v4744_v39 = vpop.eup %4743  ;;  %v2269_v1 = vmax.f32 %v6288_v47, 0.0  ;;  %v2594_v25 = vmul.f32 %v4738_v38, %v2593_v28  ;;  %4749 = vpow2.f32 %v2389_v22  ;;  %v2304_v18 = vand.u32 2147483647, %v6377_v7 }
 0x2a4   :  { %v4746_v36 = vpop.eup %4745  ;;  %vm6382_vm8 = vcmp.lt.f32.partialorder %v2595_v55, 0.0004427343  ;;  %v2598_v17 = vadd.f32 1.0, %v4744_v39  ;;  %v2601_v9 = vmul.f32 -0.5, %v4744_v39  ;;  %v1630_v46 = vand.u32 2147483647, %v6229_v20 }
 0x2a5   :  { %4751 = vlog2.f32 %v1660_v50  ;;  %v2591_v53 = vmul.f32 0.6931472, %v4746_v36  ;;  %v4233_v31 = vadd.f32 -0.6931472, %v1823_v48  ;;  %v2336_v27 = vsub.f32 0.0, %v2304_v18 }
 0x2a6   :  { %4753 = vlog2.f32 %v2598_v17  ;;  %v2602_v59 = vadd.f32 1.0, %v2601_v9  ;;  %v2604_v47 = vand.u32 2147483647, %v4744_v39  ;;  %v1629_v38 = vmul.f32 %v6229_v20, %v1628_v11  ;;  %v2228_v36 = vpop.f32.mrf.mxu0 }
 0x2a7   :  { %v2597_v28 = vsel %vm6382_vm8, %v2594_v25, %v2591_v53  ;;  %4270 = vmatmul.msk.f32.gmra.mxu3 %vm842_vm2, %v4233_v31  ;;  %v2391_v55 = vmul.f32 1.442695, %v2336_v27  ;;  %v1633_v33 = vadd.f32 1.0, %v6307_v49  ;;  %v1636_v22 = vmul.f32 -0.5, %v6307_v49 }
 0x2a8   :  { %v4748_v44 = vpop.eup %4747  ;;  %4755 = vpow2.f32 %v1493_v45  ;;  %v1446_v50 = vsub.f32 0.0, %v1414_v14  ;;  %v2717_v48 = vadd.f32 %v2597_v28, %v2269_v1  ;;  %vm6393_vm9 = vcmp.lt.f32.partialorder %v1630_v46, 0.0004427343  ;;  %v6407_v14 = vpop.f32.mrf.mxu2 }
 0x2a9   :  { %v4750_v20 = vpop.eup %4749  ;;  %vm6399_vm10 = vcmp.lt.f32.partialorder %v1657_v15, 0.0004427343  ;;  %v2270_v25 = vmax.f32 %v6322_v40, 0.0  ;;  %v1626_v43 = vmul.f32 0.6931472, %v4748_v44  ;;  %4757 = vpow2.f32 %v2391_v55 }
 0x2aa   :  { %v6405_v45 = vadd.f32 %v6167_v23, %v2225_v3  ;;  %v4347_v1 = vadd.f32 -0.6931472, %v2717_v48  ;;  %vm6409_vm11 = vcmp.lt.f32.partialorder %v2604_v47, 0.0004427343  ;;  %v2607_v9 = vadd.f32 1.0, %v4750_v20 }
 0x2ab   :  { %v2610_v26 = vmul.f32 -0.5, %v4750_v20  ;;  %v6413_v15 = vpop.eup %4751  ;;  %v2603_v46 = vmul.f32 %v4744_v39, %v2602_v59  ;;  %v1632_v40 = vsel %vm6393_vm9, %v1629_v38, %v1626_v43  ;;  %4759 = vlog2.f32 %v1633_v33 }
 0x2ac   :  { %v1637_v44 = vadd.f32 1.0, %v1636_v22  ;;  %v4754_v53 = vpop.eup %4753  ;;  %4761 = vlog2.f32 %v2607_v9  ;;  %v2613_v3 = vand.u32 2147483647, %v4750_v20  ;;  %v7837_v31 = vmax.f32 %v6139_v34, 0.0  ;;  %4384 = vmatmul.msk.f32.gmra.mxu2 %vm842_vm2, %v4347_v1 }
 0x2ad   :  { %v1639_v47 = vand.u32 2147483647, %v6307_v49  ;;  %v1664_v28 = vadd.f32 1.0, %v6354_v5  ;;  %v2600_v55 = vmul.f32 0.6931472, %v4754_v53  ;;  %v2611_v48 = vadd.f32 1.0, %v2610_v26 }
 0x2ae   :  { %v1824_v27 = vadd.f32 %v1632_v40, %v7837_v31  ;;  %v2305_v39 = vand.u32 2147483647, %v6405_v45  ;;  %v6423_v59 = vpop.eup %4755  ;;  %v1495_v38 = vmul.f32 1.442695, %v1446_v50  ;;  %v6427_v33 = vadd.f32 %v6361_v12, %v6085_v58 }
 0x2af   :  { %v6430_v34 = vadd.f32 %v6167_v23, %v2228_v36  ;;  %v4758_v18 = vpop.eup %4757  ;;  %v2606_v43 = vsel %vm6409_vm11, %v2603_v46, %v2600_v55  ;;  %v2271_v5 = vmax.f32 %v6347_v16, 0.0  ;;  %v1638_v1 = vmul.f32 %v6307_v49, %v1637_v44  ;;  %v2231_v36 = vpop.f32.mrf.mxu0 }
 0x2b0   :  { %v4234_v22 = vadd.f32 -0.6931472, %v1824_v27  ;;  %v2337_v9 = vsub.f32 0.0, %v2305_v39  ;;  %v2718_v26 = vadd.f32 %v2606_v43, %v2270_v25  ;;  %v2616_v50 = vadd.f32 1.0, %v4758_v18 }
 0x2b1   :  { %v2619_v40 = vmul.f32 -0.5, %v4758_v18  ;;  %vm6437_vm12 = vcmp.lt.f32.partialorder %v1639_v47, 0.0004427343  ;;  %v4760_v53 = vpop.eup %4759  ;;  %v2612_v31 = vmul.f32 %v4750_v20, %v2611_v48  ;;  %vm6441_vm13 = vcmp.lt.f32.partialorder %v2613_v3, 0.0004427343 }
 0x2b2   :  { %4271 = vmatmul.msk.f32.gmra.mxu3 %vm842_vm2, %v4234_v22  ;;  %v2393_v16 = vmul.f32 1.442695, %v2337_v9  ;;  %v2306_v49 = vand.u32 2147483647, %v6430_v34  ;;  %v4762_v46 = vpop.eup %4761  ;;  %v4348_v25 = vadd.f32 -0.6931472, %v2718_v26  ;;  %4763 = vlog2.f32 %v2616_v50  ;;  %v6454_v22 = vpop.f32.mrf.mxu2 }
 0x2b3   :  { %v2620_v44 = vadd.f32 1.0, %v2619_v40  ;;  %v2622_v27 = vand.u32 2147483647, %v4758_v18  ;;  %v2609_v55 = vmul.f32 0.6931472, %v4762_v46  ;;  %v1659_v20 = vsel %vm6399_vm10, %v6344_v29, %v6374_v8 }
 0x2b4   :  { %v1635_v47 = vmul.f32 0.6931472, %v4760_v53  ;;  %4765 = vpow2.f32 %v2393_v16  ;;  %v2338_v39 = vsub.f32 0.0, %v2306_v49  ;;  %v6451_v3 = vmul.f32 %v6332_v2, %v1664_v28  ;;  %4385 = vmatmul.msk.f32.gmra.mxu2 %vm842_vm2, %v4348_v25 }
 0x2b5   :  { %v1666_v48 = vand.u32 2147483647, %v6332_v2  ;;  %v6458_v43 = vadd.f32 %v6167_v23, %v2231_v36  ;;  %v1669_v9 = vadd.f32 1.0, %v6423_v59  ;;  %v2615_v26 = vsel %vm6441_vm13, %v2612_v31, %v2609_v55 }
 0x2b6   :  { %v1641_v29 = vsel %vm6437_vm12, %v1638_v1, %v1635_v47  ;;  %v2395_v8 = vmul.f32 1.442695, %v2338_v39  ;;  %4767 = vpow2.f32 %v1495_v38  ;;  %v2719_v11 = vadd.f32 %v2615_v26, %v2271_v5 }
 0x2b7   :  { %v7842_v2 = vmax.f32 %v6160_v42, 0.0  ;;  %v2307_v50 = vand.u32 2147483647, %v6458_v43  ;;  %v1415_v40 = vand.u32 2147483647, %v6427_v33  ;;  %v2621_v36 = vmul.f32 %v4758_v18, %v2620_v44  ;;  %v2234_v5 = vpop.f32.mrf.mxu0 }
 0x2b8   :  { %vm6469_vm14 = vcmp.lt.f32.partialorder %v2622_v27, 0.0004427343  ;;  %4769 = vpow2.f32 %v2395_v8  ;;  %v4764_v31 = vpop.eup %4763  ;;  %v4349_v17 = vadd.f32 -0.6931472, %v2719_v11  ;;  %v2272_v1 = vmax.f32 %v6377_v7, 0.0 }
 0x2b9   :  { %v1825_v28 = vadd.f32 %v1641_v29, %v7842_v2  ;;  %v2339_v38 = vsub.f32 0.0, %v2307_v50  ;;  %v6475_v42 = vmul.f32 0.6931472, %v6413_v15  ;;  %v1672_v49 = vmul.f32 -0.5, %v6423_v59 }
 0x2ba   :  { %v4766_v16 = vpop.eup %4765  ;;  %v2618_v46 = vmul.f32 0.6931472, %v4764_v31  ;;  %v6479_v18 = vadd.f32 %v6167_v23, %v2234_v5  ;;  %4771 = vlog2.f32 %v1669_v9  ;;  %v1447_v7 = vsub.f32 0.0, %v1415_v40  ;;  %v6499_v40 = vpop.f32.mrf.mxu2 }
 0x2bb   :  { %v4235_v58 = vadd.f32 -0.6931472, %v1825_v28  ;;  %v2625_v25 = vadd.f32 1.0, %v4766_v16  ;;  %v2628_v44 = vmul.f32 -0.5, %v4766_v16  ;;  %v2397_v27 = vmul.f32 1.442695, %v2339_v38 }
 0x2bc   :  { %v6484_v55 = vadd.f32 %v6361_v12, %v6094_v62  ;;  %v2624_v15 = vsel %vm6469_vm14, %v2621_v36, %v2618_v46  ;;  %v2308_v47 = vand.u32 2147483647, %v6479_v18  ;;  %v6489_v39 = vpop.eup %4767  ;;  %vm6491_vm15 = vcmp.lt.f32.partialorder %v1666_v48, 0.0004427343  ;;  %4386 = vmatmul.msk.f32.gmra.mxu2 %vm842_vm2, %v4349_v17  ;;  %7848 = vst [vmem:[#allocation32_spill] sm:$0xff] %v6499_v40 }
 0x2bd   :  { %4272 = vmatmul.msk.f32.gmra.mxu3 %vm842_vm2, %v4235_v58  ;;  %v1675_v9 = vand.u32 2147483647, %v6423_v59  ;;  %v2720_v29 = vadd.f32 %v2624_v15, %v2272_v1  ;;  %4773 = vlog2.f32 %v2625_v25  ;;  %v7847_v62 = vmax.f32 %v6186_v37, 0.0  ;;  %v4464_v40 = vld [vmem:[%s7700_s6] ss:$0 sm:$0xff] }
 0x2be   :  { %v4770_v8 = vpop.eup %4769  ;;  %v2629_v2 = vadd.f32 1.0, %v2628_v44  ;;  %4775 = vpow2.f32 %v2397_v27  ;;  %v2340_v28 = vsub.f32 0.0, %v2308_v47  ;;  %v1673_v50 = vadd.f32 1.0, %v1672_v49 }
 0x2bf   :  { %v1827_v11 = vadd.f32 %v1659_v20, %v7847_v62  ;;  %v2631_v48 = vand.u32 2147483647, %v4766_v16  ;;  %v2634_v36 = vadd.f32 1.0, %v4770_v8  ;;  %v2637_v53 = vmul.f32 -0.5, %v4770_v8  ;;  %v2237_v49 = vpop.f32.mrf.mxu0 }
 0x2c0   :  { %v1668_v31 = vsel %vm6491_vm15, %v6451_v3, %v6475_v42  ;;  %v1497_v1 = vmul.f32 1.442695, %v1447_v7  ;;  %v1416_v17 = vand.u32 2147483647, %v6484_v55  ;;  %v2399_v58 = vmul.f32 1.442695, %v2340_v28  ;;  %v4772_v37 = vpop.eup %4771 }
 0x2c1   :  { %vm6506_vm1 = vcmp.lt.f32.partialorder %v1675_v9, 0.0004427343  ;;  %v1678_v38 = vadd.f32 1.0, %v6489_v39  ;;  %v4350_v5 = vadd.f32 -0.6931472, %v2720_v29  ;;  %4777 = vlog2.f32 %v2634_v36 }
 0x2c2   :  { %v2630_v46 = vmul.f32 %v4766_v16, %v2629_v2  ;;  %v2638_v25 = vadd.f32 1.0, %v2637_v53  ;;  %4779 = vpow2.f32 %v2399_v58  ;;  %v6512_v44 = vadd.f32 %v6167_v23, %v2237_v49  ;;  %v6558_v20 = vpop.f32.mrf.mxu3 }
 0x2c3   :  { %v4774_v3 = vpop.eup %4773  ;;  %v1674_v42 = vmul.f32 %v6423_v59, %v1673_v50  ;;  %v2273_v27 = vmax.f32 %v6405_v45, 0.0  ;;  %vm6516_vm3 = vcmp.lt.f32.partialorder %v2631_v48, 0.0004427343  ;;  %v2640_v15 = vand.u32 2147483647, %v4770_v8 }
 0x2c4   :  { %v4776_v47 = vpop.eup %4775  ;;  %4781 = vpow2.f32 %v1497_v1  ;;  %v1448_v16 = vsub.f32 0.0, %v1416_v17  ;;  %v2627_v26 = vmul.f32 0.6931472, %v4774_v3  ;;  %v2309_v9 = vand.u32 2147483647, %v6512_v44  ;;  %4387 = vmatmul.msk.f32.gmra.mxu2 %vm842_vm2, %v4350_v5  ;;  %v6539_v5 = vpop.f32.mrf.mxu2 }
 0x2c5   :  { %4273 = vmatmul.msk.f32.gmra.mxu3 %vm842_vm2, %v6341_v24  ;;  %v1671_v29 = vmul.f32 0.6931472, %v4772_v37  ;;  %4783 = vlog2.f32 %v1678_v38  ;;  %v1681_v59 = vmul.f32 -0.5, %v6489_v39  ;;  %v2643_v62 = vadd.f32 1.0, %v4776_v47  ;;  %7855 = vst [vmem:[#allocation33_spill] sm:$0xff] %v6539_v5  ;;  %v3223_v5 = vld [vmem:[%s7702_s8] sm:$0xff] }
 0x2c6   :  { %v2633_v45 = vsel %vm6516_vm3, %v2630_v46, %v2627_v26  ;;  %v2639_v2 = vmul.f32 %v4770_v8, %v2638_v25  ;;  %v2646_v28 = vmul.f32 -0.5, %v4776_v47  ;;  %v2341_v24 = vsub.f32 0.0, %v2309_v9 }
 0x2c7   :  { %v4778_v50 = vpop.eup %4777  ;;  %v6529_v48 = vadd.f32 %v6361_v12, %v6108_v54  ;;  %v2721_v36 = vadd.f32 %v2633_v45, %v2273_v27  ;;  %vm6531_vm0 = vcmp.lt.f32.partialorder %v2640_v15, 0.0004427343  ;;  %4785 = vlog2.f32 %v2643_v62  ;;  %v2240_v25 = vpop.f32.mrf.mxu0 }
 0x2c8   :  { %v6535_v1 = vpop.eup %4779  ;;  %v1828_v17 = vadd.f32 %v1668_v31, %v1380_v10  ;;  %v1499_v58 = vmul.f32 1.442695, %v1448_v16  ;;  %v2636_v8 = vmul.f32 0.6931472, %v4778_v50  ;;  %v2401_v37 = vmul.f32 1.442695, %v2341_v24 }
 0x2c9   :  { %v4237_v38 = vadd.f32 -0.6931472, %v1827_v11  ;;  %v4351_v49 = vadd.f32 -0.6931472, %v2721_v36  ;;  %v2274_v54 = vmax.f32 %v6430_v34, 0.0  ;;  %v2652_v46 = vadd.f32 1.0, %v6535_v1 }
 0x2ca   :  { %v6543_v3 = vpop.eup %4781  ;;  %v1382_v27 = vmax.f32 %v6365_v56, 0.0  ;;  %v2642_v21 = vsel %vm6531_vm0, %v2639_v2, %v2636_v8  ;;  %v2647_v10 = vadd.f32 1.0, %v2646_v28  ;;  %4787 = vpow2.f32 %v2401_v37 }
 0x2cb   :  { %v4784_v31 = vpop.eup %4783  ;;  %v1677_v11 = vsel %vm6506_vm1, %v1674_v42, %v1671_v29  ;;  %v1417_v7 = vand.u32 2147483647, %v6529_v48  ;;  %v2649_v34 = vand.u32 2147483647, %v4776_v47  ;;  %v6553_v15 = vadd.f32 %v6167_v23, %v2240_v25 }
 0x2cc   :  { %v4238_v16 = vadd.f32 -0.6931472, %v1828_v17  ;;  %v1682_v26 = vadd.f32 1.0, %v1681_v59  ;;  %v1684_v9 = vand.u32 2147483647, %v6489_v39  ;;  %4789 = vpow2.f32 %v1499_v58  ;;  %4388 = vmatmul.msk.f32.gmra.mxu2 %vm842_vm2, %v4351_v49 }
 0x2cd   :  { %4274 = vmatmul.msk.f32.gmra.mxu3 %vm842_vm2, %v4237_v38  ;;  %v4786_v62 = vpop.eup %4785  ;;  %v1687_v45 = vadd.f32 1.0, %v6543_v3  ;;  %v2722_v2 = vadd.f32 %v2642_v21, %v2274_v54  ;;  %4791 = vlog2.f32 %v2652_v46  ;;  %v2310_v42 = vand.u32 2147483647, %v6553_v15 }
 0x2ce   :  { %v7856_v29 = vmax.f32 %v6304_v30, 0.0  ;;  %v2645_v28 = vmul.f32 0.6931472, %v4786_v62  ;;  %v2648_v24 = vmul.f32 %v4776_v47, %v2647_v10  ;;  %v2655_v59 = vmul.f32 -0.5, %v6535_v1  ;;  %v4918_v10 = vld [vmem:[%s7698_s4 + $0x2] ss:$0 sm:$0xff] }
 0x2cf   :  { %v1449_v50 = vsub.f32 0.0, %v1417_v7  ;;  %v6566_v36 = vadd.f32 %v6361_v12, %v6120_v51  ;;  %vm6568_vm4 = vcmp.lt.f32.partialorder %v2649_v34, 0.0004427343  ;;  %v2342_v17 = vsub.f32 0.0, %v2310_v42  ;;  %v2243_v54 = vpop.f32.mrf.mxu0  ;;  %v6596_v34 = vpop.f32.mrf.mxu2 }
 0x2d0   :  { %v1829_v23 = vadd.f32 %v1677_v11, %v7856_v29  ;;  %v6572_v58 = vpop.eup %4787  ;;  %v6574_v8 = vmul.f32 0.6931472, %v4784_v31  ;;  %v6577_v30 = vmul.f32 %v6489_v39, %v1682_v26  ;;  %vm6579_vm5 = vcmp.lt.f32.partialorder %v1684_v9, 0.0004427343  ;;  %7861 = vst [vmem:[#allocation34_spill] sm:$0xff] %v6596_v34 }
 0x2d1   :  { %v1690_v37 = vmul.f32 -0.5, %v6543_v3  ;;  %4793 = vlog2.f32 %v1687_v45  ;;  %v4352_v51 = vadd.f32 -0.6931472, %v2722_v2  ;;  %v2275_v38 = vmax.f32 %v6458_v43, 0.0 }
 0x2d2   :  { %v2661_v49 = vadd.f32 1.0, %v6572_v58  ;;  %v6586_v46 = vpop.eup %4789  ;;  %v2651_v25 = vsel %vm6568_vm4, %v2648_v24, %v2645_v28  ;;  %v2656_v39 = vadd.f32 1.0, %v2655_v59  ;;  %v2403_v21 = vmul.f32 1.442695, %v2342_v17  ;;  %v6614_v17 = vpop.f32.mrf.mxu3 }
 0x2d3   :  { %v6593_v31 = vadd.f32 %v4918_v10, %v2243_v54  ;;  %v4792_v11 = vpop.eup %4791  ;;  %v1501_v7 = vmul.f32 1.442695, %v1449_v50  ;;  %v1418_v43 = vand.u32 2147483647, %v6566_v36  ;;  %v2658_v26 = vand.u32 2147483647, %v6535_v1 }
 0x2d4   :  { %v4239_v9 = vadd.f32 -0.6931472, %v1829_v23  ;;  %v1383_v62 = vmax.f32 %v6427_v33, 0.0  ;;  %v1691_v45 = vadd.f32 1.0, %v1690_v37  ;;  %4795 = vpow2.f32 %v2403_v21  ;;  %4389 = vmatmul.msk.f32.gmra.mxu2 %vm842_vm2, %v4352_v51 }
 0x2d5   :  { %4275 = vmatmul.msk.f32.gmra.mxu3 %vm842_vm2, %v4238_v16  ;;  %v1696_v2 = vadd.f32 1.0, %v6586_v46  ;;  %v2723_v42 = vadd.f32 %v2651_v25, %v2275_v38  ;;  %4797 = vlog2.f32 %v2661_v49  ;;  %v2311_v29 = vand.u32 2147483647, %v6593_v31 }
 0x2d6   :  { %v1686_v16 = vsel %vm6579_vm5, %v6577_v30, %v6574_v8  ;;  %v2654_v28 = vmul.f32 0.6931472, %v4792_v11  ;;  %v2657_v23 = vmul.f32 %v6535_v1, %v2656_v39  ;;  %v2664_v24 = vmul.f32 -0.5, %v6572_v58 }
 0x2d7   :  { %v4794_v59 = vpop.eup %4793  ;;  %4799 = vpow2.f32 %v1501_v7  ;;  %v1450_v50 = vsub.f32 0.0, %v1418_v43  ;;  %vm6610_vm6 = vcmp.lt.f32.partialorder %v2658_v26, 0.0004427343  ;;  %v2343_v37 = vsub.f32 0.0, %v2311_v29  ;;  %v2246_v54 = vpop.f32.mrf.mxu0 }
 0x2d8   :  { %v1692_v51 = vmul.f32 %v6543_v3, %v1691_v45  ;;  %v1693_v47 = vand.u32 2147483647, %v6543_v3  ;;  %v1699_v8 = vmul.f32 -0.5, %v6586_v46  ;;  %v6621_v1 = vadd.f32 %v6361_v12, %v6129_v35  ;;  %v6644_v29 = vpop.f32.mrf.mxu2 }
 0x2d9   :  { %4801 = vlog2.f32 %v1696_v2  ;;  %v4353_v30 = vadd.f32 -0.6931472, %v2723_v42  ;;  %v2276_v38 = vmax.f32 %v6479_v18, 0.0  ;;  %v2405_v49 = vmul.f32 1.442695, %v2343_v37  ;;  %7866 = vst [vmem:[#allocation35_spill] sm:$0xff] %v6644_v29 }
 0x2da   :  { %v6624_v25 = vpop.eup %4795  ;;  %v1689_v39 = vmul.f32 0.6931472, %v4794_v59  ;;  %v2660_v21 = vsel %vm6610_vm6, %v2657_v23, %v2654_v28  ;;  %v2665_v11 = vadd.f32 1.0, %v2664_v24  ;;  %v6628_v3 = vadd.f32 %v4918_v10, %v2246_v54  ;;  %v3224_v29 = vld [vmem:[%s7702_s8 + $0x8] sm:$0xff] }
 0x2db   :  { %v4798_v7 = vpop.eup %4797  ;;  %v1503_v43 = vmul.f32 1.442695, %v1450_v50  ;;  %v2667_v35 = vand.u32 2147483647, %v6572_v58  ;;  %v2670_v26 = vadd.f32 1.0, %v6624_v25  ;;  %4803 = vpow2.f32 %v2405_v49 }
 0x2dc   :  { %vm6633_vm7 = vcmp.lt.f32.partialorder %v1693_v47, 0.0004427343  ;;  %v1419_v45 = vand.u32 2147483647, %v6621_v1  ;;  %v2312_v2 = vand.u32 2147483647, %v6628_v3  ;;  %v1830_v10 = vadd.f32 %v1686_v16, %v1382_v27  ;;  %4390 = vmatmul.msk.f32.gmra.mxu2 %vm842_vm2, %v4353_v30 }
 0x2dd   :  { %4276 = vmatmul.msk.f32.gmra.mxu3 %vm842_vm2, %v4239_v9  ;;  %v6639_v42 = vpop.eup %4799  ;;  %v1702_v9 = vand.u32 2147483647, %v6586_v46  ;;  %v2724_v28 = vadd.f32 %v2660_v21, %v2276_v38  ;;  %4805 = vlog2.f32 %v2670_v26  ;;  %v2663_v23 = vmul.f32 0.6931472, %v4798_v7 }
 0x2de   :  { %v2666_v24 = vmul.f32 %v6572_v58, %v2665_v11  ;;  %v2673_v59 = vmul.f32 -0.5, %v6624_v25  ;;  %v2344_v50 = vsub.f32 0.0, %v2312_v2  ;;  %v1695_v37 = vsel %vm6633_vm7, %v1692_v51, %v1689_v39 }
 0x2df   :  { %v4802_v53 = vpop.eup %4801  ;;  %v1700_v56 = vadd.f32 1.0, %v1699_v8  ;;  %4807 = vpow2.f32 %v1503_v43  ;;  %vm6651_vm8 = vcmp.lt.f32.partialorder %v2667_v35, 0.0004427343  ;;  %v1705_v16 = vadd.f32 1.0, %v6639_v42  ;;  %v6663_v8 = vpop.f32.mrf.mxu3 }
 0x2e0   :  { %v1451_v47 = vsub.f32 0.0, %v1419_v45  ;;  %v6658_v30 = vadd.f32 %v6361_v12, %v6155_v13  ;;  %v2407_v58 = vmul.f32 1.442695, %v2344_v50  ;;  %v4240_v49 = vadd.f32 -0.6931472, %v1830_v10 }
 0x2e1   :  { %v6660_v38 = vpop.eup %4803  ;;  %v4354_v54 = vadd.f32 -0.6931472, %v2724_v28  ;;  %v2277_v51 = vmax.f32 %v6512_v44, 0.0  ;;  %v2669_v39 = vsel %vm6651_vm8, %v2666_v24, %v2663_v23  ;;  %v2674_v21 = vadd.f32 1.0, %v2673_v59  ;;  %v6687_v59 = vpop.f32.mrf.mxu2 }
 0x2e2   :  { %v2679_v11 = vadd.f32 1.0, %v6660_v38  ;;  %4809 = vpow2.f32 %v2407_v58  ;;  %v1831_v13 = vadd.f32 %v1695_v37, %v1383_v62  ;;  %v1698_v43 = vmul.f32 0.6931472, %v4802_v53  ;;  %7871 = vst [vmem:[#allocation36_spill] sm:$0xff] %v6687_v59  ;;  %v3225_v59 = vld [vmem:[%s7702_s8 + $0x10] sm:$0xff] }
 0x2e3   :  { %v4806_v7 = vpop.eup %4805  ;;  %v1701_v35 = vmul.f32 %v6586_v46, %v1700_v56  ;;  %v2676_v44 = vand.u32 2147483647, %v6624_v25  ;;  %vm6673_vm9 = vcmp.lt.f32.partialorder %v1702_v9, 0.0004427343  ;;  %4811 = vlog2.f32 %v1705_v16 }
 0x2e4   :  { %v1505_v18 = vmul.f32 1.442695, %v1451_v47  ;;  %v1420_v45 = vand.u32 2147483647, %v6658_v30  ;;  %v1708_v33 = vmul.f32 -0.5, %v6639_v42  ;;  %v2725_v62 = vadd.f32 %v2669_v39, %v2277_v51  ;;  %4391 = vmatmul.msk.f32.gmra.mxu2 %vm842_vm2, %v4354_v54 }
 0x2e5   :  { %4277 = vmatmul.msk.f32.gmra.mxu3 %vm842_vm2, %v4240_v49  ;;  %v6678_v2 = vpop.eup %4807  ;;  %4813 = vlog2.f32 %v2679_v11  ;;  %v2672_v46 = vmul.f32 0.6931472, %v4806_v7  ;;  %v2675_v10 = vmul.f32 %v6624_v25, %v2674_v21  ;;  %v2682_v9 = vmul.f32 -0.5, %v6660_v38 }
 0x2e6   :  { %v4241_v28 = vadd.f32 -0.6931472, %v1831_v13  ;;  %v1384_v23 = vmax.f32 %v6484_v55, 0.0  ;;  %v1704_v24 = vsel %vm6673_vm9, %v1701_v35, %v1698_v43  ;;  %vm6689_vm10 = vcmp.lt.f32.partialorder %v2676_v44, 0.0004427343 }
 0x2e7   :  { %v1714_v37 = vadd.f32 1.0, %v6678_v2  ;;  %4815 = vpow2.f32 %v1505_v18  ;;  %v1452_v25 = vsub.f32 0.0, %v1420_v45  ;;  %v6698_v56 = vadd.f32 %v6361_v12, %v6181_v0  ;;  %v6707_v0 = vpop.f32.mrf.mxu3 }
 0x2e8   :  { %v6693_v53 = vpop.eup %4809  ;;  %v1709_v55 = vadd.f32 1.0, %v1708_v33  ;;  %v4355_v27 = vadd.f32 -0.6931472, %v2725_v62  ;;  %v2278_v16 = vmax.f32 %v6553_v15, 0.0  ;;  %v2678_v49 = vsel %vm6689_vm10, %v2675_v10, %v2672_v46 }
 0x2e9   :  { %v2688_v47 = vadd.f32 1.0, %v6693_v53  ;;  %v4812_v58 = vpop.eup %4811  ;;  %v2683_v54 = vadd.f32 1.0, %v2682_v9  ;;  %v1711_v39 = vand.u32 2147483647, %v6639_v42  ;;  %v2685_v21 = vand.u32 2147483647, %v6660_v38 }
 0x2ea   :  { %v1832_v11 = vadd.f32 %v1704_v24, %v1384_v23  ;;  %4817 = vlog2.f32 %v1714_v37  ;;  %v1507_v7 = vmul.f32 1.442695, %v1452_v25  ;;  %v1421_v15 = vand.u32 2147483647, %v6698_v56  ;;  %v6731_v23 = vpop.f32.mrf.mxu2 }
 0x2eb   :  { %v4814_v51 = vpop.eup %4813  ;;  %v1710_v13 = vmul.f32 %v6639_v42, %v1709_v55  ;;  %v1717_v43 = vmul.f32 -0.5, %v6678_v2  ;;  %v2726_v35 = vadd.f32 %v2678_v49, %v2278_v16  ;;  %4819 = vlog2.f32 %v2688_v47  ;;  %7878 = vst [vmem:[#allocation37_spill] sm:$0xff] %v6731_v23  ;;  %v3226_v23 = vld [vmem:[%s7702_s8 + $0x18] sm:$0xff] }
 0x2ec   :  { %4392 = vmatmul.msk.f32.gmra.mxu2 %vm842_vm2, %v4355_v27  ;;  %v1707_v26 = vmul.f32 0.6931472, %v4812_v58  ;;  %v2681_v18 = vmul.f32 0.6931472, %v4814_v51  ;;  %v2684_v45 = vmul.f32 %v6660_v38, %v2683_v54  ;;  %v2691_v33 = vmul.f32 -0.5, %v6693_v53  ;;  %3284 = vmatpush.msrb.mxu3 %v3226_v23 }
 0x2ed   :  { %4278 = vmatmul.msk.f32.gmra.mxu3 %vm842_vm2, %v4241_v28  ;;  %v6713_v44 = vpop.eup %4815  ;;  %vm6717_vm11 = vcmp.lt.f32.partialorder %v1711_v39, 0.0004427343  ;;  %vm6721_vm12 = vcmp.lt.f32.partialorder %v2685_v21, 0.0004427343  ;;  %v1385_v46 = vmax.f32 %v6529_v48, 0.0  ;;  %4821 = vpow2.f32 %v1507_v7 }
 0x2ee   :  { %v1453_v10 = vsub.f32 0.0, %v1421_v15  ;;  %v6728_v9 = vadd.f32 %v6361_v12, %v6218_v61  ;;  %v4242_v28 = vadd.f32 -0.6931472, %v1832_v11  ;;  %v1723_v38 = vadd.f32 1.0, %v6713_v44  ;;  %3285 = vmatpush.msrb.mxu3 %v3225_v59 }
 0x2ef   :  { %v4356_v24 = vadd.f32 -0.6931472, %v2726_v35  ;;  %v2279_v50 = vmax.f32 %v6593_v31, 0.0  ;;  %v1713_v25 = vsel %vm6717_vm11, %v1710_v13, %v1707_v26  ;;  %v1718_v55 = vadd.f32 1.0, %v1717_v43 }
 0x2f0   :  { %v4818_v37 = vpop.eup %4817  ;;  %v2687_v48 = vsel %vm6721_vm12, %v2684_v45, %v2681_v18  ;;  %v2692_v27 = vadd.f32 1.0, %v2691_v33  ;;  %v1720_v61 = vand.u32 2147483647, %v6678_v2  ;;  %v2694_v47 = vand.u32 2147483647, %v6693_v53  ;;  %3286 = vmatpush.msrb.mxu3 %v3224_v29  ;;  %v7941_v29 = vld [vmem:[#allocation8_spill] sm:$0xff] }
 0x2f1   :  { %v4820_v16 = vpop.eup %4819  ;;  %v1509_v58 = vmul.f32 1.442695, %v1453_v10  ;;  %v1422_v49 = vand.u32 2147483647, %v6728_v9  ;;  %v1833_v31 = vadd.f32 %v1713_v25, %v1385_v46  ;;  %4823 = vlog2.f32 %v1723_v38  ;;  %v6743_v39 = vpop.f32.mrf.mxu3 }
 0x2f2   :  { %v1726_v54 = vmul.f32 -0.5, %v6713_v44  ;;  %v2727_v51 = vadd.f32 %v2687_v48, %v2279_v50  ;;  %v1716_v11 = vmul.f32 0.6931472, %v4818_v37  ;;  %v1719_v7 = vmul.f32 %v6678_v2, %v1718_v55  ;;  %v6767_v38 = vpop.f32.mrf.mxu2  ;;  %3287 = vmatpush.msrb.mxu3 %v3223_v5 }
 0x2f3   :  { %v4822_v21 = vpop.eup %4821  ;;  %v2690_v15 = vmul.f32 0.6931472, %v4820_v16  ;;  %v2693_v13 = vmul.f32 %v6693_v53, %v2692_v27  ;;  %vm6748_vm13 = vcmp.lt.f32.partialorder %v1720_v61, 0.0004427343  ;;  %vm6752_vm14 = vcmp.lt.f32.partialorder %v2694_v47, 0.0004427343 }
 0x2f4   :  { %4393 = vmatmul.msk.f32.gmra.mxu2 %vm842_vm2, %v4356_v24  ;;  %v1386_v26 = vmax.f32 %v6566_v36, 0.0  ;;  %4825 = vpow2.f32 %v1509_v58  ;;  %v1454_v18 = vsub.f32 0.0, %v1422_v49  ;;  %v6759_v45 = vadd.f32 %v6361_v12, %v6259_v57  ;;  %7883 = vst [vmem:[#allocation38_spill] sm:$0xff] %v6767_v38 }
 0x2f5   :  { %4279 = vmatmul.msk.f32.gmra.mxu3 %vm842_vm2, %v4242_v28  ;;  %v4243_v2 = vadd.f32 -0.6931472, %v1833_v31  ;;  %v1732_v33 = vadd.f32 1.0, %v4822_v21  ;;  %v4357_v62 = vadd.f32 -0.6931472, %v2727_v51  ;;  %v2280_v53 = vmax.f32 %v6628_v3, 0.0 }
 0x2f6   :  { %v1722_v42 = vsel %vm6748_vm13, %v1719_v7, %v1716_v11  ;;  %v1727_v46 = vadd.f32 1.0, %v1726_v54  ;;  %v2696_v10 = vsel %vm6752_vm14, %v2693_v13, %v2690_v15  ;;  %v1729_v36 = vand.u32 2147483647, %v6713_v44 }
 0x2f7   :  { %v4824_v28 = vpop.eup %4823  ;;  %v1511_v57 = vmul.f32 1.442695, %v1454_v18  ;;  %v1423_v24 = vand.u32 2147483647, %v6759_v45  ;;  %v1834_v50 = vadd.f32 %v1722_v42, %v1386_v26  ;;  %4827 = vlog2.f32 %v1732_v33 }
 0x2f8   :  { %v2728_v3 = vadd.f32 %v2696_v10, %v2280_v53  ;;  %v1725_v25 = vmul.f32 0.6931472, %v4824_v28  ;;  %v1728_v55 = vmul.f32 %v6713_v44, %v1727_v46  ;;  %v1735_v48 = vmul.f32 -0.5, %v4822_v21 }
 0x2f9   :  { %vm6773_vm15 = vcmp.lt.f32.partialorder %v1729_v36, 0.0004427343  ;;  %4829 = vpow2.f32 %v1511_v57  ;;  %v1455_v61 = vsub.f32 0.0, %v1423_v24  ;;  %v6781_v47 = vadd.f32 %v6361_v12, %v6291_v52 }
 0x2fa   :  { %v4826_v37 = vpop.eup %4825  ;;  %v6777_v16 = vpop.f32.mrf.mxu3  ;;  %v4244_v58 = vadd.f32 -0.6931472, %v1834_v50  ;;  %v1387_v49 = vmax.f32 %v6621_v1, 0.0  ;;  %v4358_v54 = vadd.f32 -0.6931472, %v2728_v3  ;;  %v1731_v44 = vsel %vm6773_vm15, %v1728_v55, %v1725_v25 }
 0x2fb   :  { %v1741_v31 = vadd.f32 1.0, %v4826_v37  ;;  %v1736_v51 = vadd.f32 1.0, %v1735_v48  ;;  %v1738_v7 = vand.u32 2147483647, %v4822_v21  ;;  %v1513_v15 = vmul.f32 1.442695, %v1455_v61  ;;  %v6788_v52 = vpop.f32.mrf.mxu2 }
 0x2fc   :  { %4394 = vmatmul.msk.f32.gmra.mxu2 %vm842_vm2, %v4357_v62  ;;  %v1424_v13 = vand.u32 2147483647, %v6781_v47  ;;  %v1835_v43 = vadd.f32 %v1731_v44, %v1387_v49  ;;  %7886 = vst [vmem:[#allocation39_spill] sm:$0xff] %v6788_v52  ;;  %v1744_v18 = vmul.f32 -0.5, %v4826_v37  ;;  %v6793_v33 = vadd.f32 %v6361_v12, %v6329_v60 }
 0x2fd   :  { %4280 = vmatmul.msk.f32.gmra.mxu3 %vm842_vm2, %v4243_v2  ;;  %v4828_v11 = vpop.eup %4827  ;;  %4831 = vlog2.f32 %v1741_v31  ;;  %v1737_v26 = vmul.f32 %v4822_v21, %v1736_v51  ;;  %vm1739_vm1 = vcmp.lt.f32.partialorder %v1738_v7, 0.0004427343  ;;  %v1388_v53 = vmax.f32 %v6658_v30, 0.0 }
 0x2fe   :  { %v1734_v35 = vmul.f32 0.6931472, %v4828_v11  ;;  %4833 = vpow2.f32 %v1513_v15  ;;  %v1456_v2 = vsub.f32 0.0, %v1424_v13  ;;  %v4245_v62 = vadd.f32 -0.6931472, %v1835_v43 }
 0x2ff   :  { %v4830_v1 = vpop.eup %4829  ;;  %v1745_v28 = vadd.f32 1.0, %v1744_v18  ;;  %v1747_v57 = vand.u32 2147483647, %v4826_v37  ;;  %v1425_v24 = vand.u32 2147483647, %v6793_v33  ;;  %v6802_v48 = vadd.f32 %v6361_v12, %v6369_v6 }
 0x300   :  { %v1750_v42 = vadd.f32 1.0, %v4830_v1  ;;  %v1740_v10 = vsel %vm1739_vm1, %v1737_v26, %v1734_v35  ;;  %v1515_v21 = vmul.f32 1.442695, %v1456_v2  ;;  %v1753_v55 = vmul.f32 -0.5, %v4830_v1  ;;  %v4919_v35 = vld [vmem:[%s7698_s4 + $0x1] ss:$0 sm:$0xff] }
 0x301   :  { %v1836_v50 = vadd.f32 %v1740_v10, %v1388_v53  ;;  %v1746_v25 = vmul.f32 %v4826_v37, %v1745_v28  ;;  %vm1748_vm3 = vcmp.lt.f32.partialorder %v1747_v57, 0.0004427343  ;;  %v1457_v30 = vsub.f32 0.0, %v1425_v24 }
 0x302   :  { %4835 = vlog2.f32 %v1750_v42  ;;  %v1389_v61 = vmax.f32 %v6698_v56, 0.0  ;;  %v1756_v51 = vand.u32 2147483647, %v4830_v1  ;;  %v1426_v11 = vand.u32 2147483647, %v6802_v48 }
 0x303   :  { %v4832_v36 = vpop.eup %4831  ;;  %4837 = vpow2.f32 %v1515_v21  ;;  %v4246_v27 = vadd.f32 -0.6931472, %v1836_v50  ;;  %v1517_v37 = vmul.f32 1.442695, %v1457_v30  ;;  %v6817_v26 = vadd.f32 %v4919_v35, %v6407_v14 }
 0x304   :  { %4395 = vmatmul.msk.f32.gmra.mxu2 %vm842_vm2, %v4358_v54  ;;  %v4834_v3 = vpop.eup %4833  ;;  %v1743_v60 = vmul.f32 0.6931472, %v4832_v36  ;;  %v1754_v54 = vadd.f32 1.0, %v1753_v55  ;;  %vm6809_vm0 = vcmp.lt.f32.partialorder %v1756_v51, 0.0004427343  ;;  %v1458_v43 = vsub.f32 0.0, %v1426_v11 }
 0x305   :  { %4281 = vmatmul.msk.f32.gmra.mxu3 %vm842_vm2, %v4244_v58  ;;  %v1759_v58 = vadd.f32 1.0, %v4834_v3  ;;  %v1762_v13 = vmul.f32 -0.5, %v4834_v3  ;;  %v1390_v2 = vmax.f32 %v6728_v9, 0.0  ;;  %v1765_v28 = vand.u32 2147483647, %v4834_v3 }
 0x306   :  { %v1749_v31 = vsel %vm1748_vm3, %v1746_v25, %v1743_v60  ;;  %v1755_v6 = vmul.f32 %v4830_v1, %v1754_v54  ;;  %v1519_v36 = vmul.f32 1.442695, %v1458_v43  ;;  %v1427_v57 = vand.u32 2147483647, %v6817_v26 }
 0x307   :  { %v1837_v7 = vadd.f32 %v1749_v31, %v1389_v61  ;;  %4839 = vlog2.f32 %v1759_v58  ;;  %v1763_v42 = vadd.f32 1.0, %v1762_v13  ;;  %vm1766_vm4 = vcmp.lt.f32.partialorder %v1765_v28, 0.0004427343 }
 0x308   :  { %v6796_v46 = vpop.f32.mrf.mxu3  ;;  %v4836_v44 = vpop.eup %4835  ;;  %4841 = vpow2.f32 %v1517_v37  ;;  %v1459_v60 = vsub.f32 0.0, %v1427_v57  ;;  %v6827_v25 = vadd.f32 %v4919_v35, %v6454_v22  ;;  %v1391_v30 = vmax.f32 %v6759_v45, 0.0 }
 0x309   :  { %v4838_v15 = vpop.eup %4837  ;;  %v1752_v12 = vmul.f32 0.6931472, %v4836_v44  ;;  %v4247_v18 = vadd.f32 -0.6931472, %v1837_v7  ;;  %v1764_v50 = vmul.f32 %v4834_v3, %v1763_v42  ;;  %v1392_v13 = vmax.f32 %v6781_v47, 0.0 }
 0x30a   :  { %v1771_v9 = vmul.f32 -0.5, %v4838_v15  ;;  %v1774_v44 = vand.u32 2147483647, %v4838_v15  ;;  %v1521_v3 = vmul.f32 1.442695, %v1459_v60  ;;  %v1393_v47 = vmax.f32 %v6793_v33, 0.0 }
 0x30b   :  { %v1758_v1 = vsel %vm6809_vm0, %v1755_v6, %v1752_v12  ;;  %v1428_v51 = vand.u32 2147483647, %v6827_v25  ;;  %v957_v59 = vadd.f32 %v4464_v40, %v5363_v19  ;;  %v981_v5 = vadd.f32 %v4464_v40, %v7941_v29 }
 0x30c   :  { %v1838_v21 = vadd.f32 %v1758_v1, %v1390_v2  ;;  %v1772_v31 = vadd.f32 1.0, %v1771_v9  ;;  %vm1775_vm5 = vcmp.lt.f32.partialorder %v1774_v44, 0.0004427343  ;;  %v1394_v44 = vmax.f32 %v6802_v48, 0.0 }
 0x30d   :  { %4282 = vmatmul.msk.f32.gmra.mxu3 %vm842_vm2, %v4245_v62  ;;  %v1768_v62 = vadd.f32 1.0, %v4838_v15  ;;  %v4840_v10 = vpop.eup %4839  ;;  %v1460_v45 = vsub.f32 0.0, %v1428_v51  ;;  %vm3247_vm10 = vcmask 1041409   ;;  %vm3249_vm11 = vcmask 1042434  }
 0x30e   :  { %v4842_v14 = vpop.eup %4841  ;;  %v1761_v24 = vmul.f32 0.6931472, %v4840_v10  ;;  %v4248_v55 = vadd.f32 -0.6931472, %v1838_v21  ;;  %v1773_v7 = vmul.f32 %v4838_v15, %v1772_v31  ;;  %vm3251_vm12 = vcmask 1043459  }
 0x30f   :  { %4843 = vlog2.f32 %v1768_v62  ;;  %v1780_v12 = vmul.f32 -0.5, %v4842_v14  ;;  %v1783_v2 = vand.u32 2147483647, %v4842_v14  ;;  %v1523_v1 = vmul.f32 1.442695, %v1460_v45 }
 0x310   :  { %v6805_v49 = vpop.f32.mrf.mxu3  ;;  %4845 = vpow2.f32 %v1519_v36  ;;  %v1767_v58 = vsel %vm1766_vm4, %v1764_v50, %v1761_v24  ;;  %vm3253_vm13 = vcmask 1044484   ;;  %vm3255_vm14 = vcmask 1045509  }
 0x311   :  { %7887 = vst [vmem:[#allocation40_spill] sm:$0xff] %v6805_v49  ;;  %v1839_v37 = vadd.f32 %v1767_v58, %v1391_v30  ;;  %v1781_v35 = vadd.f32 1.0, %v1780_v12  ;;  %vm1784_vm6 = vcmp.lt.f32.partialorder %v1783_v2, 0.0004427343  ;;  %v7969_v49 = vld [vmem:[#allocation31_spill] sm:$0xff]  ;;  %vm3257_vm15 = vcmask 1046534  }
 0x312   :  { %vm3259_vm1 = vcmask 1047559  }
 0x313   :  { %v4249_v6 = vadd.f32 -0.6931472, %v1839_v37  ;;  %v1782_v28 = vmul.f32 %v4842_v14, %v1781_v35 }
 0x315   :  { %4283 = vmatmul.msk.f32.gmra.mxu3 %vm842_vm2, %v4246_v27  ;;  %v1777_v27 = vadd.f32 1.0, %v4842_v14  ;;  %v4844_v54 = vpop.eup %4843 }
 0x316   :  { %v4846_v11 = vpop.eup %4845  ;;  %v1770_v22 = vmul.f32 0.6931472, %v4844_v54 }
 0x317   :  { %4847 = vlog2.f32 %v1777_v27  ;;  %v1786_v56 = vadd.f32 1.0, %v4846_v11  ;;  %v1789_v36 = vmul.f32 -0.5, %v4846_v11  ;;  %v1792_v60 = vand.u32 2147483647, %v4846_v11 }
 0x318   :  { %v6820_v53 = vpop.f32.mrf.mxu3  ;;  %4849 = vpow2.f32 %v1521_v3  ;;  %v1776_v43 = vsel %vm1775_vm5, %v1773_v7, %v1770_v22 }
 0x319   :  { %7890 = vst [vmem:[#allocation41_spill] sm:$0xff] %v6820_v53  ;;  %v1840_v42 = vadd.f32 %v1776_v43, %v1392_v13  ;;  %4851 = vlog2.f32 %v1786_v56  ;;  %v1790_v50 = vadd.f32 1.0, %v1789_v36  ;;  %vm1793_vm7 = vcmp.lt.f32.partialorder %v1792_v60, 0.0004427343 }
 0x31a   :  { %4853 = vpow2.f32 %v1523_v1  ;;  %v1395_v56 = vmax.f32 %v6817_v26, 0.0 }
 0x31b   :  { %v4250_v57 = vadd.f32 -0.6931472, %v1840_v42  ;;  %v1791_v14 = vmul.f32 %v4846_v11, %v1790_v50 }
 0x31d   :  { %4284 = vmatmul.msk.f32.gmra.mxu3 %vm842_vm2, %v4247_v18  ;;  %v4848_v18 = vpop.eup %4847 }
 0x31e   :  { %v4850_v15 = vpop.eup %4849  ;;  %v1779_v10 = vmul.f32 0.6931472, %v4848_v18 }
 0x31f   :  { %v1795_v21 = vadd.f32 1.0, %v4850_v15  ;;  %v4852_v9 = vpop.eup %4851  ;;  %v1798_v31 = vmul.f32 -0.5, %v4850_v15  ;;  %v1801_v22 = vand.u32 2147483647, %v4850_v15 }
 0x320   :  { %v6830_v61 = vpop.f32.mrf.mxu3  ;;  %v1785_v24 = vsel %vm1784_vm6, %v1782_v28, %v1779_v10  ;;  %v4854_v27 = vpop.eup %4853  ;;  %v1788_v58 = vmul.f32 0.6931472, %v4852_v9  ;;  %v1396_v28 = vmax.f32 %v6827_v25, 0.0 }
 0x321   :  { %7891 = vst [vmem:[#allocation42_spill] sm:$0xff] %v6830_v61  ;;  %v1841_v30 = vadd.f32 %v1785_v24, %v1393_v47  ;;  %4855 = vlog2.f32 %v1795_v21  ;;  %v1804_v33 = vadd.f32 1.0, %v4854_v27  ;;  %v1799_v51 = vadd.f32 1.0, %v1798_v31  ;;  %v6860_v24 = vld [vmem:[%s7694_s0 + $0x8] sm:$0xff]  ;;  %v6880_v31 = vpop.permute.xlu2 %1074 }
 0x322   :  { %v1794_v3 = vsel %vm1793_vm7, %v1791_v14, %v1788_v58  ;;  %vm1802_vm8 = vcmp.lt.f32.partialorder %v1801_v22, 0.0004427343  ;;  %v1810_v18 = vand.u32 2147483647, %v4854_v27  ;;  %v6876_v58 = vpop.permute.xlu1 %1064  ;;  %7906 = vst [vmem:[#allocation57_spill] sm:$0xff] %v6880_v31 }
 0x323   :  { %v4251_v54 = vadd.f32 -0.6931472, %v1841_v30  ;;  %v1842_v7 = vadd.f32 %v1794_v3, %v1394_v44  ;;  %4857 = vlog2.f32 %v1804_v33  ;;  %v1800_v45 = vmul.f32 %v4850_v15, %v1799_v51  ;;  %7904 = vst [vmem:[#allocation55_spill] sm:$0xff] %v6876_v58 }
 0x324   :  { %vm1811_vm9 = vcmp.lt.f32.partialorder %v1810_v18, 0.0004427343 }
 0x325   :  { %4285 = vmatmul.msk.f32.gmra.mxu3 %vm842_vm2, %v4248_v55  ;;  %v4252_v11 = vadd.f32 -0.6931472, %v1842_v7 }
 0x327   :  { %v4856_v37 = vpop.eup %4855 }
 0x328   :  { %v1797_v12 = vmul.f32 0.6931472, %v4856_v37 }
 0x329   :  { %v4858_v35 = vpop.eup %4857  ;;  %v6888_v3 = vpop.permute.xlu2 %1079 }
 0x32a   :  { %v6836_v62 = vpop.f32.mrf.mxu3  ;;  %v1803_v43 = vsel %vm1802_vm8, %v1800_v45, %v1797_v12  ;;  %v1806_v1 = vmul.f32 0.6931472, %v4858_v35  ;;  %v6884_v44 = vpop.permute.xlu1 %1069  ;;  %7910 = vst [vmem:[#allocation61_spill] sm:$0xff] %v6888_v3 }
 0x32b   :  { %7892 = vst [vmem:[#allocation43_spill] sm:$0xff] %v6836_v62  ;;  %v1843_v2 = vadd.f32 %v1803_v43, %v1395_v56  ;;  %v7948_v62 = vld [vmem:[#allocation15_spill] sm:$0xff] }
 0x32c   :  { %7908 = vst [vmem:[#allocation59_spill] sm:$0xff] %v6884_v44 }
 0x32d   :  { %4286 = vmatmul.msk.f32.gmra.mxu3 %vm842_vm2, %v4249_v6  ;;  %v1807_v6 = vmul.f32 -0.5, %v4854_v27  ;;  %v4253_v15 = vadd.f32 -0.6931472, %v1843_v2 }
 0x32f   :  { %v1808_v48 = vadd.f32 1.0, %v1807_v6 }
 0x331   :  { %v1809_v42 = vmul.f32 %v4854_v27, %v1808_v48  ;;  %v6874_v27 = vpop.permute.xlu0 %1054  ;;  %v6896_v7 = vpop.permute.xlu2 %1094 }
 0x332   :  { %7903 = vst [vmem:[#allocation54_spill] sm:$0xff] %v6874_v27  ;;  %v6892_v37 = vpop.permute.xlu1 %1089 }
 0x333   :  { %v1812_v36 = vsel %vm1811_vm9, %v1809_v42, %v1806_v1  ;;  %7912 = vst [vmem:[#allocation63_spill] sm:$0xff] %v6892_v37 }
 0x334   :  { %7914 = vst [vmem:[#allocation65_spill] sm:$0xff] %v6896_v7 }
 0x335   :  { %4287 = vmatmul.msk.f32.gmra.mxu3 %vm842_vm2, %v4250_v57  ;;  %v6840_v55 = vpop.f32.mrf.mxu3  ;;  %v1844_v57 = vadd.f32 %v1812_v36, %v1396_v28 }
 0x336   :  { %7893 = vst [vmem:[#allocation44_spill] sm:$0xff] %v6840_v55  ;;  %v7947_v55 = vld [vmem:[#allocation14_spill] sm:$0xff] }
 0x337   :  { %v4254_v47 = vadd.f32 -0.6931472, %v1844_v57 }
 0x33a   :  { %v6900_v45 = vpop.permute.xlu1 %1104 }
 0x33b   :  { %7916 = vst [vmem:[#allocation67_spill] sm:$0xff] %v6900_v45 }
 0x33d   :  { %4288 = vmatmul.msk.f32.gmra.mxu3 %vm842_vm2, %v4251_v54  ;;  %v6882_v54 = vpop.permute.xlu0 %1059 }
 0x33e   :  { %7907 = vst [vmem:[#allocation58_spill] sm:$0xff] %v6882_v54 }
 0x340   :  { %v6844_v13 = vpop.f32.mrf.mxu3 }
 0x341   :  { %7894 = vst [vmem:[#allocation45_spill] sm:$0xff] %v6844_v13  ;;  %v7946_v13 = vld [vmem:[#allocation13_spill] sm:$0xff] }
 0x342   :  { %v6908_v43 = vpop.permute.xlu1 %1119 }
 0x343   :  { %7920 = vst [vmem:[#allocation71_spill] sm:$0xff] %v6908_v43 }
 0x345   :  { %4289 = vmatmul.msk.f32.gmra.mxu3 %vm842_vm2, %v4252_v11  ;;  %v6890_v51 = vpop.permute.xlu0 %1084  ;;  %v6904_v11 = vpop.permute.xlu2 %1109 }
 0x346   :  { %7911 = vst [vmem:[#allocation62_spill] sm:$0xff] %v6890_v51 }
 0x347   :  { %7918 = vst [vmem:[#allocation69_spill] sm:$0xff] %v6904_v11 }
 0x348   :  { %v6848_v10 = vpop.f32.mrf.mxu3 }
 0x349   :  { %7895 = vst [vmem:[#allocation46_spill] sm:$0xff] %v6848_v10  ;;  %v7945_v10 = vld [vmem:[#allocation12_spill] sm:$0xff] }
 0x34a   :  { %v6916_v2 = vpop.permute.xlu1 %1134 }
 0x34b   :  { %7924 = vst [vmem:[#allocation75_spill] sm:$0xff] %v6916_v2 }
 0x34d   :  { %4290 = vmatmul.msk.f32.gmra.mxu3 %vm842_vm2, %v4253_v15  ;;  %v6898_v12 = vpop.permute.xlu0 %1099  ;;  %v6912_v35 = vpop.permute.xlu2 %1124 }
 0x34e   :  { %7915 = vst [vmem:[#allocation66_spill] sm:$0xff] %v6898_v12 }
 0x34f   :  { %7922 = vst [vmem:[#allocation73_spill] sm:$0xff] %v6912_v35 }
 0x350   :  { %v6852_v26 = vpop.f32.mrf.mxu3 }
 0x351   :  { %7896 = vst [vmem:[#allocation47_spill] sm:$0xff] %v6852_v26  ;;  %v7944_v26 = vld [vmem:[#allocation11_spill] sm:$0xff] }
 0x352   :  { %v6924_v28 = vpop.permute.xlu1 %1149 }
 0x353   :  { %7928 = vst [vmem:[#allocation79_spill] sm:$0xff] %v6924_v28 }
 0x355   :  { %4291 = vmatmul.msk.f32.gmra.mxu3 %vm842_vm2, %v4254_v47  ;;  %v6906_v56 = vpop.permute.xlu0 %1114  ;;  %v6920_v42 = vpop.permute.xlu2 %1139 }
 0x356   :  { %7919 = vst [vmem:[#allocation70_spill] sm:$0xff] %v6906_v56 }
 0x357   :  { %7926 = vst [vmem:[#allocation77_spill] sm:$0xff] %v6920_v42 }
 0x358   :  { %v6855_v21 = vpop.f32.mrf.mxu3 }
 0x359   :  { %7897 = vst [vmem:[#allocation48_spill] sm:$0xff] %v6855_v21  ;;  %v7943_v21 = vld [vmem:[#allocation10_spill] sm:$0xff] }
 0x35a   :  { %v6932_v52 = vpop.permute.xlu1 %1164  ;;  %v987_v19 = vadd.f32 %v4464_v40, %v7943_v21 }
 0x35b   :  { %7932 = vst [vmem:[#allocation83_spill] sm:$0xff] %v6932_v52 }
 0x35d   :  { %4397 = vmatmul.msk.f32.vlgmr.msra.gmra.mxu3 %vm842_vm2, %v6860_v24  ;;  %v6914_v18 = vpop.permute.xlu0 %1129  ;;  %v6928_v57 = vpop.permute.xlu2 %1154 }
 0x35e   :  { %7923 = vst [vmem:[#allocation74_spill] sm:$0xff] %v6914_v18 }
 0x35f   :  { %7930 = vst [vmem:[#allocation81_spill] sm:$0xff] %v6928_v57 }
 0x360   :  { %v6864_v25 = vpop.f32.mrf.mxu3 }
 0x361   :  { %7898 = vst [vmem:[#allocation49_spill] sm:$0xff] %v6864_v25  ;;  %v7942_v25 = vld [vmem:[#allocation9_spill] sm:$0xff] }
 0x365   :  { %v6922_v15 = vpop.permute.xlu0 %1144  ;;  %v6945_v34 = vpop.permute.xlu2 %1169 }
 0x366   :  { %7927 = vst [vmem:[#allocation78_spill] sm:$0xff] %v6922_v15 }
 0x367   :  { %7934 = vst [vmem:[#allocation85_spill] sm:$0xff] %v6945_v34 }
 0x368   :  { %v6866_v50 = vpop.f32.mrf.mxu3 }
 0x369   :  { %7899 = vst [vmem:[#allocation50_spill] sm:$0xff] %v6866_v50 }
 0x36d   :  { %v6930_v47 = vpop.permute.xlu0 %1159  ;;  %v6975_v61 = vpop.permute.xlu2 %1184 }
 0x36e   :  { %7931 = vst [vmem:[#allocation82_spill] sm:$0xff] %v6930_v47 }
 0x370   :  { %v6868_v9 = vpop.f32.mrf.mxu3 }
 0x371   :  { %7900 = vst [vmem:[#allocation51_spill] sm:$0xff] %v6868_v9  ;;  %v7940_v9 = vld [vmem:[#allocation7_spill] sm:$0xff] }
 0x372   :  { %v978_v50 = vadd.f32 %v4464_v40, %v7940_v9  ;;  %v1212_v9 = vmul.f32 %v6874_v27, %v957_v59  ;;  %v7966_v27 = vld [vmem:[#allocation29_spill] sm:$0xff] }
 0x374   :  { %v6995_v59 = vmul.f32 %v6892_v37, %v978_v50 }
 0x375   :  { %v7029_v53 = vpop.permute.xlu2 %1199 }
 0x376   :  { %7967 = vst [vmem:[#allocation9_spill] sm:$0xff] %v7029_v53 }
 0x378   :  { %v6870_v60 = vpop.f32.mrf.mxu3 }
 0x379   :  { %7901 = vst [vmem:[#allocation52_spill] sm:$0xff] %v6870_v60 }
 0x380   :  { %v6872_v30 = vpop.f32.mrf.mxu3 }
 0x381   :  { %7902 = vst [vmem:[#allocation53_spill] sm:$0xff] %v6872_v30  ;;  %v7939_v30 = vld [vmem:[#allocation6_spill] sm:$0xff] }
 0x382   :  { %v975_v60 = vadd.f32 %v4464_v40, %v7939_v30 }
 0x388   :  { %v6878_v14 = vpop.f32.mrf.mxu3 }
 0x389   :  { %7905 = vst [vmem:[#allocation56_spill] sm:$0xff] %v6878_v14 }
 0x390   :  { %v6886_v33 = vpop.f32.mrf.mxu3 }
 0x391   :  { %7909 = vst [vmem:[#allocation60_spill] sm:$0xff] %v6886_v33  ;;  %v7938_v33 = vld [vmem:[#allocation5_spill] sm:$0xff] }
 0x392   :  { %v972_v14 = vadd.f32 %v4464_v40, %v7938_v33  ;;  %v1002_v33 = vadd.f32 %v4464_v40, %v7948_v62  ;;  %7949 = vst [vmem:[#allocation5_spill] sm:$0xff] %v6975_v61 }
 0x394   :  { %v6991_v62 = vmul.f32 %v6888_v3, %v972_v14  ;;  %v7011_v50 = vmul.f32 %v6914_v18, %v1002_v33  ;;  %v7961_v33 = vld [vmem:[#allocation24_spill] sm:$0xff] }
 0x395   :  { %v1029_v18 = vadd.f32 %v4464_v40, %v7961_v33 }
 0x398   :  { %v6894_v22 = vpop.f32.mrf.mxu3 }
 0x399   :  { %7913 = vst [vmem:[#allocation64_spill] sm:$0xff] %v6894_v22  ;;  %v969_v22 = vadd.f32 %v4464_v40, %v5455_v32  ;;  %v999_v32 = vadd.f32 %v4464_v40, %v7947_v55 }
 0x39b   :  { %v1216_v55 = vmul.f32 %v6880_v31, %v969_v22  ;;  %v7962_v31 = vld [vmem:[#allocation25_spill] sm:$0xff] }
 0x3a0   :  { %v6902_v6 = vpop.f32.mrf.mxu3 }
 0x3a1   :  { %7917 = vst [vmem:[#allocation68_spill] sm:$0xff] %v6902_v6  ;;  %v966_v6 = vadd.f32 %v4464_v40, %v5431_v4  ;;  %v996_v4 = vadd.f32 %v4464_v40, %v7946_v13  ;;  %v1218_v13 = vmul.f32 %v6890_v51, %v975_v60  ;;  %v1226_v60 = vmul.f32 %v6912_v35, %v999_v32  ;;  %v7957_v51 = vld [vmem:[#allocation20_spill] sm:$0xff]  ;;  %v7960_v32 = vld [vmem:[#allocation23_spill] sm:$0xff] }
 0x3a2   :  { %v1026_v35 = vadd.f32 %v4464_v40, %v7960_v32 }
 0x3a3   :  { %v6983_v21 = vmul.f32 %v6884_v44, %v966_v6  ;;  %v1222_v6 = vmul.f32 %v6900_v45, %v987_v19  ;;  %v7007_v14 = vmul.f32 %v6908_v43, %v996_v4  ;;  %v7955_v19 = vld [vmem:[#allocation18_spill] sm:$0xff] }
 0x3a4   :  { %v1011_v45 = vadd.f32 %v4464_v40, %v7955_v19  ;;  %v7959_v43 = vld [vmem:[#allocation22_spill] sm:$0xff] }
 0x3a5   :  { %v1023_v3 = vadd.f32 %v4464_v40, %v7959_v43  ;;  %v7963_v44 = vld [vmem:[#allocation26_spill] sm:$0xff]  ;;  %v1050_v43 = vadd.f32 %v4464_v40, %v7969_v49  ;;  %v7051_v49 = vmul.f32 %v6945_v34, %v1026_v35 }
 0x3a8   :  { %v6910_v48 = vpop.f32.mrf.mxu3 }
 0x3a9   :  { %7921 = vst [vmem:[#allocation72_spill] sm:$0xff] %v6910_v48  ;;  %v963_v48 = vadd.f32 %v4464_v40, %v5404_v63  ;;  %v993_v63 = vadd.f32 %v4464_v40, %v7945_v10 }
 0x3ab   :  { %v1224_v22 = vmul.f32 %v6906_v56, %v993_v63  ;;  %v1017_v63 = vadd.f32 %v4464_v40, %v7957_v51  ;;  %v7958_v56 = vld [vmem:[#allocation21_spill] sm:$0xff]  ;;  %v7968_v51 = vld [vmem:[#allocation30_spill] sm:$0xff] }
 0x3ac   :  { %v1020_v4 = vadd.f32 %v4464_v40, %v7958_v56  ;;  %v1047_v56 = vadd.f32 %v4464_v40, %v7968_v51 }
 0x3ae   :  { %v7047_v51 = vmul.f32 %v6930_v47, %v1020_v4 }
 0x3b0   :  { %v6918_v1 = vpop.f32.mrf.mxu3 }
 0x3b1   :  { %7925 = vst [vmem:[#allocation76_spill] sm:$0xff] %v6918_v1  ;;  %v960_v1 = vadd.f32 %v4464_v40, %v5383_v41  ;;  %v990_v41 = vadd.f32 %v4464_v40, %v7944_v26 }
 0x3b3   :  { %v6979_v30 = vmul.f32 %v6882_v54, %v960_v1  ;;  %v1220_v1 = vmul.f32 %v6896_v7, %v981_v5  ;;  %v7003_v29 = vmul.f32 %v6904_v11, %v990_v41  ;;  %v7953_v5 = vld [vmem:[#allocation16_spill] sm:$0xff]  ;;  %v7956_v41 = vld [vmem:[#allocation19_spill] sm:$0xff] }
 0x3b4   :  { %v1014_v11 = vadd.f32 %v4464_v40, %v7956_v41  ;;  %v7965_v54 = vld [vmem:[#allocation28_spill] sm:$0xff]  ;;  %v1044_v41 = vadd.f32 %v4464_v40, %v7966_v27  ;;  %v1232_v27 = vmul.f32 %v6928_v57, %v1017_v63 }
 0x3b5   :  { %v1041_v19 = vadd.f32 %v4464_v40, %v7965_v54 }
 0x3b6   :  { %v7063_v4 = vmul.f32 %v7029_v53, %v1044_v41 }
 0x3b8   :  { %v6926_v36 = vpop.f32.mrf.mxu3 }
 0x3b9   :  { %7929 = vst [vmem:[#allocation80_spill] sm:$0xff] %v6926_v36  ;;  %v6955_v36 = vpop.permute.xlu1 %1179 }
 0x3ba   :  { %7936 = vst [vmem:[#allocation87_spill] sm:$0xff] %v6955_v36 }
 0x3c0   :  { %v6934_v38 = vpop.f32.mrf.mxu3 }
 0x3c1   :  { %7933 = vst [vmem:[#allocation84_spill] sm:$0xff] %v6934_v38  ;;  %v6953_v38 = vpop.permute.xlu0 %1174  ;;  %v6987_v10 = vpop.permute.xlu1 %1194 }
 0x3c2   :  { %7935 = vst [vmem:[#allocation86_spill] sm:$0xff] %v6953_v38  ;;  %v1240_v63 = vmul.f32 %v6987_v10, %v1041_v19 }
 0x3c3   :  { %7951 = vst [vmem:[#allocation7_spill] sm:$0xff] %v6987_v10 }
 0x3c8   :  { %v6957_v23 = vpop.f32.mrf.mxu3 }
 0x3c9   :  { %7937 = vst [vmem:[#allocation88_spill] sm:$0xff] %v6957_v23  ;;  %v984_v23 = vadd.f32 %v4464_v40, %v7942_v25  ;;  %v1214_v25 = vmul.f32 %v6876_v58, %v963_v48  ;;  %v6985_v26 = vpop.permute.xlu0 %1189  ;;  %v7964_v58 = vld [vmem:[#allocation27_spill] sm:$0xff]  ;;  %v7043_v54 = vpop.permute.xlu1 %1209 }
 0x3ca   :  { %7950 = vst [vmem:[#allocation6_spill] sm:$0xff] %v6985_v26  ;;  %v7067_v35 = vmul.f32 %v7043_v54, %v1050_v43 }
 0x3cb   :  { %v6999_v48 = vmul.f32 %v6898_v12, %v984_v23  ;;  %v1005_v23 = vadd.f32 %v4464_v40, %v7953_v5  ;;  %v7954_v12 = vld [vmem:[#allocation17_spill] sm:$0xff]  ;;  %v1035_v5 = vadd.f32 %v4464_v40, %v7963_v44  ;;  %v7039_v44 = vmul.f32 %v6924_v28, %v1014_v11  ;;  %7971 = vst [vmem:[#allocation11_spill] sm:$0xff] %v7043_v54 }
 0x3cc   :  { %v1008_v7 = vadd.f32 %v4464_v40, %v7954_v12  ;;  %v1038_v12 = vadd.f32 %v4464_v40, %v7964_v58 }
 0x3cd   :  { %v1228_v32 = vmul.f32 %v6916_v2, %v1005_v23  ;;  %v1238_v23 = vmul.f32 %v6975_v61, %v1035_v5 }
 0x3ce   :  { %v7035_v33 = vmul.f32 %v6920_v42, %v1008_v7  ;;  %v3041_v7 = vpop.f32.mrf.mxu1  ;;  %v7059_v28 = vmul.f32 %v6985_v26, %v1038_v12 }
 0x3cf   :  { %v3055_v5 = vmul.f32 %v3041_v7, %v1220_v1  ;;  %v3057_v61 = vmul.f32 %v3041_v7, %v1222_v6  ;;  %v3059_v12 = vmul.f32 %v3041_v7, %v1224_v22  ;;  %v3061_v26 = vmul.f32 %v3041_v7, %v1226_v60 }
 0x3d0   :  { %v7013_v37 = vpop.f32.mrf.mxu3  ;;  %v3067_v10 = vmul.f32 %v3041_v7, %v1232_v27  ;;  %v3073_v47 = vmul.f32 %v3041_v7, %v1238_v23 }
 0x3d1   :  { %7952 = vst [vmem:[#allocation8_spill] sm:$0xff] %v7013_v37  ;;  %v1032_v37 = vadd.f32 %v4464_v40, %v7962_v31  ;;  %v1230_v31 = vmul.f32 %v6922_v15, %v1011_v45  ;;  %v7041_v58 = vpop.permute.xlu0 %1204  ;;  %v1234_v40 = vmul.f32 %v6932_v52, %v1023_v3  ;;  %v1236_v45 = vmul.f32 %v6953_v38, %v1029_v18 }
 0x3d2   :  { %7970 = vst [vmem:[#allocation10_spill] sm:$0xff] %v7041_v58  ;;  %v1242_v3 = vmul.f32 %v7041_v58, %v1047_v56  ;;  %v3047_v18 = vmul.f32 %v3041_v7, %v1212_v9  ;;  %v3053_v38 = vmul.f32 %v3041_v7, %v1218_v13  ;;  %v3063_v52 = vmul.f32 %v3041_v7, %v1228_v32 }
 0x3d3   :  { %v7055_v11 = vmul.f32 %v6955_v36, %v1032_v37  ;;  %v3049_v37 = vmul.f32 %v3041_v7, %v1214_v25  ;;  %v3051_v36 = vmul.f32 %v3041_v7, %v1216_v55  ;;  %v3065_v19 = vmul.f32 %v3041_v7, %v1230_v31 }
 0x3d4   :  { %v3069_v41 = vmul.f32 %v3041_v7, %v1234_v40  ;;  %v3071_v53 = vmul.f32 %v3041_v7, %v1236_v45  ;;  %v3075_v56 = vmul.f32 %v3041_v7, %v1240_v63  ;;  %v3077_v58 = vmul.f32 %v3041_v7, %v1242_v3 }
 0x3d5   :  { %v3079_v43 = vsel %vm842_vm2, %v3047_v18, 0.0  ;;  %v3088_v54 = vsel %vm842_vm2, %v3049_v37, 0.0  ;;  %v3097_v9 = vsel %vm842_vm2, %v3051_v36, 0.0  ;;  %v3106_v25 = vsel %vm842_vm2, %v3053_v38, 0.0 }
 0x3d6   :  { %v3115_v55 = vsel %vm842_vm2, %v3055_v5, 0.0  ;;  %v3124_v13 = vsel %vm842_vm2, %v3057_v61, 0.0  ;;  %v3133_v1 = vsel %vm842_vm2, %v3059_v12, 0.0  ;;  %v3142_v6 = vsel %vm842_vm2, %v3061_v26, 0.0 }
 0x3d7   :  { %v7080_v22 = vsel %vm842_vm2, %v3063_v52, 0.0  ;;  %v7083_v60 = vsel %vm842_vm2, %v3065_v19, 0.0  ;;  %v7086_v32 = vsel %vm842_vm2, %v3067_v10, 0.0  ;;  %v7089_v36 = vsel %vm842_vm2, %v3069_v41, 0.0 }
 0x3d8   :  { %v7069_v34 = vpop.f32.mrf.mxu3  ;;  %v7094_v61 = vsel %vm842_vm2, %v3071_v53, 0.0  ;;  %v7097_v31 = vsel %vm842_vm2, %v3073_v47, 0.0  ;;  %v7100_v52 = vsel %vm842_vm2, %v3075_v56, 0.0  ;;  %v7103_v26 = vsel %vm842_vm2, %v3077_v58, 0.0 }
 0x3e0   :  { %v7091_v38 = vpop.f32.mrf.mxu3 }
 0x3e1   :  { %v3048_v10 = vmul.f32 %v7091_v38, %v6979_v30  ;;  %v3050_v27 = vmul.f32 %v7091_v38, %v6983_v21  ;;  %v3052_v40 = vmul.f32 %v7091_v38, %v6991_v62  ;;  %v3054_v53 = vmul.f32 %v7091_v38, %v6995_v59 }
 0x3e2   :  { %v3056_v47 = vmul.f32 %v7091_v38, %v6999_v48  ;;  %v3058_v7 = vmul.f32 %v7091_v38, %v7003_v29  ;;  %v3060_v58 = vmul.f32 %v7091_v38, %v7007_v14  ;;  %v3062_v30 = vmul.f32 %v7091_v38, %v7011_v50 }
 0x3e3   :  { %v3080_v21 = vsel %vm842_vm2, %v3048_v10, 0.0  ;;  %v3089_v45 = vsel %vm842_vm2, %v3050_v27, 0.0  ;;  %v3098_v62 = vsel %vm842_vm2, %v3052_v40, 0.0  ;;  %v3107_v59 = vsel %vm842_vm2, %v3054_v53, 0.0 }
 0x3e4   :  { %v3081_v23 = vadd.f32 %v3080_v21, %v3079_v43  ;;  %v3090_v63 = vadd.f32 %v3089_v45, %v3088_v54  ;;  %v3099_v48 = vadd.f32 %v3098_v62, %v3097_v9  ;;  %v3108_v3 = vadd.f32 %v3107_v59, %v3106_v25 }
 0x3e5   :  { %v3116_v29 = vsel %vm842_vm2, %v3056_v47, 0.0  ;;  %v3125_v18 = vsel %vm842_vm2, %v3058_v7, 0.0  ;;  %v3134_v14 = vsel %vm842_vm2, %v3060_v58, 0.0  ;;  %v3143_v50 = vsel %vm842_vm2, %v3062_v30, 0.0 }
 0x3e6   :  { %v3082_v37 = vrot.slane %v3081_v23, 4  ;;  %v3091_v5 = vrot.slane %v3090_v63, 4  ;;  %v3100_v12 = vrot.slane %v3099_v48, 4  ;;  %v3109_v19 = vrot.slane %v3108_v3, 4 }
 0x3e7   :  { %v3117_v41 = vadd.f32 %v3116_v29, %v3115_v55  ;;  %v3126_v56 = vadd.f32 %v3125_v18, %v3124_v13  ;;  %v3135_v10 = vadd.f32 %v3134_v14, %v3133_v1  ;;  %v3144_v27 = vadd.f32 %v3143_v50, %v3142_v6 }
 0x3e8   :  { %v3083_v54 = vadd.f32 %v3082_v37, %v3081_v23  ;;  %v3092_v43 = vadd.f32 %v3091_v5, %v3090_v63  ;;  %v3101_v9 = vadd.f32 %v3100_v12, %v3099_v48  ;;  %v3110_v25 = vadd.f32 %v3109_v19, %v3108_v3 }
 0x3e9   :  { %v3118_v40 = vrot.slane %v3117_v41, 4  ;;  %v3127_v53 = vrot.slane %v3126_v56, 4  ;;  %v3136_v47 = vrot.slane %v3135_v10, 4  ;;  %v3145_v7 = vrot.slane %v3144_v27, 4 }
 0x3ea   :  { %v3084_v58 = vrot.slane %v3083_v54, 2  ;;  %v3093_v30 = vrot.slane %v3092_v43, 2  ;;  %v3102_v21 = vrot.slane %v3101_v9, 2  ;;  %v3111_v45 = vrot.slane %v3110_v25, 2 }
 0x3eb   :  { %v3119_v62 = vadd.f32 %v3118_v40, %v3117_v41  ;;  %v3128_v55 = vadd.f32 %v3127_v53, %v3126_v56  ;;  %v3137_v13 = vadd.f32 %v3136_v47, %v3135_v10  ;;  %v3146_v1 = vadd.f32 %v3145_v7, %v3144_v27 }
 0x3ec   :  { %v3085_v6 = vadd.f32 %v3084_v58, %v3083_v54  ;;  %v3094_v59 = vadd.f32 %v3093_v30, %v3092_v43  ;;  %v3103_v23 = vadd.f32 %v3102_v21, %v3101_v9  ;;  %v3112_v63 = vadd.f32 %v3111_v45, %v3110_v25 }
 0x3ed   :  { %v3120_v48 = vrot.slane %v3119_v62, 2  ;;  %v3129_v3 = vrot.slane %v3128_v55, 2  ;;  %v3138_v29 = vrot.slane %v3137_v13, 2  ;;  %v3147_v18 = vrot.slane %v3146_v1, 2 }
 0x3ee   :  { %v3086_v14 = vrot.slane %v3085_v6, 1  ;;  %v3095_v50 = vrot.slane %v3094_v59, 1  ;;  %v3104_v37 = vrot.slane %v3103_v23, 1  ;;  %v3113_v5 = vrot.slane %v3112_v63, 1 }
 0x3ef   :  { %v3121_v12 = vadd.f32 %v3120_v48, %v3119_v62  ;;  %v3130_v19 = vadd.f32 %v3129_v3, %v3128_v55  ;;  %v3139_v41 = vadd.f32 %v3138_v29, %v3137_v13  ;;  %v3148_v56 = vadd.f32 %v3147_v18, %v3146_v1 }
 0x3f0   :  { %v3087_v10 = vadd.f32 %v3086_v14, %v3085_v6  ;;  %v3096_v27 = vadd.f32 %v3095_v50, %v3094_v59  ;;  %v3105_v54 = vadd.f32 %v3104_v37, %v3103_v23  ;;  %v3114_v43 = vadd.f32 %v3113_v5, %v3112_v63 }
 0x3f1   :  { %v3122_v9 = vrot.slane %v3121_v12, 1  ;;  %v3131_v25 = vrot.slane %v3130_v19, 1  ;;  %v3140_v40 = vrot.slane %v3139_v41, 1  ;;  %v3149_v53 = vrot.slane %v3148_v56, 1 }
 0x3f2   :  { %v3248_v47 = vsel %vm3247_vm10, %v3096_v27, %v3087_v10  ;;  %v3064_v7 = vmul.f32 %v7091_v38, %v7035_v33  ;;  %v3066_v58 = vmul.f32 %v7091_v38, %v7039_v44  ;;  %v3068_v30 = vmul.f32 %v7091_v38, %v7047_v51 }
 0x3f3   :  { %v3123_v21 = vadd.f32 %v3122_v9, %v3121_v12  ;;  %v3132_v45 = vadd.f32 %v3131_v25, %v3130_v19  ;;  %v3141_v62 = vadd.f32 %v3140_v40, %v3139_v41  ;;  %v3150_v55 = vadd.f32 %v3149_v53, %v3148_v56 }
 0x3f4   :  { %v3250_v13 = vsel %vm3249_vm11, %v3105_v54, %v3248_v47  ;;  %v3070_v1 = vmul.f32 %v7091_v38, %v7051_v49  ;;  %v3072_v6 = vmul.f32 %v7091_v38, %v7055_v11  ;;  %v3074_v33 = vmul.f32 %v7091_v38, %v7059_v28 }
 0x3f5   :  { %v3252_v44 = vsel %vm3251_vm12, %v3114_v43, %v3250_v13  ;;  %v3076_v51 = vmul.f32 %v7091_v38, %v7063_v4  ;;  %v3078_v59 = vmul.f32 %v7091_v38, %v7067_v35  ;;  %v3152_v23 = vsel %vm842_vm2, %v3064_v7, 0.0 }
 0x3f6   :  { %v3254_v63 = vsel %vm3253_vm13, %v3123_v21, %v3252_v44  ;;  %v3153_v49 = vadd.f32 %v3152_v23, %v7080_v22  ;;  %v3161_v48 = vsel %vm842_vm2, %v3066_v58, 0.0  ;;  %v3170_v11 = vsel %vm842_vm2, %v3068_v30, 0.0 }
 0x3f7   :  { %v3256_v28 = vsel %vm3255_vm14, %v3132_v45, %v3254_v63  ;;  %v3162_v3 = vadd.f32 %v3161_v48, %v7083_v60  ;;  %v3171_v29 = vadd.f32 %v3170_v11, %v7086_v32  ;;  %v3179_v4 = vsel %vm842_vm2, %v3070_v1, 0.0 }
 0x3f8   :  { %v3258_v35 = vsel %vm3257_vm15, %v3141_v62, %v3256_v28  ;;  %v3154_v38 = vrot.slane %v3153_v49, 4  ;;  %v3180_v18 = vadd.f32 %v3179_v4, %v7089_v36  ;;  %v3188_v14 = vsel %vm842_vm2, %v3072_v6, 0.0 }
 0x3f9   :  { %v3260_v22 = vsel %vm3259_vm1, %v3150_v55, %v3258_v35  ;;  %v3163_v50 = vrot.slane %v3162_v3, 4  ;;  %v3172_v37 = vrot.slane %v3171_v29, 4  ;;  %v3189_v5 = vadd.f32 %v3188_v14, %v7094_v61 }
 0x3fa   :  { %4398 = vmatmul.msk.f32.vlgmr.msrb.gmra.mxu3 %vm842_vm2, %v3260_v22  ;;  %v3155_v60 = vadd.f32 %v3154_v38, %v3153_v49  ;;  %v3181_v12 = vrot.slane %v3180_v18, 4  ;;  %v3197_v32 = vsel %vm842_vm2, %v3074_v33, 0.0  ;;  %v3206_v19 = vsel %vm842_vm2, %v3076_v51, 0.0 }
 0x3fb   :  { %v3164_v41 = vadd.f32 %v3163_v50, %v3162_v3  ;;  %v3173_v56 = vadd.f32 %v3172_v37, %v3171_v29  ;;  %v3190_v10 = vrot.slane %v3189_v5, 4  ;;  %v3198_v36 = vadd.f32 %v3197_v32, %v7097_v31 }
 0x3fc   :  { %v3156_v27 = vrot.slane %v3155_v60, 2  ;;  %v3182_v54 = vadd.f32 %v3181_v12, %v3180_v18  ;;  %v3207_v43 = vadd.f32 %v3206_v19, %v7100_v52  ;;  %v3215_v9 = vsel %vm842_vm2, %v3078_v59, 0.0 }
 0x3fd   :  { %v3165_v61 = vrot.slane %v3164_v41, 2  ;;  %v3174_v25 = vrot.slane %v3173_v56, 2  ;;  %v3191_v40 = vadd.f32 %v3190_v10, %v3189_v5  ;;  %v3199_v53 = vrot.slane %v3198_v36, 4 }
 0x3fe   :  { %v3157_v47 = vadd.f32 %v3156_v27, %v3155_v60  ;;  %v3183_v7 = vrot.slane %v3182_v54, 2  ;;  %v3208_v58 = vrot.slane %v3207_v43, 4  ;;  %v3216_v30 = vadd.f32 %v3215_v9, %v7103_v26 }
 0x3ff   :  { %v3166_v21 = vadd.f32 %v3165_v61, %v3164_v41  ;;  %v3175_v45 = vadd.f32 %v3174_v25, %v3173_v56  ;;  %v3192_v62 = vrot.slane %v3191_v40, 2  ;;  %v3200_v55 = vadd.f32 %v3199_v53, %v3198_v36  ;;  %v4469_v36 = vld [vmem:[%s7703_s9] ss:$0 sm:$0xff] }
 0x400   :  { %v3158_v31 = vrot.slane %v3157_v47, 1  ;;  %v3184_v13 = vadd.f32 %v3183_v7, %v3182_v54  ;;  %v3209_v1 = vadd.f32 %v3208_v58, %v3207_v43  ;;  %v3217_v6 = vrot.slane %v3216_v30, 4  ;;  %v3329_v7 = vld [vmem:[%s7704_s10 + $0x10] sm:$0xff] }
 0x401   :  { %v3167_v52 = vrot.slane %v3166_v21, 1  ;;  %v3176_v33 = vrot.slane %v3175_v45, 1  ;;  %v3193_v44 = vadd.f32 %v3192_v62, %v3191_v40  ;;  %v3201_v51 = vrot.slane %v3200_v55, 2 }
 0x402   :  { %v3159_v59 = vadd.f32 %v3158_v31, %v3157_v47  ;;  %v3185_v23 = vrot.slane %v3184_v13, 1  ;;  %v3210_v63 = vrot.slane %v3209_v1, 2  ;;  %v3218_v49 = vadd.f32 %v3217_v6, %v3216_v30  ;;  %v3330_v47 = vld [vmem:[%s7704_s10 + $0x18] sm:$0xff]  ;;  %v3328_v30 = vld [vmem:[%s7704_s10 + $0x8] sm:$0xff]  ;;  %v3327_v31 = vld [vmem:[%s7704_s10] sm:$0xff] }
 0x403   :  { %v3168_v48 = vadd.f32 %v3167_v52, %v3166_v21  ;;  %v3177_v11 = vadd.f32 %v3176_v33, %v3175_v45  ;;  %v3194_v28 = vrot.slane %v3193_v44, 1  ;;  %v3202_v26 = vadd.f32 %v3201_v51, %v3200_v55  ;;  %3349 = vmatpush.msrb.mxu1 %v3330_v47  ;;  %v4407_v21 = vld [vmem:[%s7701_s7 + $0x38] sm:$0xff]  ;;  %v4406_v45 = vld [vmem:[%s7701_s7 + $0x30] sm:$0xff] }
 0x404   :  { %v3211_v3 = vadd.f32 %v3210_v63, %v3209_v1  ;;  %v3219_v29 = vrot.slane %v3218_v49, 2  ;;  %v3186_v4 = vadd.f32 %v3185_v23, %v3184_v13  ;;  %3391 = vmatpush.msra.mxu3 %v4407_v21  ;;  %v4405_v13 = vld [vmem:[%s7701_s7 + $0x28] sm:$0xff]  ;;  %v7973_v21 = vld [vmem:[#allocation41_spill] sm:$0xff] }
 0x405   :  { %v3203_v35 = vrot.slane %v3202_v26, 1  ;;  %v3261_v38 = vsel %vm3247_vm10, %v3168_v48, %v3159_v59  ;;  %v3195_v18 = vadd.f32 %v3194_v28, %v3193_v44  ;;  %3350 = vmatpush.msrb.mxu1 %v3329_v7 }
 0x406   :  { %v3212_v14 = vrot.slane %v3211_v3, 1  ;;  %v3220_v22 = vadd.f32 %v3219_v29, %v3218_v49  ;;  %v3262_v50 = vsel %vm3249_vm11, %v3177_v11, %v3261_v38  ;;  %3392 = vmatpush.msra.mxu3 %v4406_v45 }
 0x407   :  { %v3204_v37 = vadd.f32 %v3203_v35, %v3202_v26  ;;  %v3263_v5 = vsel %vm3251_vm12, %v3186_v4, %v3262_v50  ;;  %3351 = vmatpush.msrb.mxu1 %v3328_v30 }
 0x408   :  { %v3213_v60 = vadd.f32 %v3212_v14, %v3211_v3  ;;  %v3221_v12 = vrot.slane %v3220_v22, 1  ;;  %v3264_v32 = vsel %vm3253_vm13, %v3195_v18, %v3263_v5  ;;  %3393 = vmatpush.msra.mxu3 %v4405_v13  ;;  %v4470_v5 = vld [vmem:[%s7705_s11] ss:$0 sm:$0xff] }
 0x409   :  { %v3265_v19 = vsel %vm3255_vm14, %v3204_v37, %v3264_v32  ;;  %3352 = vmatpush.msrb.mxu1 %v3327_v31  ;;  %v4404_v37 = vld [vmem:[%s7701_s7 + $0x20] sm:$0xff]  ;;  %v7975_v31 = vld [vmem:[#allocation58_spill] sm:$0xff] }
 0x40a   :  { %v3222_v41 = vadd.f32 %v3221_v12, %v3220_v22  ;;  %v3266_v56 = vsel %vm3257_vm15, %v3213_v60, %v3265_v19  ;;  %3394 = vmatpush.msra.mxu3 %v4404_v37  ;;  %v4920_v12 = vld [vmem:[%s7694_s0] sm:$0xff]  ;;  %v7991_v37 = vld [vmem:[#allocation50_spill] sm:$0xff]  ;;  %s4080_s0 = sshll.u32 %s7706_s12, 4  ;;  %s4081_s0 = int_to_ptr.hbm [resolvable:$true] %s4080_s0 }
 0x40c   :  { %v3267_v10 = vsel %vm3259_vm1, %v3222_v41, %v3266_v56 }
 0x40d   :  { %4399 = vmatmul.msk.f32.gmra.mxu3 %vm842_vm2, %v3267_v10 }
 0x47d   :  { %v3289_v27 = vpop.f32.mrf.mxu3 }
 0x47e   :  { %v3290_v54 = vadd.f32 %v4469_v36, %v3289_v27  ;;  %v4412_v27 = vld [vmem:[%s7702_s8 + $0x30] sm:$0xff] }
 0x480   :  { %v3297_v43 = vand.u32 2147483647, %v3290_v54  ;;  %v3295_v59 = vmax.f32 %v3290_v54, 0.0  ;;  %v4411_v54 = vld [vmem:[%s7702_s8 + $0x28] sm:$0xff] }
 0x482   :  { %v3299_v9 = vsub.f32 0.0, %v3297_v43  ;;  %v4468_v43 = vld [vmem:[%s7700_s6 + $0x1] ss:$0 sm:$0xff] }
 0x483   :  { %v2016_v47 = vadd.f32 %v4468_v43, %v6777_v16  ;;  %v2019_v7 = vadd.f32 %v4468_v43, %v6796_v46  ;;  %v2025_v45 = vadd.f32 %v4468_v43, %v7973_v21  ;;  %v7980_v46 = vld [vmem:[#allocation62_spill] sm:$0xff] }
 0x484   :  { %v3301_v61 = vmul.f32 1.442695, %v3299_v9  ;;  %v2001_v9 = vadd.f32 %v4468_v43, %v6558_v20  ;;  %v8001_v21 = vld [vmem:[#allocation70_spill] sm:$0xff] }
 0x486   :  { %4859 = vpow2.f32 %v3301_v61  ;;  %v2004_v61 = vadd.f32 %v4468_v43, %v6614_v17  ;;  %v7976_v17 = vld [vmem:[#allocation55_spill] sm:$0xff] }
 0x488   :  { %v7247_v20 = vmul.f32 %v2004_v61, %v7975_v31  ;;  %v7997_v61 = vld [vmem:[#allocation64_spill] sm:$0xff] }
 0x48c   :  { %v4860_v25 = vpop.eup %4859 }
 0x48d   :  { %v3305_v40 = vadd.f32 1.0, %v4860_v25  ;;  %v3308_v53 = vmul.f32 -0.5, %v4860_v25  ;;  %v3311_v1 = vand.u32 2147483647, %v4860_v25 }
 0x48f   :  { %4861 = vlog2.f32 %v3305_v40  ;;  %v3309_v55 = vadd.f32 1.0, %v3308_v53  ;;  %vm3312_vm3 = vcmp.lt.f32.partialorder %v3311_v1, 0.0004427343  ;;  %v2010_v40 = vadd.f32 %v4468_v43, %v6707_v0  ;;  %v7978_v0 = vld [vmem:[#allocation57_spill] sm:$0xff] }
 0x490   :  { %v3292_v58 = vpop.f32.mrf.mxu3  ;;  %v2013_v53 = vadd.f32 %v4468_v43, %v6743_v39 }
 0x491   :  { %v3293_v62 = vadd.f32 %v4469_v36, %v3292_v58  ;;  %v3310_v51 = vmul.f32 %v4860_v25, %v3309_v55  ;;  %v4413_v36 = vld [vmem:[%s7702_s8 + $0x38] sm:$0xff]  ;;  %v2007_v25 = vadd.f32 %v4468_v43, %v6663_v8  ;;  %v7972_v58 = vld [vmem:[#allocation40_spill] sm:$0xff]  ;;  %v7977_v8 = vld [vmem:[#allocation59_spill] sm:$0xff] }
 0x492   :  { %3634 = vmatpush.msra.mxu1 %v4413_v36  ;;  %v2022_v30 = vadd.f32 %v4468_v43, %v7972_v58  ;;  %v7251_v1 = vmul.f32 %v2010_v40, %v7977_v8  ;;  %v2100_v39 = vmul.f32 %v2013_v53, %v7978_v0  ;;  %v7998_v40 = vld [vmem:[#allocation66_spill] sm:$0xff]  ;;  %v8000_v58 = vld [vmem:[#allocation69_spill] sm:$0xff] }
 0x493   :  { %v3298_v6 = vand.u32 2147483647, %v3293_v62  ;;  %v3296_v18 = vmax.f32 %v3293_v62, 0.0  ;;  %v7974_v62 = vld [vmem:[#allocation54_spill] sm:$0xff]  ;;  %v2098_v13 = vmul.f32 %v2007_v25, %v7976_v17  ;;  %v2070_v25 = vadd.f32 %v4468_v43, %v7997_v61 }
 0x494   :  { %3635 = vmatpush.msra.mxu1 %v4412_v27  ;;  %v2096_v55 = vmul.f32 %v2001_v9, %v7974_v62  ;;  %v7995_v27 = vld [vmem:[#allocation56_spill] sm:$0xff] }
 0x495   :  { %v4862_v52 = vpop.eup %4861  ;;  %v3300_v33 = vsub.f32 0.0, %v3298_v6  ;;  %v7979_v6 = vld [vmem:[#allocation61_spill] sm:$0xff] }
 0x496   :  { %v3307_v44 = vmul.f32 0.6931472, %v4862_v52  ;;  %3636 = vmatpush.msra.mxu1 %v4411_v54  ;;  %v7255_v16 = vmul.f32 %v2016_v47, %v7979_v6  ;;  %v2102_v52 = vmul.f32 %v2019_v7, %v7980_v46  ;;  %v2064_v54 = vadd.f32 %v4468_v43, %v7995_v27  ;;  %v7999_v47 = vld [vmem:[#allocation67_spill] sm:$0xff] }
 0x497   :  { %v3303_v23 = vmul.f32 1.442695, %v3300_v33  ;;  %v7981_v33 = vld [vmem:[#allocation63_spill] sm:$0xff] }
 0x498   :  { %v3313_v63 = vsel %vm3312_vm3, %v3310_v51, %v3307_v44  ;;  %v7259_v44 = vmul.f32 %v2022_v30, %v7981_v33  ;;  %v7982_v51 = vld [vmem:[#allocation42_spill] sm:$0xff] }
 0x499   :  { %v3323_v49 = vadd.f32 %v3313_v63, %v3295_v59  ;;  %4863 = vpow2.f32 %v3303_v23  ;;  %v2028_v59 = vadd.f32 %v4468_v43, %v7982_v51  ;;  %v7983_v23 = vld [vmem:[#allocation43_spill] sm:$0xff] }
 0x49a   :  { %v2031_v63 = vadd.f32 %v4468_v43, %v7983_v23  ;;  %v8002_v51 = vld [vmem:[#allocation71_spill] sm:$0xff] }
 0x49b   :  { %v4400_v48 = vadd.f32 -0.6931472, %v3323_v49  ;;  %v7984_v49 = vld [vmem:[#allocation44_spill] sm:$0xff]  ;;  %v2105_v53 = vmul.f32 %v2028_v59, %v7998_v40 }
 0x49c   :  { %v2106_v7 = vmul.f32 %v2031_v63, %v7999_v47  ;;  %v8006_v63 = vld [vmem:[#allocation79_spill] sm:$0xff]  ;;  %v8021_v47 = vld [vmem:[#allocation9_spill] sm:$0xff] }
 0x49d   :  { %4402 = vmatmul.msk.f32.vlgmr.msrb.gmra.mxu1 %vm842_vm2, %v4400_v48  ;;  %v2034_v48 = vadd.f32 %v4468_v43, %v7984_v49  ;;  %v8003_v49 = vld [vmem:[#allocation73_spill] sm:$0xff] }
 0x49f   :  { %v4864_v11 = vpop.eup %4863  ;;  %v2107_v30 = vmul.f32 %v2034_v48, %v8000_v58 }
 0x4a0   :  { %v3314_v28 = vadd.f32 1.0, %v4864_v11  ;;  %v3317_v26 = vmul.f32 -0.5, %v4864_v11  ;;  %v3320_v29 = vand.u32 2147483647, %v4864_v11 }
 0x4a2   :  { %4865 = vlog2.f32 %v3314_v28  ;;  %v3318_v3 = vadd.f32 1.0, %v3317_v26  ;;  %vm3321_vm0 = vcmp.lt.f32.partialorder %v3320_v29, 0.0004427343  ;;  %v7986_v26 = vld [vmem:[#allocation65_spill] sm:$0xff]  ;;  %v7987_v29 = vld [vmem:[#allocation46_spill] sm:$0xff] }
 0x4a4   :  { %v3319_v38 = vmul.f32 %v4864_v11, %v3318_v3  ;;  %v7985_v11 = vld [vmem:[#allocation45_spill] sm:$0xff]  ;;  %v2104_v3 = vmul.f32 %v2025_v45, %v7986_v26 }
 0x4a5   :  { %v2037_v28 = vadd.f32 %v4468_v43, %v7985_v11 }
 0x4a7   :  { %v2108_v45 = vmul.f32 %v2037_v28, %v8001_v21  ;;  %v8007_v28 = vld [vmem:[#allocation82_spill] sm:$0xff]  ;;  %v8017_v21 = vld [vmem:[#allocation87_spill] sm:$0xff] }
 0x4a8   :  { %v4866_v4 = vpop.eup %4865 }
 0x4a9   :  { %v3316_v35 = vmul.f32 0.6931472, %v4866_v4  ;;  %v2040_v4 = vadd.f32 %v4468_v43, %v7987_v29  ;;  %v8004_v29 = vld [vmem:[#allocation74_spill] sm:$0xff] }
 0x4ab   :  { %v3322_v14 = vsel %vm3321_vm0, %v3319_v38, %v3316_v35  ;;  %v7988_v35 = vld [vmem:[#allocation47_spill] sm:$0xff]  ;;  %v2109_v23 = vmul.f32 %v2040_v4, %v8002_v51  ;;  %v7295_v4 = vmul.f32 %v2064_v54, %v8007_v28  ;;  %v8016_v54 = vld [vmem:[#allocation8_spill] sm:$0xff] }
 0x4ac   :  { %v3324_v22 = vadd.f32 %v3322_v14, %v3296_v18  ;;  %v2043_v38 = vadd.f32 %v4468_v43, %v7988_v35  ;;  %v7989_v18 = vld [vmem:[#allocation48_spill] sm:$0xff]  ;;  %v2091_v28 = vadd.f32 %v4468_v43, %v8016_v54 }
 0x4ad   :  { %v2046_v14 = vadd.f32 %v4468_v43, %v7989_v18  ;;  %v8005_v18 = vld [vmem:[#allocation68_spill] sm:$0xff] }
 0x4ae   :  { %v4401_v50 = vadd.f32 -0.6931472, %v3324_v22  ;;  %v7990_v22 = vld [vmem:[#allocation49_spill] sm:$0xff]  ;;  %v2110_v11 = vmul.f32 %v2043_v38, %v8003_v49  ;;  %v8008_v38 = vld [vmem:[#allocation83_spill] sm:$0xff] }
 0x4af   :  { %v2111_v35 = vmul.f32 %v2046_v14, %v8004_v29  ;;  %v8009_v14 = vld [vmem:[#allocation85_spill] sm:$0xff] }
 0x4b0   :  { %4403 = vmatmul.msk.f32.gmra.mxu1 %vm842_vm2, %v4401_v50  ;;  %v2049_v50 = vadd.f32 %v4468_v43, %v7990_v22  ;;  %v2073_v22 = vadd.f32 %v4468_v43, %v8005_v18  ;;  %v7299_v27 = vmul.f32 %v2070_v25, %v8009_v14 }
 0x51a   :  { %v3354_v60 = vpop.f32.mrf.mxu1 }
 0x51b   :  { %v3360_v32 = vadd.f32 %v4920_v12, %v3354_v60  ;;  %v7992_v60 = vld [vmem:[#allocation51_spill] sm:$0xff] }
 0x51c   :  { %v2055_v12 = vadd.f32 %v4468_v43, %v7992_v60 }
 0x51d   :  { %v7212_v19 = vadd.f32 %v4470_v5, %v3360_v32  ;;  %v7993_v32 = vld [vmem:[#allocation52_spill] sm:$0xff] }
 0x51e   :  { %v2114_v59 = vmul.f32 %v2055_v12, %v6922_v15  ;;  %v8013_v15 = vld [vmem:[#allocation84_spill] sm:$0xff] }
 0x51f   :  { %4408 = vmatmul.msk.f32.vlgmr.msra.gmra.mxu3 %vm842_vm2, %v7212_v19 }
 0x52d   :  { %v3357_v41 = vpop.f32.mrf.mxu1 }
 0x52e   :  { %v3361_v56 = vadd.f32 %v3357_v41, %v6860_v24  ;;  %v4410_v24 = vld [vmem:[%s7702_s8 + $0x20] sm:$0xff]  ;;  %v2058_v41 = vadd.f32 %v4468_v43, %v7993_v32 }
 0x52f   :  { %3637 = vmatpush.msra.mxu1 %v4410_v24  ;;  %v7996_v24 = vld [vmem:[#allocation60_spill] sm:$0xff] }
 0x530   :  { %v7217_v10 = vadd.f32 %v4470_v5, %v3361_v56  ;;  %v2052_v5 = vadd.f32 %v4468_v43, %v7991_v37  ;;  %v7994_v56 = vld [vmem:[#allocation53_spill] sm:$0xff]  ;;  %v2067_v9 = vadd.f32 %v4468_v43, %v7996_v24  ;;  %v2112_v37 = vmul.f32 %v2049_v50, %v6916_v2  ;;  %v8010_v50 = vld [vmem:[#allocation72_spill] sm:$0xff] }
 0x531   :  { %v2061_v36 = vadd.f32 %v4468_v43, %v7994_v56  ;;  %v7291_v32 = vmul.f32 %v2058_v41, %v8006_v63  ;;  %v2076_v61 = vadd.f32 %v4468_v43, %v8010_v50  ;;  %v2085_v41 = vadd.f32 %v4468_v43, %v8013_v15  ;;  %v8014_v63 = vld [vmem:[#allocation86_spill] sm:$0xff]  ;;  %v8018_v15 = vld [vmem:[#allocation5_spill] sm:$0xff] }
 0x532   :  { %4409 = vmatmul.msk.f32.gmra.mxu3 %vm842_vm2, %v7217_v10  ;;  %v7287_v60 = vmul.f32 %v2052_v5, %v6920_v42  ;;  %v2118_v56 = vmul.f32 %v2067_v9, %v8008_v38  ;;  %v8011_v5 = vld [vmem:[#allocation76_spill] sm:$0xff]  ;;  %v2120_v2 = vmul.f32 %v2073_v22, %v8014_v63  ;;  %v2094_v9 = vadd.f32 %v4468_v43, %v7069_v34  ;;  %v8019_v22 = vld [vmem:[#allocation6_spill] sm:$0xff] }
 0x533   :  { %v2116_v48 = vmul.f32 %v2061_v36, %v6928_v57  ;;  %v2079_v18 = vadd.f32 %v4468_v43, %v8011_v5  ;;  %v8012_v42 = vld [vmem:[#allocation80_spill] sm:$0xff] }
 0x534   :  { %v2082_v12 = vadd.f32 %v4468_v43, %v8012_v42  ;;  %v8015_v36 = vld [vmem:[#allocation88_spill] sm:$0xff]  ;;  %v7310_v42 = vmul.f32 %v2076_v61, %v8017_v21 }
 0x535   :  { %v2088_v57 = vadd.f32 %v4468_v43, %v8015_v36  ;;  %v2122_v58 = vmul.f32 %v2079_v18, %v8018_v15  ;;  %v8020_v36 = vld [vmem:[#allocation7_spill] sm:$0xff]  ;;  %v8022_v43 = vld [vmem:[#allocation10_spill] sm:$0xff] }
 0x536   :  { %v7314_v63 = vmul.f32 %v2082_v12, %v8019_v22  ;;  %v2124_v54 = vmul.f32 %v2085_v41, %v8020_v36 }
 0x537   :  { %v7318_v34 = vmul.f32 %v2088_v57, %v8021_v47 }
 0x5a2   :  { %v3396_v24 = vpop.f32.mrf.mxu3 }
 0x5a3   :  { %v3402_v38 = vmul.f32 %v3396_v24, %v2096_v55  ;;  %v3404_v25 = vmul.f32 %v3396_v24, %v2098_v13  ;;  %v3406_v14 = vmul.f32 %v3396_v24, %v2100_v39  ;;  %v3408_v29 = vmul.f32 %v3396_v24, %v2102_v52  ;;  %v8023_v13 = vld [vmem:[#allocation11_spill] sm:$0xff] }
 0x5a4   :  { %v3410_v49 = vmul.f32 %v3396_v24, %v2104_v3  ;;  %v3412_v50 = vmul.f32 %v3396_v24, %v2106_v7  ;;  %v3414_v51 = vmul.f32 %v3396_v24, %v2108_v45  ;;  %v3416_v5 = vmul.f32 %v3396_v24, %v2110_v11 }
 0x5a5   :  { %v2126_v55 = vmul.f32 %v2091_v28, %v8022_v43  ;;  %v7322_v39 = vmul.f32 %v2094_v9, %v8023_v13  ;;  %v3418_v52 = vmul.f32 %v3396_v24, %v2112_v37  ;;  %v3434_v3 = vsel %vm842_vm2, %v3402_v38, 0.0 }
 0x5a6   :  { %v3443_v7 = vsel %vm842_vm2, %v3404_v25, 0.0  ;;  %v3452_v45 = vsel %vm842_vm2, %v3406_v14, 0.0  ;;  %v3461_v11 = vsel %vm842_vm2, %v3408_v29, 0.0  ;;  %v3470_v61 = vsel %vm842_vm2, %v3410_v49, 0.0 }
 0x5a7   :  { %v3479_v18 = vsel %vm842_vm2, %v3412_v50, 0.0  ;;  %v3488_v57 = vsel %vm842_vm2, %v3414_v51, 0.0  ;;  %v3497_v28 = vsel %vm842_vm2, %v3416_v5, 0.0  ;;  %v7332_v12 = vmul.f32 %v3396_v24, %v2114_v59 }
 0x5a8   :  { %v7334_v41 = vmul.f32 %v3396_v24, %v2116_v48  ;;  %v7336_v37 = vmul.f32 %v3396_v24, %v2118_v56  ;;  %v7338_v38 = vmul.f32 %v3396_v24, %v2120_v2  ;;  %v7342_v14 = vmul.f32 %v3396_v24, %v2122_v58 }
 0x5a9   :  { %v7344_v29 = vmul.f32 %v3396_v24, %v2124_v54  ;;  %v7346_v49 = vmul.f32 %v3396_v24, %v2126_v55  ;;  %v7349_v51 = vsel %vm842_vm2, %v3418_v52, 0.0 }
 0x5b5   :  { %v7340_v9 = vpop.f32.mrf.mxu3 }
 0x5b6   :  { %v3403_v59 = vmul.f32 %v7340_v9, %v7247_v20  ;;  %v3405_v48 = vmul.f32 %v7340_v9, %v7251_v1  ;;  %v3407_v2 = vmul.f32 %v7340_v9, %v7255_v16  ;;  %v3409_v58 = vmul.f32 %v7340_v9, %v7259_v44 }
 0x5b7   :  { %v3411_v56 = vmul.f32 %v7340_v9, %v2105_v53  ;;  %v3413_v24 = vmul.f32 %v7340_v9, %v2107_v30  ;;  %v3415_v25 = vmul.f32 %v7340_v9, %v2109_v23  ;;  %v3417_v50 = vmul.f32 %v7340_v9, %v2111_v35 }
 0x5b8   :  { %v3435_v5 = vsel %vm842_vm2, %v3403_v59, 0.0  ;;  %v3444_v20 = vsel %vm842_vm2, %v3405_v48, 0.0  ;;  %v3453_v1 = vsel %vm842_vm2, %v3407_v2, 0.0  ;;  %v3462_v54 = vsel %vm842_vm2, %v3409_v58, 0.0 }
 0x5b9   :  { %v3436_v16 = vadd.f32 %v3435_v5, %v3434_v3  ;;  %v3445_v55 = vadd.f32 %v3444_v20, %v3443_v7  ;;  %v3454_v52 = vadd.f32 %v3453_v1, %v3452_v45  ;;  %v3463_v44 = vadd.f32 %v3462_v54, %v3461_v11 }
 0x5ba   :  { %v3471_v53 = vsel %vm842_vm2, %v3411_v56, 0.0  ;;  %v3480_v30 = vsel %vm842_vm2, %v3413_v24, 0.0  ;;  %v3489_v23 = vsel %vm842_vm2, %v3415_v25, 0.0  ;;  %v3498_v35 = vsel %vm842_vm2, %v3417_v50, 0.0 }
 0x5bb   :  { %v3437_v13 = vrot.slane %v3436_v16, 4  ;;  %v3446_v59 = vrot.slane %v3445_v55, 4  ;;  %v3455_v43 = vrot.slane %v3454_v52, 4  ;;  %v3464_v48 = vrot.slane %v3463_v44, 4 }
 0x5bc   :  { %v3472_v47 = vadd.f32 %v3471_v53, %v3470_v61  ;;  %v3481_v2 = vadd.f32 %v3480_v30, %v3479_v18  ;;  %v3490_v36 = vadd.f32 %v3489_v23, %v3488_v57  ;;  %v3499_v58 = vadd.f32 %v3498_v35, %v3497_v28 }
 0x5bd   :  { %v3438_v3 = vadd.f32 %v3437_v13, %v3436_v16  ;;  %v3447_v7 = vadd.f32 %v3446_v59, %v3445_v55  ;;  %v3456_v45 = vadd.f32 %v3455_v43, %v3454_v52  ;;  %v3465_v11 = vadd.f32 %v3464_v48, %v3463_v44 }
 0x5be   :  { %v3473_v5 = vrot.slane %v3472_v47, 4  ;;  %v3482_v56 = vrot.slane %v3481_v2, 4  ;;  %v3491_v20 = vrot.slane %v3490_v36, 4  ;;  %v3500_v24 = vrot.slane %v3499_v58, 4 }
 0x5bf   :  { %v3439_v1 = vrot.slane %v3438_v3, 2  ;;  %v3448_v25 = vrot.slane %v3447_v7, 2  ;;  %v3457_v54 = vrot.slane %v3456_v45, 2  ;;  %v3466_v50 = vrot.slane %v3465_v11, 2 }
 0x5c0   :  { %v3474_v22 = vadd.f32 %v3473_v5, %v3472_v47  ;;  %v3483_v15 = vadd.f32 %v3482_v56, %v3481_v2  ;;  %v3492_v21 = vadd.f32 %v3491_v20, %v3490_v36  ;;  %v3501_v40 = vadd.f32 %v3500_v24, %v3499_v58 }
 0x5c1   :  { %v3440_v61 = vadd.f32 %v3439_v1, %v3438_v3  ;;  %v3449_v18 = vadd.f32 %v3448_v25, %v3447_v7  ;;  %v3458_v57 = vadd.f32 %v3457_v54, %v3456_v45  ;;  %v3467_v28 = vadd.f32 %v3466_v50, %v3465_v11 }
 0x5c2   :  { %v3475_v13 = vrot.slane %v3474_v22, 2  ;;  %v3484_v16 = vrot.slane %v3483_v15, 2  ;;  %v3493_v43 = vrot.slane %v3492_v21, 2  ;;  %v3502_v55 = vrot.slane %v3501_v40, 2 }
 0x5c3   :  { %v3441_v52 = vrot.slane %v3440_v61, 1  ;;  %v3450_v44 = vrot.slane %v3449_v18, 1  ;;  %v3459_v53 = vrot.slane %v3458_v57, 1  ;;  %v3468_v30 = vrot.slane %v3467_v28, 1 }
 0x5c4   :  { %v3476_v23 = vadd.f32 %v3475_v13, %v3474_v22  ;;  %v3485_v35 = vadd.f32 %v3484_v16, %v3483_v15  ;;  %v3494_v59 = vadd.f32 %v3493_v43, %v3492_v21  ;;  %v3503_v48 = vadd.f32 %v3502_v55, %v3501_v40 }
 0x5c5   :  { %v3442_v47 = vadd.f32 %v3441_v52, %v3440_v61  ;;  %v3451_v2 = vadd.f32 %v3450_v44, %v3449_v18  ;;  %v3460_v36 = vadd.f32 %v3459_v53, %v3458_v57  ;;  %v3469_v58 = vadd.f32 %v3468_v30, %v3467_v28 }
 0x5c6   :  { %v3477_v3 = vrot.slane %v3476_v23, 1  ;;  %v3486_v7 = vrot.slane %v3485_v35, 1  ;;  %v3495_v45 = vrot.slane %v3494_v59, 1  ;;  %v3504_v11 = vrot.slane %v3503_v48, 1 }
 0x5c7   :  { %v3604_v5 = vsel %vm3247_vm10, %v3451_v2, %v3442_v47  ;;  %v3419_v56 = vmul.f32 %v7340_v9, %v7287_v60  ;;  %v3421_v20 = vmul.f32 %v7340_v9, %v7291_v32  ;;  %v3423_v21 = vmul.f32 %v7340_v9, %v7295_v4 }
 0x5c8   :  { %v3478_v40 = vadd.f32 %v3477_v3, %v3476_v23  ;;  %v3487_v15 = vadd.f32 %v3486_v7, %v3485_v35  ;;  %v3496_v22 = vadd.f32 %v3495_v45, %v3494_v59  ;;  %v3505_v24 = vadd.f32 %v3504_v11, %v3503_v48 }
 0x5c9   :  { %v3605_v1 = vsel %vm3249_vm11, %v3460_v36, %v3604_v5  ;;  %v3425_v25 = vmul.f32 %v7340_v9, %v7299_v27  ;;  %v3427_v54 = vmul.f32 %v7340_v9, %v7310_v42  ;;  %v3429_v60 = vmul.f32 %v7340_v9, %v7314_v63 }
 0x5ca   :  { %v3606_v32 = vsel %vm3251_vm12, %v3469_v58, %v3605_v1  ;;  %v3431_v4 = vmul.f32 %v7340_v9, %v7318_v34  ;;  %v3433_v50 = vmul.f32 %v7340_v9, %v7322_v39  ;;  %v3507_v61 = vsel %vm842_vm2, %v3419_v56, 0.0 }
 0x5cb   :  { %v3607_v18 = vsel %vm3253_vm13, %v3478_v40, %v3606_v32  ;;  %v3508_v27 = vadd.f32 %v3507_v61, %v7349_v51  ;;  %v3515_v42 = vsel %vm842_vm2, %v7332_v12, 0.0  ;;  %v3516_v57 = vsel %vm842_vm2, %v3421_v20, 0.0 }
 0x5cc   :  { %v3608_v63 = vsel %vm3255_vm14, %v3487_v15, %v3607_v18  ;;  %v3517_v28 = vadd.f32 %v3516_v57, %v3515_v42  ;;  %v3524_v34 = vsel %vm842_vm2, %v7334_v41, 0.0  ;;  %v3525_v13 = vsel %vm842_vm2, %v3423_v21, 0.0 }
 0x5cd   :  { %v3609_v39 = vsel %vm3257_vm15, %v3496_v22, %v3608_v63  ;;  %v3509_v9 = vrot.slane %v3508_v27, 4  ;;  %v3526_v16 = vadd.f32 %v3525_v13, %v3524_v34  ;;  %v3533_v51 = vsel %vm842_vm2, %v7336_v37, 0.0 }
 0x5ce   :  { %v3610_v43 = vsel %vm3259_vm1, %v3505_v24, %v3609_v39  ;;  %v3518_v12 = vrot.slane %v3517_v28, 4  ;;  %v3534_v55 = vsel %vm842_vm2, %v3425_v25, 0.0  ;;  %v3542_v52 = vsel %vm842_vm2, %v7338_v38, 0.0 }
 0x5cf   :  { %4415 = vmatmul.msk.f32.vlgmr.msra.gmra.mxu1 %vm842_vm2, %v3610_v43  ;;  %v3510_v41 = vadd.f32 %v3509_v9, %v3508_v27  ;;  %v3527_v44 = vrot.slane %v3526_v16, 4  ;;  %v3535_v53 = vadd.f32 %v3534_v55, %v3533_v51  ;;  %v3543_v30 = vsel %vm842_vm2, %v3427_v54, 0.0 }
 0x5d0   :  { %v3519_v23 = vadd.f32 %v3518_v12, %v3517_v28  ;;  %v3544_v35 = vadd.f32 %v3543_v30, %v3542_v52  ;;  %v3551_v37 = vsel %vm842_vm2, %v7342_v14, 0.0  ;;  %v3552_v59 = vsel %vm842_vm2, %v3429_v60, 0.0 }
 0x5d1   :  { %v3511_v48 = vrot.slane %v3510_v41, 2  ;;  %v3528_v47 = vadd.f32 %v3527_v44, %v3526_v16  ;;  %v3536_v2 = vrot.slane %v3535_v53, 4  ;;  %v3553_v36 = vadd.f32 %v3552_v59, %v3551_v37 }
 0x5d2   :  { %v3520_v58 = vrot.slane %v3519_v23, 2  ;;  %v3545_v38 = vrot.slane %v3544_v35, 4  ;;  %v3560_v3 = vsel %vm842_vm2, %v7344_v29, 0.0  ;;  %v3561_v7 = vsel %vm842_vm2, %v3431_v4, 0.0 }
 0x5d3   :  { %v3512_v45 = vadd.f32 %v3511_v48, %v3510_v41  ;;  %v3529_v11 = vrot.slane %v3528_v47, 2  ;;  %v3537_v5 = vadd.f32 %v3536_v2, %v3535_v53  ;;  %v3554_v56 = vrot.slane %v3553_v36, 4 }
 0x5d4   :  { %v3521_v20 = vadd.f32 %v3520_v58, %v3519_v23  ;;  %v3546_v21 = vadd.f32 %v3545_v38, %v3544_v35  ;;  %v3562_v14 = vadd.f32 %v3561_v7, %v3560_v3  ;;  %v3569_v40 = vsel %vm842_vm2, %v7346_v49, 0.0  ;;  %v4471_v58 = vld [vmem:[%s7703_s9 + $0x1] ss:$0 sm:$0xff] }
 0x5d5   :  { %v3513_v15 = vrot.slane %v3512_v45, 1  ;;  %v3530_v22 = vadd.f32 %v3529_v11, %v3528_v47  ;;  %v3538_v24 = vrot.slane %v3537_v5, 2  ;;  %v3555_v1 = vadd.f32 %v3554_v56, %v3553_v36 }
 0x5d6   :  { %v3522_v25 = vrot.slane %v3521_v20, 1  ;;  %v3547_v54 = vrot.slane %v3546_v21, 2  ;;  %v3563_v60 = vrot.slane %v3562_v14, 4  ;;  %v3570_v29 = vsel %vm842_vm2, %v3433_v50, 0.0 }
 0x5d7   :  { %v3514_v32 = vadd.f32 %v3513_v15, %v3512_v45  ;;  %v3531_v4 = vrot.slane %v3530_v22, 1  ;;  %v3539_v61 = vadd.f32 %v3538_v24, %v3537_v5  ;;  %v3556_v18 = vrot.slane %v3555_v1, 2  ;;  %v4421_v15 = vld [vmem:[%s7704_s10 + $0x30] sm:$0xff] }
 0x5d8   :  { %v3523_v27 = vadd.f32 %v3522_v25, %v3521_v20  ;;  %v3548_v42 = vadd.f32 %v3547_v54, %v3546_v21  ;;  %v3564_v57 = vadd.f32 %v3563_v60, %v3562_v14  ;;  %v3571_v63 = vadd.f32 %v3570_v29, %v3569_v40  ;;  %v4422_v40 = vld [vmem:[%s7704_s10 + $0x38] sm:$0xff]  ;;  %v4428_v54 = vld [vmem:[%s7701_s7 + $0x50] sm:$0xff] }
 0x5d9   :  { %v3532_v28 = vadd.f32 %v3531_v4, %v3530_v22  ;;  %v3540_v34 = vrot.slane %v3539_v61, 1  ;;  %v3557_v49 = vadd.f32 %v3556_v18, %v3555_v1  ;;  %3700 = vmatpush.msrb.mxu3 %v4422_v40  ;;  %v4420_v1 = vld [vmem:[%s7704_s10 + $0x28] sm:$0xff]  ;;  %v4429_v25 = vld [vmem:[%s7701_s7 + $0x58] sm:$0xff] }
 0x5da   :  { %v3549_v13 = vrot.slane %v3548_v42, 1  ;;  %v3565_v39 = vrot.slane %v3564_v57, 2  ;;  %v3572_v9 = vrot.slane %v3571_v63, 4  ;;  %v3611_v16 = vsel %vm3247_vm10, %v3523_v27, %v3514_v32  ;;  %3743 = vmatpush.msrb.mxu1 %v4429_v25  ;;  %v4427_v18 = vld [vmem:[%s7701_s7 + $0x48] sm:$0xff] }
 0x5db   :  { %v3541_v51 = vadd.f32 %v3540_v34, %v3539_v61  ;;  %v3558_v43 = vrot.slane %v3557_v49, 1  ;;  %v3612_v50 = vsel %vm3249_vm11, %v3532_v28, %v3611_v16  ;;  %3701 = vmatpush.msrb.mxu3 %v4421_v15  ;;  %v4419_v61 = vld [vmem:[%s7704_s10 + $0x20] sm:$0xff] }
 0x5dc   :  { %v3550_v12 = vadd.f32 %v3549_v13, %v3548_v42  ;;  %v3566_v55 = vadd.f32 %v3565_v39, %v3564_v57  ;;  %v3573_v52 = vadd.f32 %v3572_v9, %v3571_v63  ;;  %3744 = vmatpush.msrb.mxu1 %v4428_v54 }
 0x5dd   :  { %v3559_v41 = vadd.f32 %v3558_v43, %v3557_v49  ;;  %v3613_v44 = vsel %vm3251_vm12, %v3541_v51, %v3612_v50  ;;  %3702 = vmatpush.msrb.mxu3 %v4420_v1 }
 0x5de   :  { %v3567_v53 = vrot.slane %v3566_v55, 1  ;;  %v3574_v30 = vrot.slane %v3573_v52, 2  ;;  %v3614_v23 = vsel %vm3253_vm13, %v3550_v12, %v3613_v44  ;;  %3745 = vmatpush.msrb.mxu1 %v4427_v18  ;;  %v2908_v44 = vpop.f32.mrf.mxu2  ;;  %v8024_v18 = vld [vmem:[#allocation32_spill] sm:$0xff] }
 0x5df   :  { %v3615_v35 = vsel %vm3255_vm14, %v3559_v41, %v3614_v23  ;;  %3703 = vmatpush.msrb.mxu3 %v4419_v61 }
 0x5e0   :  { %v3568_v37 = vadd.f32 %v3567_v53, %v3566_v55  ;;  %v3575_v59 = vadd.f32 %v3574_v30, %v3573_v52 }
 0x5e2   :  { %v3576_v48 = vrot.slane %v3575_v59, 1  ;;  %v3616_v47 = vsel %vm3257_vm15, %v3568_v37, %v3615_v35 }
 0x5e4   :  { %v3577_v2 = vadd.f32 %v3576_v48, %v3575_v59  ;;  %v4426_v48 = vld [vmem:[%s7701_s7 + $0x40] sm:$0xff] }
 0x5e5   :  { %3746 = vmatpush.msrb.mxu1 %v4426_v48 }
 0x5e6   :  { %v3617_v36 = vsel %vm3259_vm1, %v3577_v2, %v3616_v47  ;;  %v2911_v53 = vpop.f32.mrf.mxu2 }
 0x5e7   :  { %4416 = vmatmul.msk.f32.gmra.mxu1 %vm842_vm2, %v3617_v36 }
 0x5ee   :  { %v2914_v30 = vpop.f32.mrf.mxu2 }
 0x5f6   :  { %v2917_v23 = vpop.f32.mrf.mxu2 }
 0x5fe   :  { %v2920_v35 = vpop.f32.mrf.mxu2 }
 0x606   :  { %v2923_v37 = vpop.f32.mrf.mxu2 }
 0x60e   :  { %v2926_v59 = vpop.f32.mrf.mxu2 }
 0x616   :  { %v2929_v47 = vpop.f32.mrf.mxu2 }
 0x61e   :  { %v7455_v2 = vpop.f32.mrf.mxu2 }
 0x626   :  { %v7457_v36 = vpop.f32.mrf.mxu2 }
 0x64c   :  { %v3639_v38 = vpop.f32.mrf.mxu1 }
 0x64d   :  { %v3640_v3 = vadd.f32 %v4471_v58, %v3639_v38 }
 0x64f   :  { %v3647_v7 = vand.u32 2147483647, %v3640_v3  ;;  %v3645_v4 = vmax.f32 %v3640_v3, 0.0 }
 0x651   :  { %v3649_v45 = vsub.f32 0.0, %v3647_v7 }
 0x653   :  { %v3651_v11 = vmul.f32 1.442695, %v3649_v45  ;;  %v2938_v45 = vpop.f32.mrf.mxu2 }
 0x655   :  { %4867 = vpow2.f32 %v3651_v11 }
 0x65b   :  { %v4868_v5 = vpop.eup %4867  ;;  %v2941_v11 = vpop.f32.mrf.mxu2 }
 0x65c   :  { %v3655_v56 = vadd.f32 1.0, %v4868_v5  ;;  %v3658_v20 = vmul.f32 -0.5, %v4868_v5  ;;  %v3661_v14 = vand.u32 2147483647, %v4868_v5 }
 0x65e   :  { %4869 = vlog2.f32 %v3655_v56  ;;  %v3659_v21 = vadd.f32 1.0, %v3658_v20  ;;  %vm3662_vm4 = vcmp.lt.f32.partialorder %v3661_v14, 0.0004427343 }
 0x660   :  { %v3660_v29 = vmul.f32 %v4868_v5, %v3659_v21 }
 0x663   :  { %v2944_v21 = vpop.f32.mrf.mxu2 }
 0x664   :  { %v4870_v22 = vpop.eup %4869  ;;  %v3642_v24 = vpop.f32.mrf.mxu1 }
 0x665   :  { %v3657_v60 = vmul.f32 0.6931472, %v4870_v22  ;;  %v3643_v32 = vadd.f32 %v4471_v58, %v3642_v24  ;;  %v4472_v58 = vld [vmem:[%s7705_s11 + $0x1] ss:$0 sm:$0xff] }
 0x667   :  { %v3663_v27 = vsel %vm3662_vm4, %v3660_v29, %v3657_v60  ;;  %v3648_v42 = vand.u32 2147483647, %v3643_v32  ;;  %v3646_v12 = vmax.f32 %v3643_v32, 0.0  ;;  %v4435_v60 = vld [vmem:[%s7702_s8 + $0x58] sm:$0xff]  ;;  %v4433_v29 = vld [vmem:[%s7702_s8 + $0x48] sm:$0xff]  ;;  %v4432_v32 = vld [vmem:[%s7702_s8 + $0x40] sm:$0xff] }
 0x668   :  { %v3673_v57 = vadd.f32 %v3663_v27, %v3645_v4  ;;  %3986 = vmatpush.msra.mxu3 %v4435_v60  ;;  %v4467_v4 = vld [vmem:[%s7700_s6 + $0x2] ss:$0 sm:$0xff] }
 0x669   :  { %v3650_v63 = vsub.f32 0.0, %v3648_v42  ;;  %v2885_v27 = vadd.f32 %v4467_v4, %v8024_v18  ;;  %v8025_v42 = vld [vmem:[#allocation33_spill] sm:$0xff]  ;;  %v2918_v48 = vadd.f32 %v4467_v4, %v2917_v23  ;;  %v8032_v23 = vld [vmem:[#allocation66_spill] sm:$0xff] }
 0x66a   :  { %v4417_v28 = vadd.f32 -0.6931472, %v3673_v57  ;;  %v2888_v57 = vadd.f32 %v4467_v4, %v8025_v42  ;;  %v8037_v18 = vld [vmem:[#allocation73_spill] sm:$0xff]  ;;  %v2936_v42 = vadd.f32 %v4467_v4, %v7457_v36  ;;  %v8041_v36 = vld [vmem:[#allocation78_spill] sm:$0xff] }
 0x66b   :  { %v3653_v34 = vmul.f32 1.442695, %v3650_v63  ;;  %v2947_v14 = vpop.f32.mrf.mxu2  ;;  %v8026_v63 = vld [vmem:[#allocation34_spill] sm:$0xff] }
 0x66c   :  { %4423 = vmatmul.msk.f32.vlgmr.msrb.gmra.mxu3 %vm842_vm2, %v4417_v28  ;;  %v2891_v28 = vadd.f32 %v4467_v4, %v8026_v63  ;;  %v7497_v60 = vmul.f32 %v2888_v57, %v7975_v31  ;;  %v2939_v57 = vadd.f32 %v4467_v4, %v2938_v45  ;;  %v2942_v63 = vadd.f32 %v4467_v4, %v2941_v11  ;;  %v8042_v11 = vld [vmem:[#allocation79_spill] sm:$0xff] }
 0x66d   :  { %4871 = vpow2.f32 %v3653_v34  ;;  %v8027_v34 = vld [vmem:[#allocation35_spill] sm:$0xff] }
 0x66e   :  { %v2998_v45 = vmul.f32 %v2939_v57, %v8041_v36  ;;  %v8054_v57 = vld [vmem:[#allocation11_spill] sm:$0xff] }
 0x673   :  { %v4872_v49 = vpop.eup %4871  ;;  %v2950_v40 = vpop.f32.mrf.mxu2 }
 0x674   :  { %v3664_v13 = vadd.f32 1.0, %v4872_v49  ;;  %v3667_v39 = vmul.f32 -0.5, %v4872_v49  ;;  %v3670_v16 = vand.u32 2147483647, %v4872_v49 }
 0x676   :  { %4873 = vlog2.f32 %v3664_v13  ;;  %v3668_v9 = vadd.f32 1.0, %v3667_v39  ;;  %vm3671_vm5 = vcmp.lt.f32.partialorder %v3670_v16, 0.0004427343  ;;  %v8028_v13 = vld [vmem:[#allocation36_spill] sm:$0xff] }
 0x677   :  { %v2897_v39 = vadd.f32 %v4467_v4, %v8028_v13  ;;  %v2951_v13 = vadd.f32 %v4467_v4, %v2950_v40 }
 0x678   :  { %v3669_v50 = vmul.f32 %v4872_v49, %v3668_v9  ;;  %v2894_v49 = vadd.f32 %v4467_v4, %v8027_v34  ;;  %v8029_v9 = vld [vmem:[#allocation37_spill] sm:$0xff]  ;;  %v2945_v34 = vadd.f32 %v4467_v4, %v2944_v21  ;;  %v7535_v21 = vmul.f32 %v2942_v63, %v8042_v11 }
 0x679   :  { %v2900_v16 = vadd.f32 %v4467_v4, %v8029_v9 }
 0x67b   :  { %v2953_v15 = vpop.f32.mrf.mxu2 }
 0x67c   :  { %v4874_v51 = vpop.eup %4873 }
 0x67d   :  { %v3666_v43 = vmul.f32 0.6931472, %v4874_v51  ;;  %v8030_v51 = vld [vmem:[#allocation38_spill] sm:$0xff] }
 0x67f   :  { %v3672_v55 = vsel %vm3671_vm5, %v3669_v50, %v3666_v43  ;;  %v2903_v43 = vadd.f32 %v4467_v4, %v8030_v51  ;;  %v8031_v50 = vld [vmem:[#allocation39_spill] sm:$0xff] }
 0x680   :  { %v3674_v52 = vadd.f32 %v3672_v55, %v3646_v12  ;;  %v2906_v12 = vadd.f32 %v4467_v4, %v8031_v50  ;;  %v2909_v55 = vadd.f32 %v4467_v4, %v2908_v44  ;;  %v7505_v44 = vmul.f32 %v2900_v16, %v7979_v6 }
 0x682   :  { %v4418_v41 = vadd.f32 -0.6931472, %v3674_v52  ;;  %v2912_v52 = vadd.f32 %v4467_v4, %v2911_v53  ;;  %v2986_v53 = vmul.f32 %v2903_v43, %v7980_v46 }
 0x684   :  { %4424 = vmatmul.msk.f32.gmra.mxu3 %vm842_vm2, %v4418_v41  ;;  %v2915_v41 = vadd.f32 %v4467_v4, %v2914_v30  ;;  %v7509_v30 = vmul.f32 %v2906_v12, %v7981_v33  ;;  %v7513_v31 = vmul.f32 %v2912_v52, %v8032_v23 }
 0x6ef   :  { %v3705_v38 = vpop.f32.mrf.mxu3 }
 0x6f0   :  { %v3711_v3 = vadd.f32 %v3705_v38, %v7212_v19  ;;  %v2956_v19 = vpop.f32.mrf.mxu2  ;;  %v2924_v38 = vadd.f32 %v4467_v4, %v2923_v37  ;;  %v8034_v37 = vld [vmem:[#allocation69_spill] sm:$0xff] }
 0x6f1   :  { %v2957_v9 = vadd.f32 %v4467_v4, %v2956_v19 }
 0x6f2   :  { %v7463_v7 = vadd.f32 %v4472_v58, %v3711_v3  ;;  %v2927_v3 = vadd.f32 %v4467_v4, %v2926_v59  ;;  %v8035_v59 = vld [vmem:[#allocation70_spill] sm:$0xff] }
 0x6f4   :  { %4430 = vmatmul.msk.f32.vlgmr.msrb.gmra.mxu1 %vm842_vm2, %v7463_v7  ;;  %v2994_v46 = vmul.f32 %v2927_v3, %v8037_v18  ;;  %v8052_v18 = vld [vmem:[#allocation9_spill] sm:$0xff] }
 0x6f8   :  { %v2959_v22 = vpop.f32.mrf.mxu2 }
 0x6f9   :  { %v2960_v16 = vadd.f32 %v4467_v4, %v2959_v22  ;;  %v8045_v22 = vld [vmem:[#allocation83_spill] sm:$0xff] }
 0x700   :  { %v2962_v24 = vpop.f32.mrf.mxu2 }
 0x701   :  { %v2963_v51 = vadd.f32 %v4467_v4, %v2962_v24  ;;  %v3002_v24 = vmul.f32 %v2951_v13, %v8045_v22 }
 0x707   :  { %v3708_v5 = vpop.f32.mrf.mxu3 }
 0x708   :  { %v3712_v56 = vadd.f32 %v3708_v5, %v7217_v10  ;;  %v2965_v1 = vpop.f32.mrf.mxu2  ;;  %v4434_v10 = vld [vmem:[%s7702_s8 + $0x50] sm:$0xff]  ;;  %v2930_v5 = vadd.f32 %v4467_v4, %v2929_v47  ;;  %v8036_v47 = vld [vmem:[#allocation71_spill] sm:$0xff] }
 0x709   :  { %3987 = vmatpush.msra.mxu3 %v4434_v10  ;;  %v2982_v10 = vmul.f32 %v2891_v28, %v7976_v17  ;;  %v7521_v6 = vmul.f32 %v2924_v38, %v8036_v47  ;;  %v2966_v43 = vadd.f32 %v4467_v4, %v2965_v1  ;;  %v8046_v1 = vld [vmem:[#allocation85_spill] sm:$0xff]  ;;  %v8048_v38 = vld [vmem:[#allocation87_spill] sm:$0xff] }
 0x70a   :  { %v7468_v20 = vadd.f32 %v4472_v58, %v3712_v56  ;;  %v2921_v58 = vadd.f32 %v4467_v4, %v2920_v35  ;;  %v2980_v56 = vmul.f32 %v2885_v27, %v7974_v62  ;;  %v2988_v62 = vmul.f32 %v2909_v55, %v7986_v26  ;;  %v8033_v35 = vld [vmem:[#allocation67_spill] sm:$0xff]  ;;  %v8038_v27 = vld [vmem:[#allocation74_spill] sm:$0xff] }
 0x70b   :  { %3988 = vmatpush.msra.mxu3 %v4433_v29  ;;  %v7501_v29 = vmul.f32 %v2894_v49, %v7977_v8  ;;  %v2990_v17 = vmul.f32 %v2915_v41, %v8033_v35  ;;  %v7517_v8 = vmul.f32 %v2918_v48, %v8034_v37  ;;  %v7525_v33 = vmul.f32 %v2930_v5, %v8038_v27  ;;  %v8039_v41 = vld [vmem:[#allocation75_spill] sm:$0xff]  ;;  %v8049_v5 = vld [vmem:[#allocation5_spill] sm:$0xff]  ;;  %v8050_v35 = vld [vmem:[#allocation6_spill] sm:$0xff] }
 0x70c   :  { %4431 = vmatmul.msk.f32.gmra.mxu1 %vm842_vm2, %v7468_v20  ;;  %v2933_v26 = vadd.f32 %v4467_v4, %v7455_v2  ;;  %v2948_v49 = vadd.f32 %v4467_v4, %v2947_v14  ;;  %v8040_v2 = vld [vmem:[#allocation77_spill] sm:$0xff]  ;;  %v7547_v3 = vmul.f32 %v2960_v16, %v8048_v38  ;;  %v3006_v23 = vmul.f32 %v2963_v51, %v8049_v5 }
 0x70d   :  { %3989 = vmatpush.msra.mxu3 %v4432_v32  ;;  %v2984_v32 = vmul.f32 %v2897_v39, %v7978_v0  ;;  %v2992_v0 = vmul.f32 %v2921_v58, %v8035_v59  ;;  %v2954_v39 = vadd.f32 %v4467_v4, %v2953_v15  ;;  %v7531_v58 = vmul.f32 %v2936_v42, %v8040_v2  ;;  %v8043_v14 = vld [vmem:[#allocation81_spill] sm:$0xff]  ;;  %v8044_v15 = vld [vmem:[#allocation82_spill] sm:$0xff]  ;;  %v8051_v59 = vld [vmem:[#allocation7_spill] sm:$0xff] }
 0x70e   :  { %v2996_v48 = vmul.f32 %v2933_v26, %v8039_v41  ;;  %v3000_v40 = vmul.f32 %v2945_v34, %v8043_v14  ;;  %v7539_v19 = vmul.f32 %v2948_v49, %v8044_v15  ;;  %v7551_v37 = vmul.f32 %v2966_v43, %v8050_v35  ;;  %v8053_v26 = vld [vmem:[#allocation10_spill] sm:$0xff] }
 0x710   :  { %v2968_v25 = vpop.f32.mrf.mxu2 }
 0x711   :  { %v2969_v50 = vadd.f32 %v4467_v4, %v2968_v25  ;;  %v7543_v25 = vmul.f32 %v2954_v39, %v8046_v1 }
 0x713   :  { %v3008_v47 = vmul.f32 %v2969_v50, %v8051_v59 }
 0x718   :  { %v2971_v54 = vpop.f32.mrf.mxu2 }
 0x719   :  { %v2972_v12 = vadd.f32 %v4467_v4, %v2971_v54 }
 0x71b   :  { %v7555_v27 = vmul.f32 %v2972_v12, %v8052_v18 }
 0x720   :  { %v2974_v61 = vpop.f32.mrf.mxu2 }
 0x721   :  { %v2975_v55 = vadd.f32 %v4467_v4, %v2974_v61 }
 0x723   :  { %v3010_v42 = vmul.f32 %v2975_v55, %v8053_v26 }
 0x728   :  { %v2977_v28 = vpop.f32.mrf.mxu2 }
 0x729   :  { %v2978_v52 = vadd.f32 %v4467_v4, %v2977_v28  ;;  %v8047_v4 = vld [vmem:[#allocation86_spill] sm:$0xff] }
 0x72a   :  { %v3004_v61 = vmul.f32 %v2957_v9, %v8047_v4 }
 0x72b   :  { %v7559_v63 = vmul.f32 %v2978_v52, %v8054_v57 }
 0x771   :  { %v3748_v54 = vpop.f32.mrf.mxu1 }
 0x772   :  { %v3754_v28 = vmul.f32 %v3748_v54, %v2980_v56  ;;  %v3756_v34 = vmul.f32 %v3748_v54, %v2982_v10  ;;  %v3758_v49 = vmul.f32 %v3748_v54, %v2984_v32  ;;  %v3760_v13 = vmul.f32 %v3748_v54, %v2986_v53 }
 0x773   :  { %v3762_v39 = vmul.f32 %v3748_v54, %v2988_v62  ;;  %v3764_v9 = vmul.f32 %v3748_v54, %v2990_v17  ;;  %v3766_v16 = vmul.f32 %v3748_v54, %v2992_v0  ;;  %v3768_v51 = vmul.f32 %v3748_v54, %v2994_v46 }
 0x774   :  { %v3770_v43 = vmul.f32 %v3748_v54, %v2996_v48  ;;  %v3772_v41 = vmul.f32 %v3748_v54, %v2998_v45  ;;  %v3774_v2 = vmul.f32 %v3748_v54, %v3000_v40  ;;  %v3776_v50 = vmul.f32 %v3748_v54, %v3002_v24 }
 0x775   :  { %v3778_v36 = vmul.f32 %v3748_v54, %v3004_v61  ;;  %v3780_v12 = vmul.f32 %v3748_v54, %v3006_v23  ;;  %v3782_v11 = vmul.f32 %v3748_v54, %v3008_v47  ;;  %v3784_v14 = vmul.f32 %v3748_v54, %v3010_v42 }
 0x776   :  { %v3786_v55 = vsel %vm842_vm2, %v3754_v28, 0.0  ;;  %v3795_v52 = vsel %vm842_vm2, %v3756_v34, 0.0  ;;  %v3804_v56 = vsel %vm842_vm2, %v3758_v49, 0.0  ;;  %v3813_v10 = vsel %vm842_vm2, %v3760_v13, 0.0 }
 0x777   :  { %v3822_v32 = vsel %vm842_vm2, %v3762_v39, 0.0  ;;  %v3831_v53 = vsel %vm842_vm2, %v3764_v9, 0.0  ;;  %v3840_v62 = vsel %vm842_vm2, %v3766_v16, 0.0  ;;  %v3849_v17 = vsel %vm842_vm2, %v3768_v51, 0.0 }
 0x778   :  { %v7570_v0 = vsel %vm842_vm2, %v3770_v43, 0.0  ;;  %v7573_v46 = vsel %vm842_vm2, %v3772_v41, 0.0  ;;  %v7576_v48 = vsel %vm842_vm2, %v3774_v2, 0.0  ;;  %v7579_v45 = vsel %vm842_vm2, %v3776_v50, 0.0 }
 0x779   :  { %v7584_v15 = vsel %vm842_vm2, %v3778_v36, 0.0  ;;  %v7587_v22 = vsel %vm842_vm2, %v3780_v12, 0.0  ;;  %v7590_v24 = vsel %vm842_vm2, %v3782_v11, 0.0  ;;  %v7593_v1 = vsel %vm842_vm2, %v3784_v14, 0.0 }
 0x789   :  { %v7581_v40 = vpop.f32.mrf.mxu1 }
 0x78a   :  { %v3755_v54 = vmul.f32 %v7581_v40, %v7497_v60  ;;  %v3757_v4 = vmul.f32 %v7581_v40, %v7501_v29  ;;  %v3759_v61 = vmul.f32 %v7581_v40, %v7505_v44  ;;  %v3761_v38 = vmul.f32 %v7581_v40, %v7509_v30 }
 0x78b   :  { %v3763_v5 = vmul.f32 %v7581_v40, %v7513_v31  ;;  %v3765_v23 = vmul.f32 %v7581_v40, %v7517_v8  ;;  %v3767_v35 = vmul.f32 %v7581_v40, %v7521_v6  ;;  %v3769_v60 = vmul.f32 %v7581_v40, %v7525_v33 }
 0x78c   :  { %v3787_v29 = vsel %vm842_vm2, %v3755_v54, 0.0  ;;  %v3796_v59 = vsel %vm842_vm2, %v3757_v4, 0.0  ;;  %v3805_v44 = vsel %vm842_vm2, %v3759_v61, 0.0  ;;  %v3814_v30 = vsel %vm842_vm2, %v3761_v38, 0.0 }
 0x78d   :  { %v3788_v47 = vadd.f32 %v3787_v29, %v3786_v55  ;;  %v3797_v18 = vadd.f32 %v3796_v59, %v3795_v52  ;;  %v3806_v31 = vadd.f32 %v3805_v44, %v3804_v56  ;;  %v3815_v26 = vadd.f32 %v3814_v30, %v3813_v10 }
 0x78e   :  { %v3823_v8 = vsel %vm842_vm2, %v3763_v5, 0.0  ;;  %v3832_v42 = vsel %vm842_vm2, %v3765_v23, 0.0  ;;  %v3841_v6 = vsel %vm842_vm2, %v3767_v35, 0.0  ;;  %v3850_v33 = vsel %vm842_vm2, %v3769_v60, 0.0 }
 0x78f   :  { %v3789_v57 = vrot.slane %v3788_v47, 4  ;;  %v3798_v28 = vrot.slane %v3797_v18, 4  ;;  %v3807_v34 = vrot.slane %v3806_v31, 4  ;;  %v3816_v49 = vrot.slane %v3815_v26, 4 }
 0x790   :  { %v3824_v13 = vadd.f32 %v3823_v8, %v3822_v32  ;;  %v3833_v39 = vadd.f32 %v3832_v42, %v3831_v53  ;;  %v3842_v9 = vadd.f32 %v3841_v6, %v3840_v62  ;;  %v3851_v16 = vadd.f32 %v3850_v33, %v3849_v17 }
 0x791   :  { %v3790_v51 = vadd.f32 %v3789_v57, %v3788_v47  ;;  %v3799_v43 = vadd.f32 %v3798_v28, %v3797_v18  ;;  %v3808_v41 = vadd.f32 %v3807_v34, %v3806_v31  ;;  %v3817_v2 = vadd.f32 %v3816_v49, %v3815_v26 }
 0x792   :  { %v3825_v50 = vrot.slane %v3824_v13, 4  ;;  %v3834_v36 = vrot.slane %v3833_v39, 4  ;;  %v3843_v12 = vrot.slane %v3842_v9, 4  ;;  %v3852_v11 = vrot.slane %v3851_v16, 4 }
 0x793   :  { %v3791_v14 = vrot.slane %v3790_v51, 2  ;;  %v3800_v55 = vrot.slane %v3799_v43, 2  ;;  %v3809_v52 = vrot.slane %v3808_v41, 2  ;;  %v3818_v56 = vrot.slane %v3817_v2, 2 }
 0x794   :  { %v3826_v10 = vadd.f32 %v3825_v50, %v3824_v13  ;;  %v3835_v54 = vadd.f32 %v3834_v36, %v3833_v39  ;;  %v3844_v4 = vadd.f32 %v3843_v12, %v3842_v9  ;;  %v3853_v61 = vadd.f32 %v3852_v11, %v3851_v16 }
 0x795   :  { %v3792_v32 = vadd.f32 %v3791_v14, %v3790_v51  ;;  %v3801_v53 = vadd.f32 %v3800_v55, %v3799_v43  ;;  %v3810_v62 = vadd.f32 %v3809_v52, %v3808_v41  ;;  %v3819_v17 = vadd.f32 %v3818_v56, %v3817_v2 }
 0x796   :  { %v3827_v38 = vrot.slane %v3826_v10, 2  ;;  %v3836_v5 = vrot.slane %v3835_v54, 2  ;;  %v3845_v23 = vrot.slane %v3844_v4, 2  ;;  %v3854_v35 = vrot.slane %v3853_v61, 2 }
 0x797   :  { %v3793_v60 = vrot.slane %v3792_v32, 1  ;;  %v3802_v29 = vrot.slane %v3801_v53, 1  ;;  %v3811_v59 = vrot.slane %v3810_v62, 1  ;;  %v3820_v44 = vrot.slane %v3819_v17, 1 }
 0x798   :  { %v3828_v30 = vadd.f32 %v3827_v38, %v3826_v10  ;;  %v3837_v47 = vadd.f32 %v3836_v5, %v3835_v54  ;;  %v3846_v18 = vadd.f32 %v3845_v23, %v3844_v4  ;;  %v3855_v31 = vadd.f32 %v3854_v35, %v3853_v61 }
 0x799   :  { %v3794_v26 = vadd.f32 %v3793_v60, %v3792_v32  ;;  %v3803_v8 = vadd.f32 %v3802_v29, %v3801_v53  ;;  %v3812_v42 = vadd.f32 %v3811_v59, %v3810_v62  ;;  %v3821_v6 = vadd.f32 %v3820_v44, %v3819_v17 }
 0x79a   :  { %v3829_v33 = vrot.slane %v3828_v30, 1  ;;  %v3838_v57 = vrot.slane %v3837_v47, 1  ;;  %v3847_v28 = vrot.slane %v3846_v18, 1  ;;  %v3856_v34 = vrot.slane %v3855_v31, 1 }
 0x79b   :  { %v3956_v49 = vsel %vm3247_vm10, %v3803_v8, %v3794_v26  ;;  %v3771_v13 = vmul.f32 %v7581_v40, %v7531_v58  ;;  %v3773_v39 = vmul.f32 %v7581_v40, %v7535_v21  ;;  %v3775_v9 = vmul.f32 %v7581_v40, %v7539_v19 }
 0x79c   :  { %v3830_v16 = vadd.f32 %v3829_v33, %v3828_v30  ;;  %v3839_v51 = vadd.f32 %v3838_v57, %v3837_v47  ;;  %v3848_v43 = vadd.f32 %v3847_v28, %v3846_v18  ;;  %v3857_v41 = vadd.f32 %v3856_v34, %v3855_v31 }
 0x79d   :  { %v3957_v2 = vsel %vm3249_vm11, %v3812_v42, %v3956_v49  ;;  %v3777_v50 = vmul.f32 %v7581_v40, %v7543_v25  ;;  %v3779_v36 = vmul.f32 %v7581_v40, %v7547_v3  ;;  %v3781_v58 = vmul.f32 %v7581_v40, %v7551_v37 }
 0x79e   :  { %v3958_v21 = vsel %vm3251_vm12, %v3821_v6, %v3957_v2  ;;  %v3783_v19 = vmul.f32 %v7581_v40, %v7555_v27  ;;  %v3785_v12 = vmul.f32 %v7581_v40, %v7559_v63  ;;  %v3859_v11 = vsel %vm842_vm2, %v3771_v13, 0.0 }
 0x79f   :  { %v3959_v14 = vsel %vm3253_vm13, %v3830_v16, %v3958_v21  ;;  %v3860_v25 = vadd.f32 %v3859_v11, %v7570_v0  ;;  %v3868_v55 = vsel %vm842_vm2, %v3773_v39, 0.0  ;;  %v3877_v3 = vsel %vm842_vm2, %v3775_v9, 0.0 }
 0x7a0   :  { %v3960_v37 = vsel %vm3255_vm14, %v3839_v51, %v3959_v14  ;;  %v3869_v52 = vadd.f32 %v3868_v55, %v7573_v46  ;;  %v3878_v56 = vadd.f32 %v3877_v3, %v7576_v48  ;;  %v3886_v27 = vsel %vm842_vm2, %v3777_v50, 0.0 }
 0x7a1   :  { %v3961_v63 = vsel %vm3257_vm15, %v3848_v43, %v3960_v37  ;;  %v3861_v40 = vrot.slane %v3860_v25, 4  ;;  %v3887_v10 = vadd.f32 %v3886_v27, %v7579_v45  ;;  %v3895_v54 = vsel %vm842_vm2, %v3779_v36, 0.0 }
 0x7a2   :  { %v3962_v0 = vsel %vm3259_vm1, %v3857_v41, %v3961_v63  ;;  %v3870_v4 = vrot.slane %v3869_v52, 4  ;;  %v3879_v61 = vrot.slane %v3878_v56, 4  ;;  %v3896_v32 = vadd.f32 %v3895_v54, %v7584_v15 }
 0x7a3   :  { %4437 = vmatmul.msk.f32.vlgmr.msra.gmra.mxu3 %vm842_vm2, %v3962_v0  ;;  %v3862_v46 = vadd.f32 %v3861_v40, %v3860_v25  ;;  %v3888_v53 = vrot.slane %v3887_v10, 4  ;;  %v3904_v48 = vsel %vm842_vm2, %v3781_v58, 0.0  ;;  %v3913_v62 = vsel %vm842_vm2, %v3783_v19, 0.0  ;;  %v4473_v0 = vld [vmem:[%s7703_s9 + $0x2] ss:$0 sm:$0xff] }
 0x7a4   :  { %v3871_v17 = vadd.f32 %v3870_v4, %v3869_v52  ;;  %v3880_v38 = vadd.f32 %v3879_v61, %v3878_v56  ;;  %v3897_v5 = vrot.slane %v3896_v32, 4  ;;  %v3905_v45 = vadd.f32 %v3904_v48, %v7587_v22 }
 0x7a5   :  { %v3863_v23 = vrot.slane %v3862_v46, 2  ;;  %v3889_v35 = vadd.f32 %v3888_v53, %v3887_v10  ;;  %v3914_v60 = vadd.f32 %v3913_v62, %v7590_v24  ;;  %v3922_v29 = vsel %vm842_vm2, %v3785_v12, 0.0 }
 0x7a6   :  { %v3872_v15 = vrot.slane %v3871_v17, 2  ;;  %v3881_v59 = vrot.slane %v3880_v38, 2  ;;  %v3898_v44 = vadd.f32 %v3897_v5, %v3896_v32  ;;  %v3906_v30 = vrot.slane %v3905_v45, 4  ;;  %v4443_v5 = vld [vmem:[%s7704_s10 + $0x50] sm:$0xff] }
 0x7a7   :  { %v3864_v47 = vadd.f32 %v3863_v23, %v3862_v46  ;;  %v3890_v18 = vrot.slane %v3889_v35, 2  ;;  %v3915_v31 = vrot.slane %v3914_v60, 4  ;;  %v3923_v26 = vadd.f32 %v3922_v29, %v7593_v1  ;;  %v4442_v23 = vld [vmem:[%s7704_s10 + $0x48] sm:$0xff]  ;;  %v4441_v29 = vld [vmem:[%s7704_s10 + $0x40] sm:$0xff] }
 0x7a8   :  { %v3873_v8 = vadd.f32 %v3872_v15, %v3871_v17  ;;  %v3882_v42 = vadd.f32 %v3881_v59, %v3880_v38  ;;  %v3899_v6 = vrot.slane %v3898_v44, 2  ;;  %v3907_v33 = vadd.f32 %v3906_v30, %v3905_v45  ;;  %v4444_v38 = vld [vmem:[%s7704_s10 + $0x58] sm:$0xff] }
 0x7a9   :  { %v3865_v22 = vrot.slane %v3864_v47, 1  ;;  %v3891_v57 = vadd.f32 %v3890_v18, %v3889_v35  ;;  %v3916_v28 = vadd.f32 %v3915_v31, %v3914_v60  ;;  %v3924_v34 = vrot.slane %v3923_v26, 4  ;;  %4052 = vmatpush.msra.mxu1 %v4444_v38 }
 0x7aa   :  { %v3874_v24 = vrot.slane %v3873_v8, 1  ;;  %v3883_v49 = vrot.slane %v3882_v42, 1  ;;  %v3900_v13 = vadd.f32 %v3899_v6, %v3898_v44  ;;  %v3908_v39 = vrot.slane %v3907_v33, 2 }
 0x7ab   :  { %v3866_v9 = vadd.f32 %v3865_v22, %v3864_v47  ;;  %v3892_v16 = vrot.slane %v3891_v57, 1  ;;  %v3917_v51 = vrot.slane %v3916_v28, 2  ;;  %v3925_v43 = vadd.f32 %v3924_v34, %v3923_v26  ;;  %4053 = vmatpush.msra.mxu1 %v4443_v5 }
 0x7ac   :  { %v3875_v41 = vadd.f32 %v3874_v24, %v3873_v8  ;;  %v3884_v2 = vadd.f32 %v3883_v49, %v3882_v42  ;;  %v3901_v50 = vrot.slane %v3900_v13, 1  ;;  %v3909_v1 = vadd.f32 %v3908_v39, %v3907_v33 }
 0x7ad   :  { %v3918_v36 = vadd.f32 %v3917_v51, %v3916_v28  ;;  %v3926_v58 = vrot.slane %v3925_v43, 2  ;;  %v3893_v21 = vadd.f32 %v3892_v16, %v3891_v57  ;;  %4054 = vmatpush.msra.mxu1 %v4442_v23 }
 0x7ae   :  { %v3910_v19 = vrot.slane %v3909_v1, 1  ;;  %v3963_v12 = vsel %vm3247_vm10, %v3875_v41, %v3866_v9  ;;  %v3902_v11 = vadd.f32 %v3901_v50, %v3900_v13 }
 0x7af   :  { %v3919_v14 = vrot.slane %v3918_v36, 1  ;;  %v3927_v25 = vadd.f32 %v3926_v58, %v3925_v43  ;;  %v3964_v55 = vsel %vm3249_vm11, %v3884_v2, %v3963_v12  ;;  %4055 = vmatpush.msra.mxu1 %v4441_v29  ;;  %v4474_v43 = vld [vmem:[%s7705_s11 + $0x2] ss:$0 sm:$0xff]  ;;  %s4949_s11 = smov 128  }
 0x7b0   :  { %v3911_v3 = vadd.f32 %v3910_v19, %v3909_v1  ;;  %v3965_v37 = vsel %vm3251_vm12, %v3893_v21, %v3964_v55 }
 0x7b1   :  { %v3920_v52 = vadd.f32 %v3919_v14, %v3918_v36  ;;  %v3928_v56 = vrot.slane %v3927_v25, 1  ;;  %v3966_v27 = vsel %vm3253_vm13, %v3902_v11, %v3965_v37 }
 0x7b2   :  { %v3967_v63 = vsel %vm3255_vm14, %v3911_v3, %v3966_v27 }
 0x7b3   :  { %v3929_v40 = vadd.f32 %v3928_v56, %v3927_v25  ;;  %v3968_v10 = vsel %vm3257_vm15, %v3920_v52, %v3967_v63 }
 0x7b5   :  { %v3969_v54 = vsel %vm3259_vm1, %v3929_v40, %v3968_v10 }
 0x7b6   :  { %4438 = vmatmul.msk.f32.gmra.mxu3 %vm842_vm2, %v3969_v54 }
 0x826   :  { %v3991_v4 = vpop.f32.mrf.mxu3 }
 0x827   :  { %v3992_v61 = vadd.f32 %v4473_v0, %v3991_v4 }
 0x829   :  { %v3999_v32 = vand.u32 2147483647, %v3992_v61  ;;  %v3997_v31 = vmax.f32 %v3992_v61, 0.0 }
 0x82b   :  { %v4001_v46 = vsub.f32 0.0, %v3999_v32 }
 0x82d   :  { %v4003_v53 = vmul.f32 1.442695, %v4001_v46 }
 0x82f   :  { %4875 = vpow2.f32 %v4003_v53 }
 0x835   :  { %v4876_v48 = vpop.eup %4875 }
 0x836   :  { %v4007_v62 = vadd.f32 1.0, %v4876_v48  ;;  %v4010_v17 = vmul.f32 -0.5, %v4876_v48  ;;  %v4013_v15 = vand.u32 2147483647, %v4876_v48 }
 0x838   :  { %4877 = vlog2.f32 %v4007_v62  ;;  %v4011_v60 = vadd.f32 1.0, %v4010_v17  ;;  %vm4014_vm6 = vcmp.lt.f32.partialorder %v4013_v15, 0.0004427343 }
 0x839   :  { %v3994_v45 = vpop.f32.mrf.mxu3 }
 0x83a   :  { %v3995_v35 = vadd.f32 %v4473_v0, %v3994_v45  ;;  %v4012_v18 = vmul.f32 %v4876_v48, %v4011_v60 }
 0x83c   :  { %v4000_v59 = vand.u32 2147483647, %v3995_v35  ;;  %v3998_v39 = vmax.f32 %v3995_v35, 0.0 }
 0x83e   :  { %v4878_v44 = vpop.eup %4877  ;;  %v4002_v30 = vsub.f32 0.0, %v4000_v59 }
 0x83f   :  { %v4009_v47 = vmul.f32 0.6931472, %v4878_v44 }
 0x840   :  { %v4005_v26 = vmul.f32 1.442695, %v4002_v30 }
 0x841   :  { %v4015_v8 = vsel %vm4014_vm6, %v4012_v18, %v4009_v47 }
 0x842   :  { %v4025_v42 = vadd.f32 %v4015_v8, %v3997_v31  ;;  %4879 = vpow2.f32 %v4005_v26 }
 0x844   :  { %v4439_v6 = vadd.f32 -0.6931472, %v4025_v42 }
 0x846   :  { %4445 = vmatmul.msk.f32.vlgmr.msra.gmra.mxu1 %vm842_vm2, %v4439_v6 }
 0x848   :  { %v4880_v33 = vpop.eup %4879 }
 0x849   :  { %v4016_v22 = vadd.f32 1.0, %v4880_v33  ;;  %v4019_v57 = vmul.f32 -0.5, %v4880_v33  ;;  %v4022_v34 = vand.u32 2147483647, %v4880_v33 }
 0x84b   :  { %4881 = vlog2.f32 %v4016_v22  ;;  %v4020_v28 = vadd.f32 1.0, %v4019_v57  ;;  %vm4023_vm7 = vcmp.lt.f32.partialorder %v4022_v34, 0.0004427343 }
 0x84d   :  { %v4021_v13 = vmul.f32 %v4880_v33, %v4020_v28 }
 0x851   :  { %v4882_v24 = vpop.eup %4881 }
 0x852   :  { %v4018_v49 = vmul.f32 0.6931472, %v4882_v24 }
 0x854   :  { %v4024_v9 = vsel %vm4023_vm7, %v4021_v13, %v4018_v49 }
 0x855   :  { %v4026_v16 = vadd.f32 %v4024_v9, %v3998_v39 }
 0x857   :  { %v4440_v51 = vadd.f32 -0.6931472, %v4026_v16 }
 0x859   :  { %4446 = vmatmul.msk.f32.gmra.mxu1 %vm842_vm2, %v4440_v51 }
 0x8c3   :  { %v4057_v41 = vpop.f32.mrf.mxu1 }
 0x8c4   :  { %v4063_v2 = vadd.f32 %v4057_v41, %v7463_v7 }
 0x8c6   :  { %v4070_v50 = vadd.f32 %v4474_v43, %v4063_v2 }
 0x8c8   :  { %4072 = vst.msk [vmem:[#allocation2] sm:$0xff] %vm842_vm2, %v4070_v50 }
 0x8d6   :  { %v4060_v1 = vpop.f32.mrf.mxu1 }
 0x8d7   :  { %v4064_v36 = vadd.f32 %v4060_v1, %v7468_v20 }
 0x8d9   :  { %v4071_v58 = vadd.f32 %v4474_v43, %v4064_v36 }
 0x8db   :  { %4073 = vst.msk [vmem:[#allocation2 + $0x8] sm:$0xff] %vm842_vm2, %v4071_v58 }
 0x8dc   :  { %4086 = dma.vmem_to_hbm [thread:$0]  %s4079_s3, 256, %s4081_s0, [#allocation3], %s4949_s11, %s4949_s11, %s4950_s21  }
 0x8dd   :  { %4945 = dma.done.wait [#allocation3], 256  }
 0x8de   :  { %4946 = vsyncadd [#allocation3], 4294967040 }
 0x8df   :  { %4091 = vsyncpa [#allocation3], 1 }

</bundles_post_ra>
